<compile_context>
chip_gen: v7x
topology: tpu7x:2x2x1
jax: 0.10.0
libtpu: 0.0.40
codegen_flags: <defaults>
</compile_context>

<pallas_src>
import functools
import math

import jax
import jax.numpy as jnp
from jax import lax
from jax.experimental import pallas as pl
from jax.experimental.pallas import tpu as pltpu


# --------------------------------------------------------------------------- helpers

def _pick_tile(dim, preferred):
    """Largest preferred tile that evenly divides `dim`, else the full dim."""
    for t in preferred:
        if t <= dim and dim % t == 0:
            return t
    return dim


def _token_tile(T):
    """Token tile for elementwise kernels; prefer >= 2 blocks so both v7x cores get work."""
    preferred = (1024, 512, 256, 128, 64, 32, 16, 8)
    for t in preferred:
        if t <= T // 2 and T % t == 0:
            return t
    for t in preferred:
        if t <= T and T % t == 0:
            return t
    return T


def _mxu_int8_ok():
    """int8 x int8 -> int32 MXU is the fast path on v5e/v6e; v7x/other chips use bf16."""
    try:
        kind = jax.devices()[0].device_kind.lower()
    except Exception:
        return False
    return ("v5" in kind) or ("v6" in kind)


_USE_INT8_MXU = _mxu_int8_ok()
# int8 activation codes on v5e/v6e; bf16 codes elsewhere (values in [-127,127] are exact in
# bf16 and the per-tile VPU cast inside the matmul inner loop disappears on v7x).
_ACT_DTYPE = jnp.int8 if _USE_INT8_MXU else jnp.bfloat16
_MATMUL_VMEM_LIMIT = 48 * 1024 * 1024


# --------------------------------------------------------------------------- W8A8 matmul

def _w8a8_kernel(use_int8, has_residual):
    def kernel(*refs):
        if has_residual:
            q_ref, s_ref, w_ref, ws_ref, r_ref, o_ref, acc_ref = refs
        else:
            q_ref, s_ref, w_ref, ws_ref, o_ref, acc_ref = refs

        @pl.when(pl.program_id(2) == 0)
        def _():
            acc_ref[...] = jnp.zeros_like(acc_ref)

        if use_int8:
            # native int8 MXU path (v5e / v6e): int8 x int8 -> int32 accumulator
            acc_ref[...] += jnp.dot(q_ref[...], w_ref[...],
                                    preferred_element_type=jnp.int32)
        else:
            # v7x / fallback: activations already bf16 (no cast), weight cast int8 -> bf16
            acc_ref[...] += jnp.dot(q_ref[...].astype(jnp.bfloat16),
                                    w_ref[...].astype(jnp.bfloat16),
                                    preferred_element_type=jnp.float32)

        @pl.when(pl.program_id(2) == pl.num_programs(2) - 1)
        def _():
            out = acc_ref[...].astype(jnp.float32) * s_ref[...] * ws_ref[...]
            if has_residual:
                out = out + r_ref[...].astype(jnp.float32)
            o_ref[...] = out.astype(o_ref.dtype)

    return kernel


def w8a8_linear(q_act, act_scale, w_kn, w_scale_1n, residual=None, out_dtype=jnp.float32):
    """W8A8OF16LinearDynamicInputScale: quantized act (T,K) @ int8 weight (K,N),
    per-token activation scale x per-out-channel weight scale, optional fused residual."""
    T, K = q_act.shape
    N = w_kn.shape[1]
    tm = _pick_tile(T, (512, 256, 128, 64, 32, 16, 8))
    tn = _pick_tile(N, (512, 256, 128))
    tk = _pick_tile(K, (512, 256, 128))
    # v7x: guarantee >= 2 blocks on a parallel axis when the M grid collapses (decode).
    if T // tm == 1 and N // tn == 1 and N % 256 == 0:
        tn = N // 2
    grid = (T // tm, N // tn, K // tk)
    acc_dtype = jnp.int32 if _USE_INT8_MXU else jnp.float32

    if T <= 64 and K // tk >= 4:
        # decode-sized T with a deep K grid is weight-DMA bound: buffer the weight deeper.
        w_spec = pl.BlockSpec((tk, tn), lambda i, j, k: (k, j),
                              pipeline_mode=pl.Buffered(3))
    else:
        w_spec = pl.BlockSpec((tk, tn), lambda i, j, k: (k, j))

    in_specs = [
        pl.BlockSpec((tm, tk), lambda i, j, k: (i, k)),   # quantized activations
        pl.BlockSpec((tm, 1), lambda i, j, k: (i, 0)),    # per-token activation scale
        w_spec,                                           # int8 weight (K, N)
        pl.BlockSpec((1, tn), lambda i, j, k: (0, j)),    # per-channel weight scale
    ]
    args = [q_act, act_scale, w_kn, w_scale_1n]
    if residual is not None:
        in_specs.append(pl.BlockSpec((tm, tn), lambda i, j, k: (i, j)))
        args.append(residual)

    return pl.pallas_call(
        _w8a8_kernel(_USE_INT8_MXU, residual is not None),
        out_shape=jax.ShapeDtypeStruct((T, N), out_dtype),
        grid=grid,
        in_specs=in_specs,
        out_specs=pl.BlockSpec((tm, tn), lambda i, j, k: (i, j)),
        scratch_shapes=[pltpu.VMEM((tm, tn), acc_dtype)],
        compiler_params=pltpu.CompilerParams(
            dimension_semantics=("parallel", "parallel", "arbitrary"),
            vmem_limit_bytes=_MATMUL_VMEM_LIMIT),
    )(*args)


# --------------------------------------------------------------------------- quant helpers

def _quant_body(x, q_ref, s_ref):
    """Per-token symmetric int8 quantization of f32 x (rows = tokens)."""
    amax = jnp.max(jnp.abs(x), axis=-1, keepdims=True)
    scale = jnp.maximum(amax, 1e-8) * (1.0 / 127.0)
    q_ref[...] = jnp.clip(jnp.round(x / scale), -127.0, 127.0).astype(q_ref.dtype)
    s_ref[...] = scale


def _rmsnorm_quant_kernel(eps):
    def kernel(x_ref, w_ref, q_ref, s_ref):
        x = x_ref[...].astype(jnp.float32)
        var = jnp.mean(x * x, axis=-1, keepdims=True)
        xn = x * lax.rsqrt(var + eps) * w_ref[...]
        _quant_body(xn, q_ref, s_ref)
    return kernel


def rmsnorm_quant(x, weight, eps=1e-6):
    """rms_norm_general: RMSNorm + per-token quant, token-tiled."""
    T, D = x.shape
    tt = _token_tile(T)
    return pl.pallas_call(
        _rmsnorm_quant_kernel(eps),
        out_shape=(jax.ShapeDtypeStruct((T, D), _ACT_DTYPE),
                   jax.ShapeDtypeStruct((T, 1), jnp.float32)),
        grid=(T // tt,),
        in_specs=[pl.BlockSpec((tt, D), lambda i: (i, 0)),
                  pl.BlockSpec((1, D), lambda i: (0, 0))],
        out_specs=(pl.BlockSpec((tt, D), lambda i: (i, 0)),
                   pl.BlockSpec((tt, 1), lambda i: (i, 0))),
        compiler_params=pltpu.CompilerParams(dimension_semantics=("parallel",)),
    )(x, weight.reshape(1, D))


def _invoke_quant_kernel(x_ref, q_ref, s_ref):
    _quant_body(x_ref[...].astype(jnp.float32), q_ref, s_ref)


def invoke_quant(x):
    """awq_inference_engine.invoke_quant: per-token quant of the attention output."""
    T, D = x.shape
    tt = _token_tile(T)
    return pl.pallas_call(
        _invoke_quant_kernel,
        out_shape=(jax.ShapeDtypeStruct((T, D), _ACT_DTYPE),
                   jax.ShapeDtypeStruct((T, 1), jnp.float32)),
        grid=(T // tt,),
        in_specs=[pl.BlockSpec((tt, D), lambda i: (i, 0))],
        out_specs=(pl.BlockSpec((tt, D), lambda i: (i, 0)),
                   pl.BlockSpec((tt, 1), lambda i: (i, 0))),
        compiler_params=pltpu.CompilerParams(dimension_semantics=("parallel",)),
    )(x)


def _silu_mul_quant_split_kernel(g_ref, u_ref, q_ref, s_ref):
    gate = g_ref[...].astype(jnp.float32)
    up = u_ref[...].astype(jnp.float32)
    act = gate * (1.0 / (1.0 + jnp.exp(-gate))) * up
    _quant_body(act, q_ref, s_ref)


def _silu_mul_quant_fused_kernel(inter):
    def kernel(gu_ref, q_ref, s_ref):
        gu = gu_ref[...].astype(jnp.float32)
        act = gu[:, :inter] * (1.0 / (1.0 + jnp.exp(-gu[:, :inter]))) * gu[:, inter:]
        _quant_body(act, q_ref, s_ref)
    return kernel


def silu_mul_quant(gateup):
    """awq_inference_engine.silu_and_mul_quant, token-tiled."""
    T, twoI = gateup.shape
    inter = twoI // 2
    tt = _token_tile(T)
    if inter % 128 == 0:
        # Real-model path: separate gate / up refs on the same array (no in-kernel slice
        # copies, half the live tile).
        kernel = _silu_mul_quant_split_kernel
        in_specs = [pl.BlockSpec((tt, inter), lambda i: (i, 0)),
                    pl.BlockSpec((tt, inter), lambda i: (i, 1))]
        args = (gateup, gateup)
    else:
        kernel = _silu_mul_quant_fused_kernel(inter)
        in_specs = [pl.BlockSpec((tt, twoI), lambda i: (i, 0))]
        args = (gateup,)
    return pl.pallas_call(
        kernel,
        out_shape=(jax.ShapeDtypeStruct((T, inter), _ACT_DTYPE),
                   jax.ShapeDtypeStruct((T, 1), jnp.float32)),
        grid=(T // tt,),
        in_specs=in_specs,
        out_specs=(pl.BlockSpec((tt, inter), lambda i: (i, 0)),
                   pl.BlockSpec((tt, 1), lambda i: (i, 0))),
        compiler_params=pltpu.CompilerParams(dimension_semantics=("parallel",)),
    )(*args)


def rmsnorm(x, weight, eps=1e-6):
    """Final plain RMSNorm (module.norm), token-tiled."""
    T, D = x.shape
    tt = _token_tile(T)

    def kernel(x_ref, w_ref, o_ref):
        xx = x_ref[...].astype(jnp.float32)
        var = jnp.mean(xx * xx, axis=-1, keepdims=True)
        o_ref[...] = (xx * lax.rsqrt(var + eps) * w_ref[...]).astype(o_ref.dtype)

    return pl.pallas_call(
        kernel,
        out_shape=jax.ShapeDtypeStruct((T, D), jnp.float32),
        grid=(T // tt,),
        in_specs=[pl.BlockSpec((tt, D), lambda i: (i, 0)),
                  pl.BlockSpec((1, D), lambda i: (0, 0))],
        out_specs=pl.BlockSpec((tt, D), lambda i: (i, 0)),
        compiler_params=pltpu.CompilerParams(dimension_semantics=("parallel",)),
    )(x, weight.reshape(1, D))


# --------------------------------------------------------------------------- attention

def _attn_kernel(n_kv_local, g, hd, softcap):
    """One grid step = one kv-head block (n_kv_local kv heads, g query heads each) x one
    KV tile.  Flash-style online softmax over the KV-tile grid axis; RoPE fused in-kernel;
    bf16 MXU operands with f32 accumulation."""
    half = hd // 2
    inv_sqrt_d = 1.0 / math.sqrt(hd)
    inv_cap = (1.0 / softcap) if softcap != 0 else 0.0

    def rope(x, c, s):
        x1 = x[:, :half]
        x2 = x[:, half:]
        # TODO(synk): pltpu.roll(x, half, -1) * sign would move this to the XLU slot; the
        #             concat form is kept for portability across head_dim sizes.
        rot = jnp.concatenate([-x2, x1], axis=-1)
        return x * c + rot * s

    def kernel(q_ref, k_ref, v_ref, cq_ref, sq_ref, ck_ref, sk_ref,
               o_ref, m_ref, l_ref, acc_ref):
        t = pl.program_id(2)

        @pl.when(t == 0)
        def _():
            m_ref[...] = jnp.full(m_ref.shape, -jnp.inf, jnp.float32)
            l_ref[...] = jnp.zeros(l_ref.shape, jnp.float32)
            acc_ref[...] = jnp.zeros(acc_ref.shape, jnp.float32)

        cq = cq_ref[...]
        sq = sq_ref[...]
        ck = ck_ref[...]
        sk = sk_ref[...]

        for kvl in range(n_kv_local):
            ks = kvl * hd
            k_h = rope(k_ref[0, :, ks:ks + hd].astype(jnp.float32), ck, sk)
            k_h = k_h.astype(jnp.bfloat16)                        # MXU operands in bf16
            v_h = v_ref[0, :, ks:ks + hd].astype(jnp.bfloat16)
            for qg in range(g):
                hl = kvl * g + qg
                qs = hl * hd
                q_h = rope(q_ref[0, :, qs:qs + hd].astype(jnp.float32), cq, sq)
                q_h = q_h.astype(jnp.bfloat16)
                # scores: contract head_dim without materializing a transpose
                s = lax.dot_general(q_h, k_h, (((1,), (1,)), ((), ())),
                                    preferred_element_type=jnp.float32) * inv_sqrt_d
                if softcap != 0:
                    s = jnp.tanh(s * inv_cap) * softcap
                m_prev = m_ref[hl]
                m_new = jnp.maximum(m_prev, jnp.max(s, axis=-1, keepdims=True))
                alpha = jnp.exp(m_prev - m_new)
                p = jnp.exp(s - m_new)
                l_ref[hl] = alpha * l_ref[hl] + jnp.sum(p, axis=-1, keepdims=True)
                acc_ref[hl] = alpha * acc_ref[hl] + jnp.dot(
                    p.astype(jnp.bfloat16), v_h, preferred_element_type=jnp.float32)
                m_ref[hl] = m_new

        @pl.when(t == pl.num_programs(2) - 1)
        def _():
            for hl in range(n_kv_local * g):
                qs = hl * hd
                o_ref[0, :, qs:qs + hd] = (acc_ref[hl] / l_ref[hl]).astype(o_ref.dtype)

    return kernel


def fused_rope_attention(qkv, cos, sin, *, bsz, seqlen, num_heads, num_kv_heads,
                         head_dim, softcap, out_dtype=jnp.bfloat16):
    """RoPE + softcapped GQA attention straight from the fused qkv activation.

    qkv: (B*S, q_dim + 2*kv_dim); cos/sin: (S, hd).  Returns (B, S, H*hd) `out_dtype`."""
    B, S, H, KVH, hd = bsz, seqlen, num_heads, num_kv_heads, head_dim
    g = H // KVH
    q_dim = H * hd
    kv_dim = KVH * hd
    d_qkv = q_dim + 2 * kv_dim
    qkv3 = qkv.reshape(B, S, d_qkv)

    # Head blocking: one kv head (and its g query heads) per grid step when head_dim is
    # lane-aligned (real Llama: hd == 128); tiny test shapes fall back to a single block
    # over all heads so every BlockSpec keeps full / 128-aligned trailing dims.
    fused_views = (hd % 128 == 0) and (d_qkv % (g * hd) == 0)
    kvh_per_blk = 1 if fused_views else KVH
    n_kvb = KVH // kvh_per_blk
    q_cols = kvh_per_blk * g * hd
    k_cols = kvh_per_blk * hd
    n_local = kvh_per_blk * g

    tkv = _pick_tile(S, (512, 256, 128))   # KV tile (bounds per-step VMEM; flash over t)
    nkv = S // tkv

    if fused_views:
        # No jnp.split: Q/K/V read straight out of the fused qkv activation via
        # column-offset BlockSpecs (saves one full HBM read+write of QKV per layer).
        q_arr = k_arr = v_arr = qkv3
        q_base = 0
        k_base = q_dim // k_cols
        v_base = (q_dim + kv_dim) // k_cols
    else:
        q_arr, k_arr, v_arr = jnp.split(qkv3, [q_dim, q_dim + kv_dim], axis=-1)
        q_base = k_base = v_base = 0

    return pl.pallas_call(
        _attn_kernel(kvh_per_blk, g, hd, softcap),
        out_shape=jax.ShapeDtypeStruct((B, S, q_dim), out_dtype),
        grid=(B, n_kvb, nkv),
        in_specs=[
            pl.BlockSpec((1, S, q_cols), lambda b, j, t: (b, 0, q_base + j)),
            pl.BlockSpec((1, tkv, k_cols), lambda b, j, t: (b, t, k_base + j)),
            pl.BlockSpec((1, tkv, k_cols), lambda b, j, t: (b, t, v_base + j)),
            pl.BlockSpec((S, hd), lambda b, j, t: (0, 0)),     # cos for Q rows
            pl.BlockSpec((S, hd), lambda b, j, t: (0, 0)),     # sin for Q rows
            pl.BlockSpec((tkv, hd), lambda b, j, t: (t, 0)),   # cos for K tile rows
            pl.BlockSpec((tkv, hd), lambda b, j, t: (t, 0)),   # sin for K tile rows
        ],
        out_specs=pl.BlockSpec((1, S, q_cols), lambda b, j, t: (b, 0, j)),
        scratch_shapes=[
            pltpu.VMEM((n_local, S, 1), jnp.float32),          # running max m
            pltpu.VMEM((n_local, S, 1), jnp.float32),          # running denom l
            pltpu.VMEM((n_local, S, hd), jnp.float32),         # output accumulator
        ],
        compiler_params=pltpu.CompilerParams(
            dimension_semantics=("parallel", "parallel", "arbitrary")),
    )(q_arr, k_arr, v_arr, cos, sin, cos, sin)


# --------------------------------------------------------------------------- model glue

def precompute_freqs(dim, end, theta=10000.0):
    inv_freq = 1.0 / (theta ** (jnp.arange(0, dim, 2, dtype=jnp.float32) / dim))
    seq = jnp.arange(end, dtype=jnp.float32)
    f = jnp.einsum("i,j->ij", seq, inv_freq)
    return jnp.concatenate([f, f], axis=-1)                      # (end, dim)


@functools.partial(jax.jit, static_argnames=("num_heads", "num_kv_heads", "head_dim",
                                             "theta", "softcap", "eps"))
def quant_llama_model_forward(inputs_embeds, params, *, num_heads, num_kv_heads,
                              head_dim, theta=10000.0, softcap=50.0, eps=1e-6):
    bsz, seqlen, D = inputs_embeds.shape
    T = bsz * seqlen
    H, KVH, hd = num_heads, num_kv_heads, head_dim
    q_dim = H * hd

    freqs = precompute_freqs(hd, seqlen + 1, theta)[:seqlen]     # positions 0..S-1
    cos = jnp.cos(freqs)
    sin = jnp.sin(freqs)

    # TODO(synk): torch uses float16 activations; the residual stream is f32 here.
    hidden = inputs_embeds.astype(jnp.float32).reshape(T, D)

    for lp in params["layers"]:
        # ---- attention block
        q_in, s_in = rmsnorm_quant(hidden, lp["ln_in_w"], eps)
        qkv = w8a8_linear(q_in, s_in, lp["qkv_wT"], lp["qkv_ws"], out_dtype=jnp.bfloat16)
        attn = fused_rope_attention(qkv, cos, sin, bsz=bsz, seqlen=seqlen,
                                    num_heads=H, num_kv_heads=KVH, head_dim=hd,
                                    softcap=softcap)
        attn_q, attn_s = invoke_quant(attn.reshape(T, q_dim))
        hidden = w8a8_linear(attn_q, attn_s, lp["o_wT"], lp["o_ws"],
                             residual=hidden, out_dtype=jnp.float32)

        # ---- MLP block
        q_p, s_p = rmsnorm_quant(hidden, lp["ln_post_w"], eps)
        gateup = w8a8_linear(q_p, s_p, lp["gateup_wT"], lp["gateup_ws"],
                             out_dtype=jnp.bfloat16)
        q_m, s_m = silu_mul_quant(gateup)
        hidden = w8a8_linear(q_m, s_m, lp["down_wT"], lp["down_ws"],
                             residual=hidden, out_dtype=jnp.float32)

    out = rmsnorm(hidden, params["norm_w"], eps)
    return out.reshape(bsz, seqlen, D)


# --------------------------------------------------------------------------- params

def _make_params(key, num_layers, hidden, inter, q_dim, kv_dim):
    """Parameters in the torch layout: int8 weights (N, K), per-channel scales (N,)."""
    layers = []
    for _ in range(num_layers):
        keys = jax.random.split(key, 11)
        key = keys[0]

        def int8_w(k, shape):
            return jax.random.randint(k, shape, -127, 128, dtype=jnp.int32).astype(jnp.int8)

        def wscale(k, n):
            return jax.random.uniform(k, (n,), minval=0.005, maxval=0.02, dtype=jnp.float32)

        layers.append(dict(
            ln_in_w=1.0 + 0.05 * jax.random.normal(keys[1], (hidden,), dtype=jnp.float32),
            ln_post_w=1.0 + 0.05 * jax.random.normal(keys[2], (hidden,), dtype=jnp.float32),
            qkv_w=int8_w(keys[3], (q_dim + 2 * kv_dim, hidden)),
            qkv_ws=wscale(keys[4], q_dim + 2 * kv_dim),
            o_w=int8_w(keys[5], (hidden, q_dim)),
            o_ws=wscale(keys[6], hidden),
            gateup_w=int8_w(keys[7], (2 * inter, hidden)),
            gateup_ws=wscale(keys[8], 2 * inter),
            down_w=int8_w(keys[9], (hidden, inter)),
            down_ws=wscale(keys[10], hidden),
        ))
    kf = jax.random.fold_in(key, 123)
    norm_w = 1.0 + 0.05 * jax.random.normal(kf, (hidden,), dtype=jnp.float32)
    return dict(layers=layers, norm_w=norm_w)


def prepare_params(params):
    """One-time layout prep at load time (NOT per forward call): transpose int8 weights from
    torch (N, K) to (K, N) and reshape per-channel scales to (1, N)."""
    layers = []
    for lp in params["layers"]:
        layers.append(dict(
            ln_in_w=lp["ln_in_w"],
            ln_post_w=lp["ln_post_w"],
            qkv_wT=jnp.asarray(lp["qkv_w"].T), qkv_ws=lp["qkv_ws"].reshape(1, -1),
            o_wT=jnp.asarray(lp["o_w"].T), o_ws=lp["o_ws"].reshape(1, -1),
            gateup_wT=jnp.asarray(lp["gateup_w"].T), gateup_ws=lp["gateup_ws"].reshape(1, -1),
            down_wT=jnp.asarray(lp["down_w"].T), down_ws=lp["down_ws"].reshape(1, -1),
        ))
    return dict(layers=layers, norm_w=params["norm_w"])


# --------------------------------------------------------------------------- main

if __name__ == "__main__":
    # small config consistent with the module's forward
    bsz, seqlen = 2, 8
    hidden = 32           # q_proj.in_features == q_proj.out_features
    num_heads = 4
    head_dim = hidden // num_heads        # 8
    num_kv_heads = 2                      # attn_group = 2
    inter = 64
    num_layers = 2
    theta = 10000.0

    q_dim = num_heads * head_dim
    kv_dim = num_kv_heads * head_dim

    root = jax.random.PRNGKey(0)
    k_params, k_x = jax.random.split(root)
    params = prepare_params(_make_params(k_params, num_layers, hidden, inter, q_dim, kv_dim))

    inputs_embeds = 0.5 * jax.random.normal(k_x, (bsz, seqlen, hidden), dtype=jnp.float32)

    out = quant_llama_model_forward(
        inputs_embeds, params,
        num_heads=num_heads, num_kv_heads=num_kv_heads, head_dim=head_dim,
        theta=theta, softcap=50.0, eps=1e-6,
    )
    out = jax.block_until_ready(out)
    assert out.shape == (bsz, seqlen, hidden)
    assert bool(jnp.all(jnp.isfinite(out)))
    print("KERNEL_OK")
</pallas_src>

<mosaic_0001>
module attributes {stable_mosaic.version = 11 : i64} {
  func.func @kernel(%arg0: i32, %arg1: i32, %arg2: i32, %arg3: memref<16x32xbf16, #tpu.memory_space<vmem>>, %arg4: memref<16x1xf32, #tpu.memory_space<vmem>>, %arg5: memref<32x64xi8, #tpu.memory_space<vmem>>, %arg6: memref<1x64xf32, #tpu.memory_space<vmem>>, %arg7: memref<16x64xbf16, #tpu.memory_space<vmem>>, %arg8: memref<16x64xf32, #tpu.memory_space<vmem>>) attributes {dimension_semantics = [#tpu.dimension_semantics<parallel>, #tpu.dimension_semantics<parallel>, #tpu.dimension_semantics<arbitrary>], iteration_bounds = array<i64: 1, 1, 1>, scalar_prefetch = 0 : i64, scratch_operands = 1 : i64, tpu.core_type = #tpu.core_type<tc>, window_params = [{transform_indices = @transform_0, window_bounds = array<i64: 16, 32>}, {transform_indices = @transform_1, window_bounds = array<i64: 16, 1>}, {transform_indices = @transform_2, window_bounds = array<i64: 32, 64>}, {transform_indices = @transform_3, window_bounds = array<i64: 1, 64>}, {transform_indices = @transform_4, window_bounds = array<i64: 16, 64>}]} {
    %c0_i32 = arith.constant 0 : i32
    %0 = arith.cmpi eq, %arg2, %c0_i32 : i32
    %1 = arith.extui %0 : i1 to i32
    %c0_i32_0 = arith.constant 0 : i32
    %2 = arith.cmpi ne, %1, %c0_i32_0 : i32
    scf.if %2 {
      %cst_10 = arith.constant 0.000000e+00 : f32
      %13 = vector.broadcast %cst_10 : f32 to vector<16x64xf32>
      %c0_11 = arith.constant 0 : index
      %c0_12 = arith.constant 0 : index
      %14 = vector.load %arg8[%c0_11, %c0_12] : memref<16x64xf32, #tpu.memory_space<vmem>>, vector<16x64xf32>
      tpu.vector_store %arg8[%c0_11, %c0_12], %13 {strides = array<i32>} : memref<16x64xf32, #tpu.memory_space<vmem>>, vector<16x64xf32>,
    } else {
    }
    %c0 = arith.constant 0 : index
    %c0_1 = arith.constant 0 : index
    %3 = vector.load %arg8[%c0, %c0_1] : memref<16x64xf32, #tpu.memory_space<vmem>>, vector<16x64xf32>
    %c0_2 = arith.constant 0 : index
    %c0_3 = arith.constant 0 : index
    %4 = vector.load %arg3[%c0_2, %c0_3] : memref<16x32xbf16, #tpu.memory_space<vmem>>, vector<16x32xbf16>
    %c0_4 = arith.constant 0 : index
    %c0_5 = arith.constant 0 : index
    %5 = vector.load %arg5[%c0_4, %c0_5] : memref<32x64xi8, #tpu.memory_space<vmem>>, vector<32x64xi8>
    %6 = arith.sitofp %5 : vector<32x64xi8> to vector<32x64xbf16>
    %cst = arith.constant dense<0.000000e+00> : vector<16x64xf32>
    %7 = tpu.matmul %4, %6, %cst {dimension_numbers = #tpu.dot_dimension_numbers<[1], [0], [0], [1], [0, 0, 1, 1], [], []>} : vector<16x32xbf16>, vector<32x64xbf16>, vector<16x64xf32> -> vector<16x64xf32>
    %8 = arith.addf %3, %7 : vector<16x64xf32>
    %c0_6 = arith.constant 0 : index
    %c0_7 = arith.constant 0 : index
    %9 = vector.load %arg8[%c0_6, %c0_7] : memref<16x64xf32, #tpu.memory_space<vmem>>, vector<16x64xf32>
    tpu.vector_store %arg8[%c0_6, %c0_7], %8 {strides = array<i32>} : memref<16x64xf32, #tpu.memory_space<vmem>>, vector<16x64xf32>,
    %c0_i32_8 = arith.constant 0 : i32
    %10 = arith.cmpi eq, %arg2, %c0_i32_8 : i32
    %11 = arith.extui %10 : i1 to i32
    %c0_i32_9 = arith.constant 0 : i32
    %12 = arith.cmpi ne, %11, %c0_i32_9 : i32
    scf.if %12 {
      %c0_10 = arith.constant 0 : index
      %c0_11 = arith.constant 0 : index
      %13 = vector.load %arg8[%c0_10, %c0_11] : memref<16x64xf32, #tpu.memory_space<vmem>>, vector<16x64xf32>
      %c0_12 = arith.constant 0 : index
      %c0_13 = arith.constant 0 : index
      %14 = vector.load %arg4[%c0_12, %c0_13] : memref<16x1xf32, #tpu.memory_space<vmem>>, vector<16x1xf32>
      %15 = vector.broadcast %14 : vector<16x1xf32> to vector<16x64xf32>
      %16 = arith.mulf %13, %15 : vector<16x64xf32>
      %c0_14 = arith.constant 0 : index
      %c0_15 = arith.constant 0 : index
      %17 = vector.load %arg6[%c0_14, %c0_15] : memref<1x64xf32, #tpu.memory_space<vmem>>, vector<1x64xf32>
      %18 = vector.broadcast %17 : vector<1x64xf32> to vector<16x64xf32>
      %19 = arith.mulf %16, %18 : vector<16x64xf32>
      %20 = arith.truncf %19 : vector<16x64xf32> to vector<16x64xbf16>
      %c0_16 = arith.constant 0 : index
      %c0_17 = arith.constant 0 : index
      %21 = vector.load %arg7[%c0_16, %c0_17] : memref<16x64xbf16, #tpu.memory_space<vmem>>, vector<16x64xbf16>
      tpu.vector_store %arg7[%c0_16, %c0_17], %20 {strides = array<i32>} : memref<16x64xbf16, #tpu.memory_space<vmem>>, vector<16x64xbf16>,
    } else {
    }
    return
  }
  func.func @transform_0(%arg0: i32, %arg1: i32, %arg2: i32) -> (i32, i32) {
    %c0_i32 = arith.constant 0 : i32
    return %arg0, %arg2 : i32, i32
  }
  func.func @transform_1(%arg0: i32, %arg1: i32, %arg2: i32) -> (i32, i32) {
    %c0_i32 = arith.constant 0 : i32
    %c0_i32_0 = arith.constant 0 : i32
    return %arg0, %c0_i32 : i32, i32
  }
  func.func @transform_2(%arg0: i32, %arg1: i32, %arg2: i32) -> (i32, i32) {
    %c0_i32 = arith.constant 0 : i32
    return %arg2, %arg1 : i32, i32
  }
  func.func @transform_3(%arg0: i32, %arg1: i32, %arg2: i32) -> (i32, i32) {
    %c0_i32 = arith.constant 0 : i32
    %c0_i32_0 = arith.constant 0 : i32
    return %c0_i32, %arg1 : i32, i32
  }
  func.func @transform_4(%arg0: i32, %arg1: i32, %arg2: i32) -> (i32, i32) {
    %c0_i32 = arith.constant 0 : i32
    return %arg0, %arg1 : i32, i32
  }
}

module attributes {stable_mosaic.version = 11 : i64} {
  func.func @kernel(%arg0: i32, %arg1: memref<8x32xf32, #tpu.memory_space<vmem>>, %arg2: memref<1x32xf32, #tpu.memory_space<vmem>>, %arg3: memref<8x32xbf16, #tpu.memory_space<vmem>>, %arg4: memref<8x1xf32, #tpu.memory_space<vmem>>) attributes {dimension_semantics = [#tpu.dimension_semantics<parallel>], iteration_bounds = array<i64: 2>, scalar_prefetch = 0 : i64, scratch_operands = 0 : i64, tpu.core_type = #tpu.core_type<tc>, window_params = [{transform_indices = @transform_0, window_bounds = array<i64: 8, 32>}, {pipeline_mode = #tpu.pipeline_mode<synchronous>, transform_indices = @transform_1, window_bounds = array<i64: 1, 32>}, {transform_indices = @transform_2, window_bounds = array<i64: 8, 32>}, {transform_indices = @transform_3, window_bounds = array<i64: 8, 1>}]} {
    %c0 = arith.constant 0 : index
    %c0_0 = arith.constant 0 : index
    %0 = vector.load %arg1[%c0, %c0_0] : memref<8x32xf32, #tpu.memory_space<vmem>>, vector<8x32xf32>
    %1 = arith.mulf %0, %0 : vector<8x32xf32>
    %cst = arith.constant dense<0.000000e+00> : vector<8xf32>
    %2 = vector.multi_reduction <add>, %1, %cst [1] : vector<8x32xf32> to vector<8xf32>
    %3 = vector.shape_cast %2 : vector<8xf32> to vector<8x1xf32>
    %cst_1 = arith.constant 3.200000e+01 : f32
    %4 = vector.broadcast %cst_1 : f32 to vector<8x1xf32>
    %5 = arith.divf %3, %4 : vector<8x1xf32>
    %cst_2 = arith.constant 9.99999997E-7 : f32
    %6 = vector.broadcast %cst_2 : f32 to vector<8x1xf32>
    %7 = arith.addf %5, %6 : vector<8x1xf32>
    %8 = math.rsqrt %7 : vector<8x1xf32>
    %9 = vector.broadcast %8 : vector<8x1xf32> to vector<8x32xf32>
    %10 = arith.mulf %0, %9 : vector<8x32xf32>
    %c0_3 = arith.constant 0 : index
    %c0_4 = arith.constant 0 : index
    %11 = vector.load %arg2[%c0_3, %c0_4] : memref<1x32xf32, #tpu.memory_space<vmem>>, vector<1x32xf32>
    %12 = vector.broadcast %11 : vector<1x32xf32> to vector<8x32xf32>
    %13 = arith.mulf %10, %12 : vector<8x32xf32>
    %14 = math.absf %13 : vector<8x32xf32>
    %cst_5 = arith.constant dense<0xFF800000> : vector<8xf32>
    %15 = vector.multi_reduction <maximumf>, %14, %cst_5 [1] : vector<8x32xf32> to vector<8xf32>
    %16 = vector.shape_cast %15 : vector<8xf32> to vector<8x1xf32>
    %cst_6 = arith.constant 9.99999993E-9 : f32
    %17 = vector.broadcast %cst_6 : f32 to vector<8x1xf32>
    %18 = arith.maximumf %16, %17 : vector<8x1xf32>
    %cst_7 = arith.constant 0.00787401571 : f32
    %19 = vector.broadcast %cst_7 : f32 to vector<8x1xf32>
    %20 = arith.mulf %18, %19 : vector<8x1xf32>
    %21 = vector.broadcast %20 : vector<8x1xf32> to vector<8x32xf32>
    %22 = arith.divf %13, %21 : vector<8x32xf32>
    %23 = math.roundeven %22 : vector<8x32xf32>
    %cst_8 = arith.constant -1.270000e+02 : f32
    %cst_9 = arith.constant 1.270000e+02 : f32
    %24 = vector.broadcast %cst_8 : f32 to vector<8x32xf32>
    %25 = arith.maximumf %24, %23 : vector<8x32xf32>
    %26 = vector.broadcast %cst_9 : f32 to vector<8x32xf32>
    %27 = arith.minimumf %26, %25 : vector<8x32xf32>
    %28 = arith.truncf %27 : vector<8x32xf32> to vector<8x32xbf16>
    %c0_10 = arith.constant 0 : index
    %c0_11 = arith.constant 0 : index
    %29 = vector.load %arg3[%c0_10, %c0_11] : memref<8x32xbf16, #tpu.memory_space<vmem>>, vector<8x32xbf16>
    tpu.vector_store %arg3[%c0_10, %c0_11], %28 {strides = array<i32>} : memref<8x32xbf16, #tpu.memory_space<vmem>>, vector<8x32xbf16>,
    %c0_12 = arith.constant 0 : index
    %c0_13 = arith.constant 0 : index
    %30 = vector.load %arg4[%c0_12, %c0_13] : memref<8x1xf32, #tpu.memory_space<vmem>>, vector<8x1xf32>
    tpu.vector_store %arg4[%c0_12, %c0_13], %20 {strides = array<i32>} : memref<8x1xf32, #tpu.memory_space<vmem>>, vector<8x1xf32>,
    return
  }
  func.func @transform_0(%arg0: i32) -> (i32, i32) {
    %c0_i32 = arith.constant 0 : i32
    %c0_i32_0 = arith.constant 0 : i32
    return %arg0, %c0_i32 : i32, i32
  }
  func.func @transform_1(%arg0: i32) -> (i32, i32) {
    %c0_i32 = arith.constant 0 : i32
    %c0_i32_0 = arith.constant 0 : i32
    %c0_i32_1 = arith.constant 0 : i32
    return %c0_i32, %c0_i32_0 : i32, i32
  }
  func.func @transform_2(%arg0: i32) -> (i32, i32) {
    %c0_i32 = arith.constant 0 : i32
    %c0_i32_0 = arith.constant 0 : i32
    return %arg0, %c0_i32 : i32, i32
  }
  func.func @transform_3(%arg0: i32) -> (i32, i32) {
    %c0_i32 = arith.constant 0 : i32
    %c0_i32_0 = arith.constant 0 : i32
    return %arg0, %c0_i32 : i32, i32
  }
}

module attributes {stable_mosaic.version = 11 : i64} {
  func.func @_invoke_quant_kernel(%arg0: i32, %arg1: memref<8x32xbf16, #tpu.memory_space<vmem>>, %arg2: memref<8x32xbf16, #tpu.memory_space<vmem>>, %arg3: memref<8x1xf32, #tpu.memory_space<vmem>>) attributes {dimension_semantics = [#tpu.dimension_semantics<parallel>], iteration_bounds = array<i64: 2>, scalar_prefetch = 0 : i64, scratch_operands = 0 : i64, tpu.core_type = #tpu.core_type<tc>, window_params = [{transform_indices = @transform_0, window_bounds = array<i64: 8, 32>}, {transform_indices = @transform_1, window_bounds = array<i64: 8, 32>}, {transform_indices = @transform_2, window_bounds = array<i64: 8, 1>}]} {
    %c0 = arith.constant 0 : index
    %c0_0 = arith.constant 0 : index
    %0 = vector.load %arg1[%c0, %c0_0] : memref<8x32xbf16, #tpu.memory_space<vmem>>, vector<8x32xbf16>
    %1 = arith.extf %0 : vector<8x32xbf16> to vector<8x32xf32>
    %2 = math.absf %1 : vector<8x32xf32>
    %cst = arith.constant dense<0xFF800000> : vector<8xf32>
    %3 = vector.multi_reduction <maximumf>, %2, %cst [1] : vector<8x32xf32> to vector<8xf32>
    %4 = vector.shape_cast %3 : vector<8xf32> to vector<8x1xf32>
    %cst_1 = arith.constant 9.99999993E-9 : f32
    %5 = vector.broadcast %cst_1 : f32 to vector<8x1xf32>
    %6 = arith.maximumf %4, %5 : vector<8x1xf32>
    %cst_2 = arith.constant 0.00787401571 : f32
    %7 = vector.broadcast %cst_2 : f32 to vector<8x1xf32>
    %8 = arith.mulf %6, %7 : vector<8x1xf32>
    %9 = vector.broadcast %8 : vector<8x1xf32> to vector<8x32xf32>
    %10 = arith.divf %1, %9 : vector<8x32xf32>
    %11 = math.roundeven %10 : vector<8x32xf32>
    %cst_3 = arith.constant -1.270000e+02 : f32
    %cst_4 = arith.constant 1.270000e+02 : f32
    %12 = vector.broadcast %cst_3 : f32 to vector<8x32xf32>
    %13 = arith.maximumf %12, %11 : vector<8x32xf32>
    %14 = vector.broadcast %cst_4 : f32 to vector<8x32xf32>
    %15 = arith.minimumf %14, %13 : vector<8x32xf32>
    %16 = arith.truncf %15 : vector<8x32xf32> to vector<8x32xbf16>
    %c0_5 = arith.constant 0 : index
    %c0_6 = arith.constant 0 : index
    %17 = vector.load %arg2[%c0_5, %c0_6] : memref<8x32xbf16, #tpu.memory_space<vmem>>, vector<8x32xbf16>
    tpu.vector_store %arg2[%c0_5, %c0_6], %16 {strides = array<i32>} : memref<8x32xbf16, #tpu.memory_space<vmem>>, vector<8x32xbf16>,
    %c0_7 = arith.constant 0 : index
    %c0_8 = arith.constant 0 : index
    %18 = vector.load %arg3[%c0_7, %c0_8] : memref<8x1xf32, #tpu.memory_space<vmem>>, vector<8x1xf32>
    tpu.vector_store %arg3[%c0_7, %c0_8], %8 {strides = array<i32>} : memref<8x1xf32, #tpu.memory_space<vmem>>, vector<8x1xf32>,
    return
  }
  func.func @transform_0(%arg0: i32) -> (i32, i32) {
    %c0_i32 = arith.constant 0 : i32
    %c0_i32_0 = arith.constant 0 : i32
    return %arg0, %c0_i32 : i32, i32
  }
  func.func @transform_1(%arg0: i32) -> (i32, i32) {
    %c0_i32 = arith.constant 0 : i32
    %c0_i32_0 = arith.constant 0 : i32
    return %arg0, %c0_i32 : i32, i32
  }
  func.func @transform_2(%arg0: i32) -> (i32, i32) {
    %c0_i32 = arith.constant 0 : i32
    %c0_i32_0 = arith.constant 0 : i32
    return %arg0, %c0_i32 : i32, i32
  }
}

module attributes {stable_mosaic.version = 11 : i64} {
  func.func @kernel(%arg0: i32, %arg1: i32, %arg2: i32, %arg3: memref<1x8x32xbf16, #tpu.memory_space<vmem>>, %arg4: memref<1x8x16xbf16, #tpu.memory_space<vmem>>, %arg5: memref<1x8x16xbf16, #tpu.memory_space<vmem>>, %arg6: memref<8x8xf32, #tpu.memory_space<vmem>>, %arg7: memref<8x8xf32, #tpu.memory_space<vmem>>, %arg8: memref<8x8xf32, #tpu.memory_space<vmem>>, %arg9: memref<8x8xf32, #tpu.memory_space<vmem>>, %arg10: memref<1x8x32xbf16, #tpu.memory_space<vmem>>, %arg11: memref<4x8x1xf32, #tpu.memory_space<vmem>>, %arg12: memref<4x8x1xf32, #tpu.memory_space<vmem>>, %arg13: memref<4x8x8xf32, #tpu.memory_space<vmem>>) attributes {dimension_semantics = [#tpu.dimension_semantics<parallel>, #tpu.dimension_semantics<parallel>, #tpu.dimension_semantics<arbitrary>], iteration_bounds = array<i64: 2, 1, 1>, scalar_prefetch = 0 : i64, scratch_operands = 3 : i64, tpu.core_type = #tpu.core_type<tc>, window_params = [{transform_indices = @transform_0, window_bounds = array<i64: 1, 8, 32>}, {transform_indices = @transform_1, window_bounds = array<i64: 1, 8, 16>}, {transform_indices = @transform_2, window_bounds = array<i64: 1, 8, 16>}, {pipeline_mode = #tpu.pipeline_mode<synchronous>, transform_indices = @transform_3, window_bounds = array<i64: 8, 8>}, {pipeline_mode = #tpu.pipeline_mode<synchronous>, transform_indices = @transform_4, window_bounds = array<i64: 8, 8>}, {transform_indices = @transform_5, window_bounds = array<i64: 8, 8>}, {transform_indices = @transform_6, window_bounds = array<i64: 8, 8>}, {transform_indices = @transform_7, window_bounds = array<i64: 1, 8, 32>}]} {
    %c0_i32 = arith.constant 0 : i32
    %0 = arith.cmpi eq, %arg2, %c0_i32 : i32
    %1 = arith.extui %0 : i1 to i32
    %c0_i32_0 = arith.constant 0 : i32
    %2 = arith.cmpi ne, %1, %c0_i32_0 : i32
    scf.if %2 {
      %cst_133 = arith.constant 0xFF800000 : f32
      %246 = vector.broadcast %cst_133 : f32 to vector<4x8x1xf32>
      %c0_134 = arith.constant 0 : index
      %c0_135 = arith.constant 0 : index
      %c0_136 = arith.constant 0 : index
      %247 = vector.load %arg11[%c0_134, %c0_135, %c0_136] : memref<4x8x1xf32, #tpu.memory_space<vmem>>, vector<4x8x1xf32>
      tpu.vector_store %arg11[%c0_134, %c0_135, %c0_136], %246 {strides = array<i32>} : memref<4x8x1xf32, #tpu.memory_space<vmem>>, vector<4x8x1xf32>,
      %cst_137 = arith.constant 0.000000e+00 : f32
      %248 = vector.broadcast %cst_137 : f32 to vector<4x8x1xf32>
      %c0_138 = arith.constant 0 : index
      %c0_139 = arith.constant 0 : index
      %c0_140 = arith.constant 0 : index
      %249 = vector.load %arg12[%c0_138, %c0_139, %c0_140] : memref<4x8x1xf32, #tpu.memory_space<vmem>>, vector<4x8x1xf32>
      tpu.vector_store %arg12[%c0_138, %c0_139, %c0_140], %248 {strides = array<i32>} : memref<4x8x1xf32, #tpu.memory_space<vmem>>, vector<4x8x1xf32>,
      %cst_141 = arith.constant 0.000000e+00 : f32
      %250 = vector.broadcast %cst_141 : f32 to vector<4x8x8xf32>
      %c0_142 = arith.constant 0 : index
      %c0_143 = arith.constant 0 : index
      %c0_144 = arith.constant 0 : index
      %251 = vector.load %arg13[%c0_142, %c0_143, %c0_144] : memref<4x8x8xf32, #tpu.memory_space<vmem>>, vector<4x8x8xf32>
      tpu.vector_store %arg13[%c0_142, %c0_143, %c0_144], %250 {strides = array<i32>} : memref<4x8x8xf32, #tpu.memory_space<vmem>>, vector<4x8x8xf32>,
    } else {
    }
    %c0 = arith.constant 0 : index
    %c0_1 = arith.constant 0 : index
    %3 = vector.load %arg6[%c0, %c0_1] : memref<8x8xf32, #tpu.memory_space<vmem>>, vector<8x8xf32>
    %c0_2 = arith.constant 0 : index
    %c0_3 = arith.constant 0 : index
    %4 = vector.load %arg7[%c0_2, %c0_3] : memref<8x8xf32, #tpu.memory_space<vmem>>, vector<8x8xf32>
    %c0_4 = arith.constant 0 : index
    %c0_5 = arith.constant 0 : index
    %5 = vector.load %arg8[%c0_4, %c0_5] : memref<8x8xf32, #tpu.memory_space<vmem>>, vector<8x8xf32>
    %c0_6 = arith.constant 0 : index
    %c0_7 = arith.constant 0 : index
    %6 = vector.load %arg9[%c0_6, %c0_7] : memref<8x8xf32, #tpu.memory_space<vmem>>, vector<8x8xf32>
    %c0_8 = arith.constant 0 : index
    %c0_9 = arith.constant 0 : index
    %c0_10 = arith.constant 0 : index
    %7 = vector.load %arg4[%c0_8, %c0_9, %c0_10] : memref<1x8x16xbf16, #tpu.memory_space<vmem>>, vector<1x8x8xbf16>
    %8 = vector.shape_cast %7 : vector<1x8x8xbf16> to vector<8x8xbf16>
    %9 = arith.extf %8 : vector<8x8xbf16> to vector<8x8xf32>
    %10 = vector.extract_strided_slice %9 {offsets = [0, 0], sizes = [8, 4], strides = [1, 1]} : vector<8x8xf32> to vector<8x4xf32>
    %11 = vector.extract_strided_slice %9 {offsets = [0, 4], sizes = [8, 4], strides = [1, 1]} : vector<8x8xf32> to vector<8x4xf32>
    %cst = arith.constant 0.000000e+00 : f32
    %12 = vector.broadcast %cst : f32 to vector<8x4xf32>
    %13 = arith.subf %12, %11 : vector<8x4xf32>
    %14 = tpu.concatenate %13, %10 in 1 : vector<8x4xf32>, vector<8x4xf32> -> vector<8x8xf32>
    %15 = arith.mulf %9, %5 : vector<8x8xf32>
    %16 = arith.mulf %14, %6 : vector<8x8xf32>
    %17 = arith.addf %15, %16 : vector<8x8xf32>
    %18 = arith.truncf %17 : vector<8x8xf32> to vector<8x8xbf16>
    %c0_11 = arith.constant 0 : index
    %c0_12 = arith.constant 0 : index
    %c0_13 = arith.constant 0 : index
    %19 = vector.load %arg5[%c0_11, %c0_12, %c0_13] : memref<1x8x16xbf16, #tpu.memory_space<vmem>>, vector<1x8x8xbf16>
    %20 = vector.shape_cast %19 : vector<1x8x8xbf16> to vector<8x8xbf16>
    %c0_14 = arith.constant 0 : index
    %c0_15 = arith.constant 0 : index
    %c0_16 = arith.constant 0 : index
    %21 = vector.load %arg3[%c0_14, %c0_15, %c0_16] : memref<1x8x32xbf16, #tpu.memory_space<vmem>>, vector<1x8x8xbf16>
    %22 = vector.shape_cast %21 : vector<1x8x8xbf16> to vector<8x8xbf16>
    %23 = arith.extf %22 : vector<8x8xbf16> to vector<8x8xf32>
    %24 = vector.extract_strided_slice %23 {offsets = [0, 0], sizes = [8, 4], strides = [1, 1]} : vector<8x8xf32> to vector<8x4xf32>
    %25 = vector.extract_strided_slice %23 {offsets = [0, 4], sizes = [8, 4], strides = [1, 1]} : vector<8x8xf32> to vector<8x4xf32>
    %cst_17 = arith.constant 0.000000e+00 : f32
    %26 = vector.broadcast %cst_17 : f32 to vector<8x4xf32>
    %27 = arith.subf %26, %25 : vector<8x4xf32>
    %28 = tpu.concatenate %27, %24 in 1 : vector<8x4xf32>, vector<8x4xf32> -> vector<8x8xf32>
    %29 = arith.mulf %23, %3 : vector<8x8xf32>
    %30 = arith.mulf %28, %4 : vector<8x8xf32>
    %31 = arith.addf %29, %30 : vector<8x8xf32>
    %32 = arith.truncf %31 : vector<8x8xf32> to vector<8x8xbf16>
    %cst_18 = arith.constant dense<0.000000e+00> : vector<8x8xf32>
    %33 = tpu.matmul %32, %18, %cst_18 {dimension_numbers = #tpu.dot_dimension_numbers<[1], [1], [0], [0], [0, 0, 1, 0], [], []>} : vector<8x8xbf16>, vector<8x8xbf16>, vector<8x8xf32> -> vector<8x8xf32>
    %cst_19 = arith.constant 0.353553385 : f32
    %34 = vector.broadcast %cst_19 : f32 to vector<8x8xf32>
    %35 = arith.mulf %33, %34 : vector<8x8xf32>
    %cst_20 = arith.constant 2.000000e-02 : f32
    %36 = vector.broadcast %cst_20 : f32 to vector<8x8xf32>
    %37 = arith.mulf %35, %36 : vector<8x8xf32>
    %38 = math.tanh %37 : vector<8x8xf32>
    %cst_21 = arith.constant 5.000000e+01 : f32
    %39 = vector.broadcast %cst_21 : f32 to vector<8x8xf32>
    %40 = arith.mulf %38, %39 : vector<8x8xf32>
    %c0_22 = arith.constant 0 : index
    %c0_23 = arith.constant 0 : index
    %c0_24 = arith.constant 0 : index
    %41 = vector.load %arg11[%c0_22, %c0_23, %c0_24] : memref<4x8x1xf32, #tpu.memory_space<vmem>>, vector<1x8x1xf32>
    %42 = vector.shape_cast %41 : vector<1x8x1xf32> to vector<8x1xf32>
    %cst_25 = arith.constant dense<0xFF800000> : vector<8xf32>
    %43 = vector.multi_reduction <maximumf>, %40, %cst_25 [1] : vector<8x8xf32> to vector<8xf32>
    %44 = vector.shape_cast %43 : vector<8xf32> to vector<8x1xf32>
    %45 = arith.maximumf %42, %44 : vector<8x1xf32>
    %46 = arith.subf %42, %45 : vector<8x1xf32>
    %47 = math.exp %46 : vector<8x1xf32>
    %48 = vector.broadcast %45 : vector<8x1xf32> to vector<8x8xf32>
    %49 = arith.subf %40, %48 : vector<8x8xf32>
    %50 = math.exp %49 : vector<8x8xf32>
    %c0_26 = arith.constant 0 : index
    %c0_27 = arith.constant 0 : index
    %c0_28 = arith.constant 0 : index
    %51 = vector.load %arg12[%c0_26, %c0_27, %c0_28] : memref<4x8x1xf32, #tpu.memory_space<vmem>>, vector<1x8x1xf32>
    %52 = vector.shape_cast %51 : vector<1x8x1xf32> to vector<8x1xf32>
    %53 = arith.mulf %47, %52 : vector<8x1xf32>
    %cst_29 = arith.constant dense<0.000000e+00> : vector<8xf32>
    %54 = vector.multi_reduction <add>, %50, %cst_29 [1] : vector<8x8xf32> to vector<8xf32>
    %55 = vector.shape_cast %54 : vector<8xf32> to vector<8x1xf32>
    %56 = arith.addf %53, %55 : vector<8x1xf32>
    %c0_30 = arith.constant 0 : index
    %c0_31 = arith.constant 0 : index
    %c0_32 = arith.constant 0 : index
    %57 = vector.load %arg12[%c0_30, %c0_31, %c0_32] : memref<4x8x1xf32, #tpu.memory_space<vmem>>, vector<1x8x1xf32>
    %58 = vector.shape_cast %57 : vector<1x8x1xf32> to vector<8x1xf32>
    %59 = vector.shape_cast %56 : vector<8x1xf32> to vector<1x8x1xf32>
    tpu.vector_store %arg12[%c0_30, %c0_31, %c0_32], %59 {strides = array<i32>} : memref<4x8x1xf32, #tpu.memory_space<vmem>>, vector<1x8x1xf32>,
    %c0_33 = arith.constant 0 : index
    %c0_34 = arith.constant 0 : index
    %c0_35 = arith.constant 0 : index
    %60 = vector.load %arg13[%c0_33, %c0_34, %c0_35] : memref<4x8x8xf32, #tpu.memory_space<vmem>>, vector<1x8x8xf32>
    %61 = vector.shape_cast %60 : vector<1x8x8xf32> to vector<8x8xf32>
    %62 = vector.broadcast %47 : vector<8x1xf32> to vector<8x8xf32>
    %63 = arith.mulf %62, %61 : vector<8x8xf32>
    %64 = arith.truncf %50 : vector<8x8xf32> to vector<8x8xbf16>
    %cst_36 = arith.constant dense<0.000000e+00> : vector<8x8xf32>
    %65 = tpu.matmul %64, %20, %cst_36 {dimension_numbers = #tpu.dot_dimension_numbers<[1], [0], [0], [1], [0, 0, 1, 1], [], []>} : vector<8x8xbf16>, vector<8x8xbf16>, vector<8x8xf32> -> vector<8x8xf32>
    %66 = arith.addf %63, %65 : vector<8x8xf32>
    %c0_37 = arith.constant 0 : index
    %c0_38 = arith.constant 0 : index
    %c0_39 = arith.constant 0 : index
    %67 = vector.load %arg13[%c0_37, %c0_38, %c0_39] : memref<4x8x8xf32, #tpu.memory_space<vmem>>, vector<1x8x8xf32>
    %68 = vector.shape_cast %67 : vector<1x8x8xf32> to vector<8x8xf32>
    %69 = vector.shape_cast %66 : vector<8x8xf32> to vector<1x8x8xf32>
    tpu.vector_store %arg13[%c0_37, %c0_38, %c0_39], %69 {strides = array<i32>} : memref<4x8x8xf32, #tpu.memory_space<vmem>>, vector<1x8x8xf32>,
    %c0_40 = arith.constant 0 : index
    %c0_41 = arith.constant 0 : index
    %c0_42 = arith.constant 0 : index
    %70 = vector.load %arg11[%c0_40, %c0_41, %c0_42] : memref<4x8x1xf32, #tpu.memory_space<vmem>>, vector<1x8x1xf32>
    %71 = vector.shape_cast %70 : vector<1x8x1xf32> to vector<8x1xf32>
    %72 = vector.shape_cast %45 : vector<8x1xf32> to vector<1x8x1xf32>
    tpu.vector_store %arg11[%c0_40, %c0_41, %c0_42], %72 {strides = array<i32>} : memref<4x8x1xf32, #tpu.memory_space<vmem>>, vector<1x8x1xf32>,
    %c0_43 = arith.constant 0 : index
    %c0_44 = arith.constant 0 : index
    %c8 = arith.constant 8 : index
    %73 = vector.load %arg3[%c0_43, %c0_44, %c8] : memref<1x8x32xbf16, #tpu.memory_space<vmem>>, vector<1x8x8xbf16>
    %74 = vector.shape_cast %73 : vector<1x8x8xbf16> to vector<8x8xbf16>
    %75 = arith.extf %74 : vector<8x8xbf16> to vector<8x8xf32>
    %76 = vector.extract_strided_slice %75 {offsets = [0, 0], sizes = [8, 4], strides = [1, 1]} : vector<8x8xf32> to vector<8x4xf32>
    %77 = vector.extract_strided_slice %75 {offsets = [0, 4], sizes = [8, 4], strides = [1, 1]} : vector<8x8xf32> to vector<8x4xf32>
    %cst_45 = arith.constant 0.000000e+00 : f32
    %78 = vector.broadcast %cst_45 : f32 to vector<8x4xf32>
    %79 = arith.subf %78, %77 : vector<8x4xf32>
    %80 = tpu.concatenate %79, %76 in 1 : vector<8x4xf32>, vector<8x4xf32> -> vector<8x8xf32>
    %81 = arith.mulf %75, %3 : vector<8x8xf32>
    %82 = arith.mulf %80, %4 : vector<8x8xf32>
    %83 = arith.addf %81, %82 : vector<8x8xf32>
    %84 = arith.truncf %83 : vector<8x8xf32> to vector<8x8xbf16>
    %cst_46 = arith.constant dense<0.000000e+00> : vector<8x8xf32>
    %85 = tpu.matmul %84, %18, %cst_46 {dimension_numbers = #tpu.dot_dimension_numbers<[1], [1], [0], [0], [0, 0, 1, 0], [], []>} : vector<8x8xbf16>, vector<8x8xbf16>, vector<8x8xf32> -> vector<8x8xf32>
    %cst_47 = arith.constant 0.353553385 : f32
    %86 = vector.broadcast %cst_47 : f32 to vector<8x8xf32>
    %87 = arith.mulf %85, %86 : vector<8x8xf32>
    %cst_48 = arith.constant 2.000000e-02 : f32
    %88 = vector.broadcast %cst_48 : f32 to vector<8x8xf32>
    %89 = arith.mulf %87, %88 : vector<8x8xf32>
    %90 = math.tanh %89 : vector<8x8xf32>
    %cst_49 = arith.constant 5.000000e+01 : f32
    %91 = vector.broadcast %cst_49 : f32 to vector<8x8xf32>
    %92 = arith.mulf %90, %91 : vector<8x8xf32>
    %c1 = arith.constant 1 : index
    %c0_50 = arith.constant 0 : index
    %c0_51 = arith.constant 0 : index
    %93 = vector.load %arg11[%c1, %c0_50, %c0_51] : memref<4x8x1xf32, #tpu.memory_space<vmem>>, vector<1x8x1xf32>
    %94 = vector.shape_cast %93 : vector<1x8x1xf32> to vector<8x1xf32>
    %cst_52 = arith.constant dense<0xFF800000> : vector<8xf32>
    %95 = vector.multi_reduction <maximumf>, %92, %cst_52 [1] : vector<8x8xf32> to vector<8xf32>
    %96 = vector.shape_cast %95 : vector<8xf32> to vector<8x1xf32>
    %97 = arith.maximumf %94, %96 : vector<8x1xf32>
    %98 = arith.subf %94, %97 : vector<8x1xf32>
    %99 = math.exp %98 : vector<8x1xf32>
    %100 = vector.broadcast %97 : vector<8x1xf32> to vector<8x8xf32>
    %101 = arith.subf %92, %100 : vector<8x8xf32>
    %102 = math.exp %101 : vector<8x8xf32>
    %c1_53 = arith.constant 1 : index
    %c0_54 = arith.constant 0 : index
    %c0_55 = arith.constant 0 : index
    %103 = vector.load %arg12[%c1_53, %c0_54, %c0_55] : memref<4x8x1xf32, #tpu.memory_space<vmem>>, vector<1x8x1xf32>
    %104 = vector.shape_cast %103 : vector<1x8x1xf32> to vector<8x1xf32>
    %105 = arith.mulf %99, %104 : vector<8x1xf32>
    %cst_56 = arith.constant dense<0.000000e+00> : vector<8xf32>
    %106 = vector.multi_reduction <add>, %102, %cst_56 [1] : vector<8x8xf32> to vector<8xf32>
    %107 = vector.shape_cast %106 : vector<8xf32> to vector<8x1xf32>
    %108 = arith.addf %105, %107 : vector<8x1xf32>
    %c1_57 = arith.constant 1 : index
    %c0_58 = arith.constant 0 : index
    %c0_59 = arith.constant 0 : index
    %109 = vector.load %arg12[%c1_57, %c0_58, %c0_59] : memref<4x8x1xf32, #tpu.memory_space<vmem>>, vector<1x8x1xf32>
    %110 = vector.shape_cast %109 : vector<1x8x1xf32> to vector<8x1xf32>
    %111 = vector.shape_cast %108 : vector<8x1xf32> to vector<1x8x1xf32>
    tpu.vector_store %arg12[%c1_57, %c0_58, %c0_59], %111 {strides = array<i32>} : memref<4x8x1xf32, #tpu.memory_space<vmem>>, vector<1x8x1xf32>,
    %c1_60 = arith.constant 1 : index
    %c0_61 = arith.constant 0 : index
    %c0_62 = arith.constant 0 : index
    %112 = vector.load %arg13[%c1_60, %c0_61, %c0_62] : memref<4x8x8xf32, #tpu.memory_space<vmem>>, vector<1x8x8xf32>
    %113 = vector.shape_cast %112 : vector<1x8x8xf32> to vector<8x8xf32>
    %114 = vector.broadcast %99 : vector<8x1xf32> to vector<8x8xf32>
    %115 = arith.mulf %114, %113 : vector<8x8xf32>
    %116 = arith.truncf %102 : vector<8x8xf32> to vector<8x8xbf16>
    %cst_63 = arith.constant dense<0.000000e+00> : vector<8x8xf32>
    %117 = tpu.matmul %116, %20, %cst_63 {dimension_numbers = #tpu.dot_dimension_numbers<[1], [0], [0], [1], [0, 0, 1, 1], [], []>} : vector<8x8xbf16>, vector<8x8xbf16>, vector<8x8xf32> -> vector<8x8xf32>
    %118 = arith.addf %115, %117 : vector<8x8xf32>
    %c1_64 = arith.constant 1 : index
    %c0_65 = arith.constant 0 : index
    %c0_66 = arith.constant 0 : index
    %119 = vector.load %arg13[%c1_64, %c0_65, %c0_66] : memref<4x8x8xf32, #tpu.memory_space<vmem>>, vector<1x8x8xf32>
    %120 = vector.shape_cast %119 : vector<1x8x8xf32> to vector<8x8xf32>
    %121 = vector.shape_cast %118 : vector<8x8xf32> to vector<1x8x8xf32>
    tpu.vector_store %arg13[%c1_64, %c0_65, %c0_66], %121 {strides = array<i32>} : memref<4x8x8xf32, #tpu.memory_space<vmem>>, vector<1x8x8xf32>,
    %c1_67 = arith.constant 1 : index
    %c0_68 = arith.constant 0 : index
    %c0_69 = arith.constant 0 : index
    %122 = vector.load %arg11[%c1_67, %c0_68, %c0_69] : memref<4x8x1xf32, #tpu.memory_space<vmem>>, vector<1x8x1xf32>
    %123 = vector.shape_cast %122 : vector<1x8x1xf32> to vector<8x1xf32>
    %124 = vector.shape_cast %97 : vector<8x1xf32> to vector<1x8x1xf32>
    tpu.vector_store %arg11[%c1_67, %c0_68, %c0_69], %124 {strides = array<i32>} : memref<4x8x1xf32, #tpu.memory_space<vmem>>, vector<1x8x1xf32>,
    %c0_70 = arith.constant 0 : index
    %c0_71 = arith.constant 0 : index
    %c8_72 = arith.constant 8 : index
    %125 = vector.load %arg4[%c0_70, %c0_71, %c8_72] : memref<1x8x16xbf16, #tpu.memory_space<vmem>>, vector<1x8x8xbf16>
    %126 = vector.shape_cast %125 : vector<1x8x8xbf16> to vector<8x8xbf16>
    %127 = arith.extf %126 : vector<8x8xbf16> to vector<8x8xf32>
    %128 = vector.extract_strided_slice %127 {offsets = [0, 0], sizes = [8, 4], strides = [1, 1]} : vector<8x8xf32> to vector<8x4xf32>
    %129 = vector.extract_strided_slice %127 {offsets = [0, 4], sizes = [8, 4], strides = [1, 1]} : vector<8x8xf32> to vector<8x4xf32>
    %cst_73 = arith.constant 0.000000e+00 : f32
    %130 = vector.broadcast %cst_73 : f32 to vector<8x4xf32>
    %131 = arith.subf %130, %129 : vector<8x4xf32>
    %132 = tpu.concatenate %131, %128 in 1 : vector<8x4xf32>, vector<8x4xf32> -> vector<8x8xf32>
    %133 = arith.mulf %127, %5 : vector<8x8xf32>
    %134 = arith.mulf %132, %6 : vector<8x8xf32>
    %135 = arith.addf %133, %134 : vector<8x8xf32>
    %136 = arith.truncf %135 : vector<8x8xf32> to vector<8x8xbf16>
    %c0_74 = arith.constant 0 : index
    %c0_75 = arith.constant 0 : index
    %c8_76 = arith.constant 8 : index
    %137 = vector.load %arg5[%c0_74, %c0_75, %c8_76] : memref<1x8x16xbf16, #tpu.memory_space<vmem>>, vector<1x8x8xbf16>
    %138 = vector.shape_cast %137 : vector<1x8x8xbf16> to vector<8x8xbf16>
    %c0_77 = arith.constant 0 : index
    %c0_78 = arith.constant 0 : index
    %c16 = arith.constant 16 : index
    %139 = vector.load %arg3[%c0_77, %c0_78, %c16] : memref<1x8x32xbf16, #tpu.memory_space<vmem>>, vector<1x8x8xbf16>
    %140 = vector.shape_cast %139 : vector<1x8x8xbf16> to vector<8x8xbf16>
    %141 = arith.extf %140 : vector<8x8xbf16> to vector<8x8xf32>
    %142 = vector.extract_strided_slice %141 {offsets = [0, 0], sizes = [8, 4], strides = [1, 1]} : vector<8x8xf32> to vector<8x4xf32>
    %143 = vector.extract_strided_slice %141 {offsets = [0, 4], sizes = [8, 4], strides = [1, 1]} : vector<8x8xf32> to vector<8x4xf32>
    %cst_79 = arith.constant 0.000000e+00 : f32
    %144 = vector.broadcast %cst_79 : f32 to vector<8x4xf32>
    %145 = arith.subf %144, %143 : vector<8x4xf32>
    %146 = tpu.concatenate %145, %142 in 1 : vector<8x4xf32>, vector<8x4xf32> -> vector<8x8xf32>
    %147 = arith.mulf %141, %3 : vector<8x8xf32>
    %148 = arith.mulf %146, %4 : vector<8x8xf32>
    %149 = arith.addf %147, %148 : vector<8x8xf32>
    %150 = arith.truncf %149 : vector<8x8xf32> to vector<8x8xbf16>
    %cst_80 = arith.constant dense<0.000000e+00> : vector<8x8xf32>
    %151 = tpu.matmul %150, %136, %cst_80 {dimension_numbers = #tpu.dot_dimension_numbers<[1], [1], [0], [0], [0, 0, 1, 0], [], []>} : vector<8x8xbf16>, vector<8x8xbf16>, vector<8x8xf32> -> vector<8x8xf32>
    %cst_81 = arith.constant 0.353553385 : f32
    %152 = vector.broadcast %cst_81 : f32 to vector<8x8xf32>
    %153 = arith.mulf %151, %152 : vector<8x8xf32>
    %cst_82 = arith.constant 2.000000e-02 : f32
    %154 = vector.broadcast %cst_82 : f32 to vector<8x8xf32>
    %155 = arith.mulf %153, %154 : vector<8x8xf32>
    %156 = math.tanh %155 : vector<8x8xf32>
    %cst_83 = arith.constant 5.000000e+01 : f32
    %157 = vector.broadcast %cst_83 : f32 to vector<8x8xf32>
    %158 = arith.mulf %156, %157 : vector<8x8xf32>
    %c2 = arith.constant 2 : index
    %c0_84 = arith.constant 0 : index
    %c0_85 = arith.constant 0 : index
    %159 = vector.load %arg11[%c2, %c0_84, %c0_85] : memref<4x8x1xf32, #tpu.memory_space<vmem>>, vector<1x8x1xf32>
    %160 = vector.shape_cast %159 : vector<1x8x1xf32> to vector<8x1xf32>
    %cst_86 = arith.constant dense<0xFF800000> : vector<8xf32>
    %161 = vector.multi_reduction <maximumf>, %158, %cst_86 [1] : vector<8x8xf32> to vector<8xf32>
    %162 = vector.shape_cast %161 : vector<8xf32> to vector<8x1xf32>
    %163 = arith.maximumf %160, %162 : vector<8x1xf32>
    %164 = arith.subf %160, %163 : vector<8x1xf32>
    %165 = math.exp %164 : vector<8x1xf32>
    %166 = vector.broadcast %163 : vector<8x1xf32> to vector<8x8xf32>
    %167 = arith.subf %158, %166 : vector<8x8xf32>
    %168 = math.exp %167 : vector<8x8xf32>
    %c2_87 = arith.constant 2 : index
    %c0_88 = arith.constant 0 : index
    %c0_89 = arith.constant 0 : index
    %169 = vector.load %arg12[%c2_87, %c0_88, %c0_89] : memref<4x8x1xf32, #tpu.memory_space<vmem>>, vector<1x8x1xf32>
    %170 = vector.shape_cast %169 : vector<1x8x1xf32> to vector<8x1xf32>
    %171 = arith.mulf %165, %170 : vector<8x1xf32>
    %cst_90 = arith.constant dense<0.000000e+00> : vector<8xf32>
    %172 = vector.multi_reduction <add>, %168, %cst_90 [1] : vector<8x8xf32> to vector<8xf32>
    %173 = vector.shape_cast %172 : vector<8xf32> to vector<8x1xf32>
    %174 = arith.addf %171, %173 : vector<8x1xf32>
    %c2_91 = arith.constant 2 : index
    %c0_92 = arith.constant 0 : index
    %c0_93 = arith.constant 0 : index
    %175 = vector.load %arg12[%c2_91, %c0_92, %c0_93] : memref<4x8x1xf32, #tpu.memory_space<vmem>>, vector<1x8x1xf32>
    %176 = vector.shape_cast %175 : vector<1x8x1xf32> to vector<8x1xf32>
    %177 = vector.shape_cast %174 : vector<8x1xf32> to vector<1x8x1xf32>
    tpu.vector_store %arg12[%c2_91, %c0_92, %c0_93], %177 {strides = array<i32>} : memref<4x8x1xf32, #tpu.memory_space<vmem>>, vector<1x8x1xf32>,
    %c2_94 = arith.constant 2 : index
    %c0_95 = arith.constant 0 : index
    %c0_96 = arith.constant 0 : index
    %178 = vector.load %arg13[%c2_94, %c0_95, %c0_96] : memref<4x8x8xf32, #tpu.memory_space<vmem>>, vector<1x8x8xf32>
    %179 = vector.shape_cast %178 : vector<1x8x8xf32> to vector<8x8xf32>
    %180 = vector.broadcast %165 : vector<8x1xf32> to vector<8x8xf32>
    %181 = arith.mulf %180, %179 : vector<8x8xf32>
    %182 = arith.truncf %168 : vector<8x8xf32> to vector<8x8xbf16>
    %cst_97 = arith.constant dense<0.000000e+00> : vector<8x8xf32>
    %183 = tpu.matmul %182, %138, %cst_97 {dimension_numbers = #tpu.dot_dimension_numbers<[1], [0], [0], [1], [0, 0, 1, 1], [], []>} : vector<8x8xbf16>, vector<8x8xbf16>, vector<8x8xf32> -> vector<8x8xf32>
    %184 = arith.addf %181, %183 : vector<8x8xf32>
    %c2_98 = arith.constant 2 : index
    %c0_99 = arith.constant 0 : index
    %c0_100 = arith.constant 0 : index
    %185 = vector.load %arg13[%c2_98, %c0_99, %c0_100] : memref<4x8x8xf32, #tpu.memory_space<vmem>>, vector<1x8x8xf32>
    %186 = vector.shape_cast %185 : vector<1x8x8xf32> to vector<8x8xf32>
    %187 = vector.shape_cast %184 : vector<8x8xf32> to vector<1x8x8xf32>
    tpu.vector_store %arg13[%c2_98, %c0_99, %c0_100], %187 {strides = array<i32>} : memref<4x8x8xf32, #tpu.memory_space<vmem>>, vector<1x8x8xf32>,
    %c2_101 = arith.constant 2 : index
    %c0_102 = arith.constant 0 : index
    %c0_103 = arith.constant 0 : index
    %188 = vector.load %arg11[%c2_101, %c0_102, %c0_103] : memref<4x8x1xf32, #tpu.memory_space<vmem>>, vector<1x8x1xf32>
    %189 = vector.shape_cast %188 : vector<1x8x1xf32> to vector<8x1xf32>
    %190 = vector.shape_cast %163 : vector<8x1xf32> to vector<1x8x1xf32>
    tpu.vector_store %arg11[%c2_101, %c0_102, %c0_103], %190 {strides = array<i32>} : memref<4x8x1xf32, #tpu.memory_space<vmem>>, vector<1x8x1xf32>,
    %c0_104 = arith.constant 0 : index
    %c0_105 = arith.constant 0 : index
    %c24 = arith.constant 24 : index
    %191 = vector.load %arg3[%c0_104, %c0_105, %c24] : memref<1x8x32xbf16, #tpu.memory_space<vmem>>, vector<1x8x8xbf16>
    %192 = vector.shape_cast %191 : vector<1x8x8xbf16> to vector<8x8xbf16>
    %193 = arith.extf %192 : vector<8x8xbf16> to vector<8x8xf32>
    %194 = vector.extract_strided_slice %193 {offsets = [0, 0], sizes = [8, 4], strides = [1, 1]} : vector<8x8xf32> to vector<8x4xf32>
    %195 = vector.extract_strided_slice %193 {offsets = [0, 4], sizes = [8, 4], strides = [1, 1]} : vector<8x8xf32> to vector<8x4xf32>
    %cst_106 = arith.constant 0.000000e+00 : f32
    %196 = vector.broadcast %cst_106 : f32 to vector<8x4xf32>
    %197 = arith.subf %196, %195 : vector<8x4xf32>
    %198 = tpu.concatenate %197, %194 in 1 : vector<8x4xf32>, vector<8x4xf32> -> vector<8x8xf32>
    %199 = arith.mulf %193, %3 : vector<8x8xf32>
    %200 = arith.mulf %198, %4 : vector<8x8xf32>
    %201 = arith.addf %199, %200 : vector<8x8xf32>
    %202 = arith.truncf %201 : vector<8x8xf32> to vector<8x8xbf16>
    %cst_107 = arith.constant dense<0.000000e+00> : vector<8x8xf32>
    %203 = tpu.matmul %202, %136, %cst_107 {dimension_numbers = #tpu.dot_dimension_numbers<[1], [1], [0], [0], [0, 0, 1, 0], [], []>} : vector<8x8xbf16>, vector<8x8xbf16>, vector<8x8xf32> -> vector<8x8xf32>
    %cst_108 = arith.constant 0.353553385 : f32
    %204 = vector.broadcast %cst_108 : f32 to vector<8x8xf32>
    %205 = arith.mulf %203, %204 : vector<8x8xf32>
    %cst_109 = arith.constant 2.000000e-02 : f32
    %206 = vector.broadcast %cst_109 : f32 to vector<8x8xf32>
    %207 = arith.mulf %205, %206 : vector<8x8xf32>
    %208 = math.tanh %207 : vector<8x8xf32>
    %cst_110 = arith.constant 5.000000e+01 : f32
    %209 = vector.broadcast %cst_110 : f32 to vector<8x8xf32>
    %210 = arith.mulf %208, %209 : vector<8x8xf32>
    %c3 = arith.constant 3 : index
    %c0_111 = arith.constant 0 : index
    %c0_112 = arith.constant 0 : index
    %211 = vector.load %arg11[%c3, %c0_111, %c0_112] : memref<4x8x1xf32, #tpu.memory_space<vmem>>, vector<1x8x1xf32>
    %212 = vector.shape_cast %211 : vector<1x8x1xf32> to vector<8x1xf32>
    %cst_113 = arith.constant dense<0xFF800000> : vector<8xf32>
    %213 = vector.multi_reduction <maximumf>, %210, %cst_113 [1] : vector<8x8xf32> to vector<8xf32>
    %214 = vector.shape_cast %213 : vector<8xf32> to vector<8x1xf32>
    %215 = arith.maximumf %212, %214 : vector<8x1xf32>
    %216 = arith.subf %212, %215 : vector<8x1xf32>
    %217 = math.exp %216 : vector<8x1xf32>
    %218 = vector.broadcast %215 : vector<8x1xf32> to vector<8x8xf32>
    %219 = arith.subf %210, %218 : vector<8x8xf32>
    %220 = math.exp %219 : vector<8x8xf32>
    %c3_114 = arith.constant 3 : index
    %c0_115 = arith.constant 0 : index
    %c0_116 = arith.constant 0 : index
    %221 = vector.load %arg12[%c3_114, %c0_115, %c0_116] : memref<4x8x1xf32, #tpu.memory_space<vmem>>, vector<1x8x1xf32>
    %222 = vector.shape_cast %221 : vector<1x8x1xf32> to vector<8x1xf32>
    %223 = arith.mulf %217, %222 : vector<8x1xf32>
    %cst_117 = arith.constant dense<0.000000e+00> : vector<8xf32>
    %224 = vector.multi_reduction <add>, %220, %cst_117 [1] : vector<8x8xf32> to vector<8xf32>
    %225 = vector.shape_cast %224 : vector<8xf32> to vector<8x1xf32>
    %226 = arith.addf %223, %225 : vector<8x1xf32>
    %c3_118 = arith.constant 3 : index
    %c0_119 = arith.constant 0 : index
    %c0_120 = arith.constant 0 : index
    %227 = vector.load %arg12[%c3_118, %c0_119, %c0_120] : memref<4x8x1xf32, #tpu.memory_space<vmem>>, vector<1x8x1xf32>
    %228 = vector.shape_cast %227 : vector<1x8x1xf32> to vector<8x1xf32>
    %229 = vector.shape_cast %226 : vector<8x1xf32> to vector<1x8x1xf32>
    tpu.vector_store %arg12[%c3_118, %c0_119, %c0_120], %229 {strides = array<i32>} : memref<4x8x1xf32, #tpu.memory_space<vmem>>, vector<1x8x1xf32>,
    %c3_121 = arith.constant 3 : index
    %c0_122 = arith.constant 0 : index
    %c0_123 = arith.constant 0 : index
    %230 = vector.load %arg13[%c3_121, %c0_122, %c0_123] : memref<4x8x8xf32, #tpu.memory_space<vmem>>, vector<1x8x8xf32>
    %231 = vector.shape_cast %230 : vector<1x8x8xf32> to vector<8x8xf32>
    %232 = vector.broadcast %217 : vector<8x1xf32> to vector<8x8xf32>
    %233 = arith.mulf %232, %231 : vector<8x8xf32>
    %234 = arith.truncf %220 : vector<8x8xf32> to vector<8x8xbf16>
    %cst_124 = arith.constant dense<0.000000e+00> : vector<8x8xf32>
    %235 = tpu.matmul %234, %138, %cst_124 {dimension_numbers = #tpu.dot_dimension_numbers<[1], [0], [0], [1], [0, 0, 1, 1], [], []>} : vector<8x8xbf16>, vector<8x8xbf16>, vector<8x8xf32> -> vector<8x8xf32>
    %236 = arith.addf %233, %235 : vector<8x8xf32>
    %c3_125 = arith.constant 3 : index
    %c0_126 = arith.constant 0 : index
    %c0_127 = arith.constant 0 : index
    %237 = vector.load %arg13[%c3_125, %c0_126, %c0_127] : memref<4x8x8xf32, #tpu.memory_space<vmem>>, vector<1x8x8xf32>
    %238 = vector.shape_cast %237 : vector<1x8x8xf32> to vector<8x8xf32>
    %239 = vector.shape_cast %236 : vector<8x8xf32> to vector<1x8x8xf32>
    tpu.vector_store %arg13[%c3_125, %c0_126, %c0_127], %239 {strides = array<i32>} : memref<4x8x8xf32, #tpu.memory_space<vmem>>, vector<1x8x8xf32>,
    %c3_128 = arith.constant 3 : index
    %c0_129 = arith.constant 0 : index
    %c0_130 = arith.constant 0 : index
    %240 = vector.load %arg11[%c3_128, %c0_129, %c0_130] : memref<4x8x1xf32, #tpu.memory_space<vmem>>, vector<1x8x1xf32>
    %241 = vector.shape_cast %240 : vector<1x8x1xf32> to vector<8x1xf32>
    %242 = vector.shape_cast %215 : vector<8x1xf32> to vector<1x8x1xf32>
    tpu.vector_store %arg11[%c3_128, %c0_129, %c0_130], %242 {strides = array<i32>} : memref<4x8x1xf32, #tpu.memory_space<vmem>>, vector<1x8x1xf32>,
    %c0_i32_131 = arith.constant 0 : i32
    %243 = arith.cmpi eq, %arg2, %c0_i32_131 : i32
    %244 = arith.extui %243 : i1 to i32
    %c0_i32_132 = arith.constant 0 : i32
    %245 = arith.cmpi ne, %244, %c0_i32_132 : i32
    scf.if %245 {
      %c0_133 = arith.constant 0 : index
      %c0_134 = arith.constant 0 : index
      %c0_135 = arith.constant 0 : index
      %246 = vector.load %arg13[%c0_133, %c0_134, %c0_135] : memref<4x8x8xf32, #tpu.memory_space<vmem>>, vector<1x8x8xf32>
      %247 = vector.shape_cast %246 : vector<1x8x8xf32> to vector<8x8xf32>
      %c0_136 = arith.constant 0 : index
      %c0_137 = arith.constant 0 : index
      %c0_138 = arith.constant 0 : index
      %248 = vector.load %arg12[%c0_136, %c0_137, %c0_138] : memref<4x8x1xf32, #tpu.memory_space<vmem>>, vector<1x8x1xf32>
      %249 = vector.shape_cast %248 : vector<1x8x1xf32> to vector<8x1xf32>
      %250 = vector.broadcast %249 : vector<8x1xf32> to vector<8x8xf32>
      %251 = arith.divf %247, %250 : vector<8x8xf32>
      %252 = arith.truncf %251 : vector<8x8xf32> to vector<8x8xbf16>
      %c0_139 = arith.constant 0 : index
      %c0_140 = arith.constant 0 : index
      %c0_141 = arith.constant 0 : index
      %253 = vector.load %arg10[%c0_139, %c0_140, %c0_141] : memref<1x8x32xbf16, #tpu.memory_space<vmem>>, vector<1x8x8xbf16>
      %254 = vector.shape_cast %253 : vector<1x8x8xbf16> to vector<8x8xbf16>
      %255 = vector.shape_cast %252 : vector<8x8xbf16> to vector<1x8x8xbf16>
      tpu.vector_store %arg10[%c0_139, %c0_140, %c0_141], %255 {strides = array<i32>} : memref<1x8x32xbf16, #tpu.memory_space<vmem>>, vector<1x8x8xbf16>,
      %c1_142 = arith.constant 1 : index
      %c0_143 = arith.constant 0 : index
      %c0_144 = arith.constant 0 : index
      %256 = vector.load %arg13[%c1_142, %c0_143, %c0_144] : memref<4x8x8xf32, #tpu.memory_space<vmem>>, vector<1x8x8xf32>
      %257 = vector.shape_cast %256 : vector<1x8x8xf32> to vector<8x8xf32>
      %c1_145 = arith.constant 1 : index
      %c0_146 = arith.constant 0 : index
      %c0_147 = arith.constant 0 : index
      %258 = vector.load %arg12[%c1_145, %c0_146, %c0_147] : memref<4x8x1xf32, #tpu.memory_space<vmem>>, vector<1x8x1xf32>
      %259 = vector.shape_cast %258 : vector<1x8x1xf32> to vector<8x1xf32>
      %260 = vector.broadcast %259 : vector<8x1xf32> to vector<8x8xf32>
      %261 = arith.divf %257, %260 : vector<8x8xf32>
      %262 = arith.truncf %261 : vector<8x8xf32> to vector<8x8xbf16>
      %c0_148 = arith.constant 0 : index
      %c0_149 = arith.constant 0 : index
      %c8_150 = arith.constant 8 : index
      %263 = vector.load %arg10[%c0_148, %c0_149, %c8_150] : memref<1x8x32xbf16, #tpu.memory_space<vmem>>, vector<1x8x8xbf16>
      %264 = vector.shape_cast %263 : vector<1x8x8xbf16> to vector<8x8xbf16>
      %265 = vector.shape_cast %262 : vector<8x8xbf16> to vector<1x8x8xbf16>
      tpu.vector_store %arg10[%c0_148, %c0_149, %c8_150], %265 {strides = array<i32>} : memref<1x8x32xbf16, #tpu.memory_space<vmem>>, vector<1x8x8xbf16>,
      %c2_151 = arith.constant 2 : index
      %c0_152 = arith.constant 0 : index
      %c0_153 = arith.constant 0 : index
      %266 = vector.load %arg13[%c2_151, %c0_152, %c0_153] : memref<4x8x8xf32, #tpu.memory_space<vmem>>, vector<1x8x8xf32>
      %267 = vector.shape_cast %266 : vector<1x8x8xf32> to vector<8x8xf32>
      %c2_154 = arith.constant 2 : index
      %c0_155 = arith.constant 0 : index
      %c0_156 = arith.constant 0 : index
      %268 = vector.load %arg12[%c2_154, %c0_155, %c0_156] : memref<4x8x1xf32, #tpu.memory_space<vmem>>, vector<1x8x1xf32>
      %269 = vector.shape_cast %268 : vector<1x8x1xf32> to vector<8x1xf32>
      %270 = vector.broadcast %269 : vector<8x1xf32> to vector<8x8xf32>
      %271 = arith.divf %267, %270 : vector<8x8xf32>
      %272 = arith.truncf %271 : vector<8x8xf32> to vector<8x8xbf16>
      %c0_157 = arith.constant 0 : index
      %c0_158 = arith.constant 0 : index
      %c16_159 = arith.constant 16 : index
      %273 = vector.load %arg10[%c0_157, %c0_158, %c16_159] : memref<1x8x32xbf16, #tpu.memory_space<vmem>>, vector<1x8x8xbf16>
      %274 = vector.shape_cast %273 : vector<1x8x8xbf16> to vector<8x8xbf16>
      %275 = vector.shape_cast %272 : vector<8x8xbf16> to vector<1x8x8xbf16>
      tpu.vector_store %arg10[%c0_157, %c0_158, %c16_159], %275 {strides = array<i32>} : memref<1x8x32xbf16, #tpu.memory_space<vmem>>, vector<1x8x8xbf16>,
      %c3_160 = arith.constant 3 : index
      %c0_161 = arith.constant 0 : index
      %c0_162 = arith.constant 0 : index
      %276 = vector.load %arg13[%c3_160, %c0_161, %c0_162] : memref<4x8x8xf32, #tpu.memory_space<vmem>>, vector<1x8x8xf32>
      %277 = vector.shape_cast %276 : vector<1x8x8xf32> to vector<8x8xf32>
      %c3_163 = arith.constant 3 : index
      %c0_164 = arith.constant 0 : index
      %c0_165 = arith.constant 0 : index
      %278 = vector.load %arg12[%c3_163, %c0_164, %c0_165] : memref<4x8x1xf32, #tpu.memory_space<vmem>>, vector<1x8x1xf32>
      %279 = vector.shape_cast %278 : vector<1x8x1xf32> to vector<8x1xf32>
      %280 = vector.broadcast %279 : vector<8x1xf32> to vector<8x8xf32>
      %281 = arith.divf %277, %280 : vector<8x8xf32>
      %282 = arith.truncf %281 : vector<8x8xf32> to vector<8x8xbf16>
      %c0_166 = arith.constant 0 : index
      %c0_167 = arith.constant 0 : index
      %c24_168 = arith.constant 24 : index
      %283 = vector.load %arg10[%c0_166, %c0_167, %c24_168] : memref<1x8x32xbf16, #tpu.memory_space<vmem>>, vector<1x8x8xbf16>
      %284 = vector.shape_cast %283 : vector<1x8x8xbf16> to vector<8x8xbf16>
      %285 = vector.shape_cast %282 : vector<8x8xbf16> to vector<1x8x8xbf16>
      tpu.vector_store %arg10[%c0_166, %c0_167, %c24_168], %285 {strides = array<i32>} : memref<1x8x32xbf16, #tpu.memory_space<vmem>>, vector<1x8x8xbf16>,
    } else {
    }
    return
  }
  func.func @transform_0(%arg0: i32, %arg1: i32, %arg2: i32) -> (i32, i32, i32) {
    %c0_i32 = arith.constant 0 : i32
    %0 = arith.addi %c0_i32, %arg1 : i32
    %c0_i32_0 = arith.constant 0 : i32
    %c0_i32_1 = arith.constant 0 : i32
    return %arg0, %c0_i32_0, %0 : i32, i32, i32
  }
  func.func @transform_1(%arg0: i32, %arg1: i32, %arg2: i32) -> (i32, i32, i32) {
    %c0_i32 = arith.constant 0 : i32
    %0 = arith.addi %c0_i32, %arg1 : i32
    %c0_i32_0 = arith.constant 0 : i32
    return %arg0, %arg2, %0 : i32, i32, i32
  }
  func.func @transform_2(%arg0: i32, %arg1: i32, %arg2: i32) -> (i32, i32, i32) {
    %c0_i32 = arith.constant 0 : i32
    %0 = arith.addi %c0_i32, %arg1 : i32
    %c0_i32_0 = arith.constant 0 : i32
    return %arg0, %arg2, %0 : i32, i32, i32
  }
  func.func @transform_3(%arg0: i32, %arg1: i32, %arg2: i32) -> (i32, i32) {
    %c0_i32 = arith.constant 0 : i32
    %c0_i32_0 = arith.constant 0 : i32
    %c0_i32_1 = arith.constant 0 : i32
    return %c0_i32, %c0_i32_0 : i32, i32
  }
  func.func @transform_4(%arg0: i32, %arg1: i32, %arg2: i32) -> (i32, i32) {
    %c0_i32 = arith.constant 0 : i32
    %c0_i32_0 = arith.constant 0 : i32
    %c0_i32_1 = arith.constant 0 : i32
    return %c0_i32, %c0_i32_0 : i32, i32
  }
  func.func @transform_5(%arg0: i32, %arg1: i32, %arg2: i32) -> (i32, i32) {
    %c0_i32 = arith.constant 0 : i32
    %c0_i32_0 = arith.constant 0 : i32
    return %arg2, %c0_i32 : i32, i32
  }
  func.func @transform_6(%arg0: i32, %arg1: i32, %arg2: i32) -> (i32, i32) {
    %c0_i32 = arith.constant 0 : i32
    %c0_i32_0 = arith.constant 0 : i32
    return %arg2, %c0_i32 : i32, i32
  }
  func.func @transform_7(%arg0: i32, %arg1: i32, %arg2: i32) -> (i32, i32, i32) {
    %c0_i32 = arith.constant 0 : i32
    %c0_i32_0 = arith.constant 0 : i32
    return %arg0, %c0_i32, %arg1 : i32, i32, i32
  }
}

module attributes {stable_mosaic.version = 11 : i64} {
  func.func @kernel(%arg0: i32, %arg1: i32, %arg2: i32, %arg3: memref<16x32xbf16, #tpu.memory_space<vmem>>, %arg4: memref<16x1xf32, #tpu.memory_space<vmem>>, %arg5: memref<32x128xi8, #tpu.memory_space<vmem>>, %arg6: memref<1x128xf32, #tpu.memory_space<vmem>>, %arg7: memref<16x128xbf16, #tpu.memory_space<vmem>>, %arg8: memref<16x128xf32, #tpu.memory_space<vmem>>) attributes {dimension_semantics = [#tpu.dimension_semantics<parallel>, #tpu.dimension_semantics<parallel>, #tpu.dimension_semantics<arbitrary>], iteration_bounds = array<i64: 1, 1, 1>, scalar_prefetch = 0 : i64, scratch_operands = 1 : i64, tpu.core_type = #tpu.core_type<tc>, window_params = [{transform_indices = @transform_0, window_bounds = array<i64: 16, 32>}, {transform_indices = @transform_1, window_bounds = array<i64: 16, 1>}, {transform_indices = @transform_2, window_bounds = array<i64: 32, 128>}, {transform_indices = @transform_3, window_bounds = array<i64: 1, 128>}, {transform_indices = @transform_4, window_bounds = array<i64: 16, 128>}]} {
    %c0_i32 = arith.constant 0 : i32
    %0 = arith.cmpi eq, %arg2, %c0_i32 : i32
    %1 = arith.extui %0 : i1 to i32
    %c0_i32_0 = arith.constant 0 : i32
    %2 = arith.cmpi ne, %1, %c0_i32_0 : i32
    scf.if %2 {
      %cst_10 = arith.constant 0.000000e+00 : f32
      %13 = vector.broadcast %cst_10 : f32 to vector<16x128xf32>
      %c0_11 = arith.constant 0 : index
      %c0_12 = arith.constant 0 : index
      %14 = vector.load %arg8[%c0_11, %c0_12] : memref<16x128xf32, #tpu.memory_space<vmem>>, vector<16x128xf32>
      tpu.vector_store %arg8[%c0_11, %c0_12], %13 {strides = array<i32>} : memref<16x128xf32, #tpu.memory_space<vmem>>, vector<16x128xf32>,
    } else {
    }
    %c0 = arith.constant 0 : index
    %c0_1 = arith.constant 0 : index
    %3 = vector.load %arg8[%c0, %c0_1] : memref<16x128xf32, #tpu.memory_space<vmem>>, vector<16x128xf32>
    %c0_2 = arith.constant 0 : index
    %c0_3 = arith.constant 0 : index
    %4 = vector.load %arg3[%c0_2, %c0_3] : memref<16x32xbf16, #tpu.memory_space<vmem>>, vector<16x32xbf16>
    %c0_4 = arith.constant 0 : index
    %c0_5 = arith.constant 0 : index
    %5 = vector.load %arg5[%c0_4, %c0_5] : memref<32x128xi8, #tpu.memory_space<vmem>>, vector<32x128xi8>
    %6 = arith.sitofp %5 : vector<32x128xi8> to vector<32x128xbf16>
    %cst = arith.constant dense<0.000000e+00> : vector<16x128xf32>
    %7 = tpu.matmul %4, %6, %cst {dimension_numbers = #tpu.dot_dimension_numbers<[1], [0], [0], [1], [0, 0, 1, 1], [], []>} : vector<16x32xbf16>, vector<32x128xbf16>, vector<16x128xf32> -> vector<16x128xf32>
    %8 = arith.addf %3, %7 : vector<16x128xf32>
    %c0_6 = arith.constant 0 : index
    %c0_7 = arith.constant 0 : index
    %9 = vector.load %arg8[%c0_6, %c0_7] : memref<16x128xf32, #tpu.memory_space<vmem>>, vector<16x128xf32>
    tpu.vector_store %arg8[%c0_6, %c0_7], %8 {strides = array<i32>} : memref<16x128xf32, #tpu.memory_space<vmem>>, vector<16x128xf32>,
    %c0_i32_8 = arith.constant 0 : i32
    %10 = arith.cmpi eq, %arg2, %c0_i32_8 : i32
    %11 = arith.extui %10 : i1 to i32
    %c0_i32_9 = arith.constant 0 : i32
    %12 = arith.cmpi ne, %11, %c0_i32_9 : i32
    scf.if %12 {
      %c0_10 = arith.constant 0 : index
      %c0_11 = arith.constant 0 : index
      %13 = vector.load %arg8[%c0_10, %c0_11] : memref<16x128xf32, #tpu.memory_space<vmem>>, vector<16x128xf32>
      %c0_12 = arith.constant 0 : index
      %c0_13 = arith.constant 0 : index
      %14 = vector.load %arg4[%c0_12, %c0_13] : memref<16x1xf32, #tpu.memory_space<vmem>>, vector<16x1xf32>
      %15 = vector.broadcast %14 : vector<16x1xf32> to vector<16x128xf32>
      %16 = arith.mulf %13, %15 : vector<16x128xf32>
      %c0_14 = arith.constant 0 : index
      %c0_15 = arith.constant 0 : index
      %17 = vector.load %arg6[%c0_14, %c0_15] : memref<1x128xf32, #tpu.memory_space<vmem>>, vector<1x128xf32>
      %18 = vector.broadcast %17 : vector<1x128xf32> to vector<16x128xf32>
      %19 = arith.mulf %16, %18 : vector<16x128xf32>
      %20 = arith.truncf %19 : vector<16x128xf32> to vector<16x128xbf16>
      %c0_16 = arith.constant 0 : index
      %c0_17 = arith.constant 0 : index
      %21 = vector.load %arg7[%c0_16, %c0_17] : memref<16x128xbf16, #tpu.memory_space<vmem>>, vector<16x128xbf16>
      tpu.vector_store %arg7[%c0_16, %c0_17], %20 {strides = array<i32>} : memref<16x128xbf16, #tpu.memory_space<vmem>>, vector<16x128xbf16>,
    } else {
    }
    return
  }
  func.func @transform_0(%arg0: i32, %arg1: i32, %arg2: i32) -> (i32, i32) {
    %c0_i32 = arith.constant 0 : i32
    return %arg0, %arg2 : i32, i32
  }
  func.func @transform_1(%arg0: i32, %arg1: i32, %arg2: i32) -> (i32, i32) {
    %c0_i32 = arith.constant 0 : i32
    %c0_i32_0 = arith.constant 0 : i32
    return %arg0, %c0_i32 : i32, i32
  }
  func.func @transform_2(%arg0: i32, %arg1: i32, %arg2: i32) -> (i32, i32) {
    %c0_i32 = arith.constant 0 : i32
    return %arg2, %arg1 : i32, i32
  }
  func.func @transform_3(%arg0: i32, %arg1: i32, %arg2: i32) -> (i32, i32) {
    %c0_i32 = arith.constant 0 : i32
    %c0_i32_0 = arith.constant 0 : i32
    return %c0_i32, %arg1 : i32, i32
  }
  func.func @transform_4(%arg0: i32, %arg1: i32, %arg2: i32) -> (i32, i32) {
    %c0_i32 = arith.constant 0 : i32
    return %arg0, %arg1 : i32, i32
  }
}

module attributes {stable_mosaic.version = 11 : i64} {
  func.func @kernel(%arg0: i32, %arg1: memref<8x128xbf16, #tpu.memory_space<vmem>>, %arg2: memref<8x64xbf16, #tpu.memory_space<vmem>>, %arg3: memref<8x1xf32, #tpu.memory_space<vmem>>) attributes {dimension_semantics = [#tpu.dimension_semantics<parallel>], iteration_bounds = array<i64: 2>, scalar_prefetch = 0 : i64, scratch_operands = 0 : i64, tpu.core_type = #tpu.core_type<tc>, window_params = [{transform_indices = @transform_0, window_bounds = array<i64: 8, 128>}, {transform_indices = @transform_1, window_bounds = array<i64: 8, 64>}, {transform_indices = @transform_2, window_bounds = array<i64: 8, 1>}]} {
    %c0 = arith.constant 0 : index
    %c0_0 = arith.constant 0 : index
    %0 = vector.load %arg1[%c0, %c0_0] : memref<8x128xbf16, #tpu.memory_space<vmem>>, vector<8x128xbf16>
    %1 = arith.extf %0 : vector<8x128xbf16> to vector<8x128xf32>
    %2 = vector.extract_strided_slice %1 {offsets = [0, 0], sizes = [8, 64], strides = [1, 1]} : vector<8x128xf32> to vector<8x64xf32>
    %3 = vector.extract_strided_slice %1 {offsets = [0, 0], sizes = [8, 64], strides = [1, 1]} : vector<8x128xf32> to vector<8x64xf32>
    %cst = arith.constant 0.000000e+00 : f32
    %4 = vector.broadcast %cst : f32 to vector<8x64xf32>
    %5 = arith.subf %4, %3 : vector<8x64xf32>
    %6 = math.exp %5 : vector<8x64xf32>
    %cst_1 = arith.constant 1.000000e+00 : f32
    %7 = vector.broadcast %cst_1 : f32 to vector<8x64xf32>
    %8 = arith.addf %7, %6 : vector<8x64xf32>
    %cst_2 = arith.constant 1.000000e+00 : f32
    %9 = vector.broadcast %cst_2 : f32 to vector<8x64xf32>
    %10 = arith.divf %9, %8 : vector<8x64xf32>
    %11 = arith.mulf %2, %10 : vector<8x64xf32>
    %12 = vector.extract_strided_slice %1 {offsets = [0, 64], sizes = [8, 64], strides = [1, 1]} : vector<8x128xf32> to vector<8x64xf32>
    %13 = arith.mulf %11, %12 : vector<8x64xf32>
    %14 = math.absf %13 : vector<8x64xf32>
    %cst_3 = arith.constant dense<0xFF800000> : vector<8xf32>
    %15 = vector.multi_reduction <maximumf>, %14, %cst_3 [1] : vector<8x64xf32> to vector<8xf32>
    %16 = vector.shape_cast %15 : vector<8xf32> to vector<8x1xf32>
    %cst_4 = arith.constant 9.99999993E-9 : f32
    %17 = vector.broadcast %cst_4 : f32 to vector<8x1xf32>
    %18 = arith.maximumf %16, %17 : vector<8x1xf32>
    %cst_5 = arith.constant 0.00787401571 : f32
    %19 = vector.broadcast %cst_5 : f32 to vector<8x1xf32>
    %20 = arith.mulf %18, %19 : vector<8x1xf32>
    %21 = vector.broadcast %20 : vector<8x1xf32> to vector<8x64xf32>
    %22 = arith.divf %13, %21 : vector<8x64xf32>
    %23 = math.roundeven %22 : vector<8x64xf32>
    %cst_6 = arith.constant -1.270000e+02 : f32
    %cst_7 = arith.constant 1.270000e+02 : f32
    %24 = vector.broadcast %cst_6 : f32 to vector<8x64xf32>
    %25 = arith.maximumf %24, %23 : vector<8x64xf32>
    %26 = vector.broadcast %cst_7 : f32 to vector<8x64xf32>
    %27 = arith.minimumf %26, %25 : vector<8x64xf32>
    %28 = arith.truncf %27 : vector<8x64xf32> to vector<8x64xbf16>
    %c0_8 = arith.constant 0 : index
    %c0_9 = arith.constant 0 : index
    %29 = vector.load %arg2[%c0_8, %c0_9] : memref<8x64xbf16, #tpu.memory_space<vmem>>, vector<8x64xbf16>
    tpu.vector_store %arg2[%c0_8, %c0_9], %28 {strides = array<i32>} : memref<8x64xbf16, #tpu.memory_space<vmem>>, vector<8x64xbf16>,
    %c0_10 = arith.constant 0 : index
    %c0_11 = arith.constant 0 : index
    %30 = vector.load %arg3[%c0_10, %c0_11] : memref<8x1xf32, #tpu.memory_space<vmem>>, vector<8x1xf32>
    tpu.vector_store %arg3[%c0_10, %c0_11], %20 {strides = array<i32>} : memref<8x1xf32, #tpu.memory_space<vmem>>, vector<8x1xf32>,
    return
  }
  func.func @transform_0(%arg0: i32) -> (i32, i32) {
    %c0_i32 = arith.constant 0 : i32
    %c0_i32_0 = arith.constant 0 : i32
    return %arg0, %c0_i32 : i32, i32
  }
  func.func @transform_1(%arg0: i32) -> (i32, i32) {
    %c0_i32 = arith.constant 0 : i32
    %c0_i32_0 = arith.constant 0 : i32
    return %arg0, %c0_i32 : i32, i32
  }
  func.func @transform_2(%arg0: i32) -> (i32, i32) {
    %c0_i32 = arith.constant 0 : i32
    %c0_i32_0 = arith.constant 0 : i32
    return %arg0, %c0_i32 : i32, i32
  }
}

module attributes {stable_mosaic.version = 11 : i64} {
  func.func @kernel(%arg0: i32, %arg1: i32, %arg2: i32, %arg3: memref<16x32xbf16, #tpu.memory_space<vmem>>, %arg4: memref<16x1xf32, #tpu.memory_space<vmem>>, %arg5: memref<32x32xi8, #tpu.memory_space<vmem>>, %arg6: memref<1x32xf32, #tpu.memory_space<vmem>>, %arg7: memref<16x32xf32, #tpu.memory_space<vmem>>, %arg8: memref<16x32xf32, #tpu.memory_space<vmem>>, %arg9: memref<16x32xf32, #tpu.memory_space<vmem>>) attributes {dimension_semantics = [#tpu.dimension_semantics<parallel>, #tpu.dimension_semantics<parallel>, #tpu.dimension_semantics<arbitrary>], iteration_bounds = array<i64: 1, 1, 1>, scalar_prefetch = 0 : i64, scratch_operands = 1 : i64, tpu.core_type = #tpu.core_type<tc>, window_params = [{transform_indices = @transform_0, window_bounds = array<i64: 16, 32>}, {transform_indices = @transform_1, window_bounds = array<i64: 16, 1>}, {transform_indices = @transform_2, window_bounds = array<i64: 32, 32>}, {transform_indices = @transform_3, window_bounds = array<i64: 1, 32>}, {transform_indices = @transform_4, window_bounds = array<i64: 16, 32>}, {transform_indices = @transform_5, window_bounds = array<i64: 16, 32>}]} {
    %c0_i32 = arith.constant 0 : i32
    %0 = arith.cmpi eq, %arg2, %c0_i32 : i32
    %1 = arith.extui %0 : i1 to i32
    %c0_i32_0 = arith.constant 0 : i32
    %2 = arith.cmpi ne, %1, %c0_i32_0 : i32
    scf.if %2 {
      %cst_10 = arith.constant 0.000000e+00 : f32
      %13 = vector.broadcast %cst_10 : f32 to vector<16x32xf32>
      %c0_11 = arith.constant 0 : index
      %c0_12 = arith.constant 0 : index
      %14 = vector.load %arg9[%c0_11, %c0_12] : memref<16x32xf32, #tpu.memory_space<vmem>>, vector<16x32xf32>
      tpu.vector_store %arg9[%c0_11, %c0_12], %13 {strides = array<i32>} : memref<16x32xf32, #tpu.memory_space<vmem>>, vector<16x32xf32>,
    } else {
    }
    %c0 = arith.constant 0 : index
    %c0_1 = arith.constant 0 : index
    %3 = vector.load %arg9[%c0, %c0_1] : memref<16x32xf32, #tpu.memory_space<vmem>>, vector<16x32xf32>
    %c0_2 = arith.constant 0 : index
    %c0_3 = arith.constant 0 : index
    %4 = vector.load %arg3[%c0_2, %c0_3] : memref<16x32xbf16, #tpu.memory_space<vmem>>, vector<16x32xbf16>
    %c0_4 = arith.constant 0 : index
    %c0_5 = arith.constant 0 : index
    %5 = vector.load %arg5[%c0_4, %c0_5] : memref<32x32xi8, #tpu.memory_space<vmem>>, vector<32x32xi8>
    %6 = arith.sitofp %5 : vector<32x32xi8> to vector<32x32xbf16>
    %cst = arith.constant dense<0.000000e+00> : vector<16x32xf32>
    %7 = tpu.matmul %4, %6, %cst {dimension_numbers = #tpu.dot_dimension_numbers<[1], [0], [0], [1], [0, 0, 1, 1], [], []>} : vector<16x32xbf16>, vector<32x32xbf16>, vector<16x32xf32> -> vector<16x32xf32>
    %8 = arith.addf %3, %7 : vector<16x32xf32>
    %c0_6 = arith.constant 0 : index
    %c0_7 = arith.constant 0 : index
    %9 = vector.load %arg9[%c0_6, %c0_7] : memref<16x32xf32, #tpu.memory_space<vmem>>, vector<16x32xf32>
    tpu.vector_store %arg9[%c0_6, %c0_7], %8 {strides = array<i32>} : memref<16x32xf32, #tpu.memory_space<vmem>>, vector<16x32xf32>,
    %c0_i32_8 = arith.constant 0 : i32
    %10 = arith.cmpi eq, %arg2, %c0_i32_8 : i32
    %11 = arith.extui %10 : i1 to i32
    %c0_i32_9 = arith.constant 0 : i32
    %12 = arith.cmpi ne, %11, %c0_i32_9 : i32
    scf.if %12 {
      %c0_10 = arith.constant 0 : index
      %c0_11 = arith.constant 0 : index
      %13 = vector.load %arg9[%c0_10, %c0_11] : memref<16x32xf32, #tpu.memory_space<vmem>>, vector<16x32xf32>
      %c0_12 = arith.constant 0 : index
      %c0_13 = arith.constant 0 : index
      %14 = vector.load %arg4[%c0_12, %c0_13] : memref<16x1xf32, #tpu.memory_space<vmem>>, vector<16x1xf32>
      %15 = vector.broadcast %14 : vector<16x1xf32> to vector<16x32xf32>
      %16 = arith.mulf %13, %15 : vector<16x32xf32>
      %c0_14 = arith.constant 0 : index
      %c0_15 = arith.constant 0 : index
      %17 = vector.load %arg6[%c0_14, %c0_15] : memref<1x32xf32, #tpu.memory_space<vmem>>, vector<1x32xf32>
      %18 = vector.broadcast %17 : vector<1x32xf32> to vector<16x32xf32>
      %19 = arith.mulf %16, %18 : vector<16x32xf32>
      %c0_16 = arith.constant 0 : index
      %c0_17 = arith.constant 0 : index
      %20 = vector.load %arg7[%c0_16, %c0_17] : memref<16x32xf32, #tpu.memory_space<vmem>>, vector<16x32xf32>
      %21 = arith.addf %19, %20 : vector<16x32xf32>
      %c0_18 = arith.constant 0 : index
      %c0_19 = arith.constant 0 : index
      %22 = vector.load %arg8[%c0_18, %c0_19] : memref<16x32xf32, #tpu.memory_space<vmem>>, vector<16x32xf32>
      tpu.vector_store %arg8[%c0_18, %c0_19], %21 {strides = array<i32>} : memref<16x32xf32, #tpu.memory_space<vmem>>, vector<16x32xf32>,
    } else {
    }
    return
  }
  func.func @transform_0(%arg0: i32, %arg1: i32, %arg2: i32) -> (i32, i32) {
    %c0_i32 = arith.constant 0 : i32
    return %arg0, %arg2 : i32, i32
  }
  func.func @transform_1(%arg0: i32, %arg1: i32, %arg2: i32) -> (i32, i32) {
    %c0_i32 = arith.constant 0 : i32
    %c0_i32_0 = arith.constant 0 : i32
    return %arg0, %c0_i32 : i32, i32
  }
  func.func @transform_2(%arg0: i32, %arg1: i32, %arg2: i32) -> (i32, i32) {
    %c0_i32 = arith.constant 0 : i32
    return %arg2, %arg1 : i32, i32
  }
  func.func @transform_3(%arg0: i32, %arg1: i32, %arg2: i32) -> (i32, i32) {
    %c0_i32 = arith.constant 0 : i32
    %c0_i32_0 = arith.constant 0 : i32
    return %c0_i32, %arg1 : i32, i32
  }
  func.func @transform_4(%arg0: i32, %arg1: i32, %arg2: i32) -> (i32, i32) {
    %c0_i32 = arith.constant 0 : i32
    return %arg0, %arg1 : i32, i32
  }
  func.func @transform_5(%arg0: i32, %arg1: i32, %arg2: i32) -> (i32, i32) {
    %c0_i32 = arith.constant 0 : i32
    return %arg0, %arg1 : i32, i32
  }
}

module attributes {stable_mosaic.version = 11 : i64} {
  func.func @kernel(%arg0: i32, %arg1: memref<8x32xf32, #tpu.memory_space<vmem>>, %arg2: memref<1x32xf32, #tpu.memory_space<vmem>>, %arg3: memref<8x32xf32, #tpu.memory_space<vmem>>) attributes {dimension_semantics = [#tpu.dimension_semantics<parallel>], iteration_bounds = array<i64: 2>, scalar_prefetch = 0 : i64, scratch_operands = 0 : i64, tpu.core_type = #tpu.core_type<tc>, window_params = [{transform_indices = @transform_0, window_bounds = array<i64: 8, 32>}, {pipeline_mode = #tpu.pipeline_mode<synchronous>, transform_indices = @transform_1, window_bounds = array<i64: 1, 32>}, {transform_indices = @transform_2, window_bounds = array<i64: 8, 32>}]} {
    %c0 = arith.constant 0 : index
    %c0_0 = arith.constant 0 : index
    %0 = vector.load %arg1[%c0, %c0_0] : memref<8x32xf32, #tpu.memory_space<vmem>>, vector<8x32xf32>
    %1 = arith.mulf %0, %0 : vector<8x32xf32>
    %cst = arith.constant dense<0.000000e+00> : vector<8xf32>
    %2 = vector.multi_reduction <add>, %1, %cst [1] : vector<8x32xf32> to vector<8xf32>
    %3 = vector.shape_cast %2 : vector<8xf32> to vector<8x1xf32>
    %cst_1 = arith.constant 3.200000e+01 : f32
    %4 = vector.broadcast %cst_1 : f32 to vector<8x1xf32>
    %5 = arith.divf %3, %4 : vector<8x1xf32>
    %cst_2 = arith.constant 9.99999997E-7 : f32
    %6 = vector.broadcast %cst_2 : f32 to vector<8x1xf32>
    %7 = arith.addf %5, %6 : vector<8x1xf32>
    %8 = math.rsqrt %7 : vector<8x1xf32>
    %9 = vector.broadcast %8 : vector<8x1xf32> to vector<8x32xf32>
    %10 = arith.mulf %0, %9 : vector<8x32xf32>
    %c0_3 = arith.constant 0 : index
    %c0_4 = arith.constant 0 : index
    %11 = vector.load %arg2[%c0_3, %c0_4] : memref<1x32xf32, #tpu.memory_space<vmem>>, vector<1x32xf32>
    %12 = vector.broadcast %11 : vector<1x32xf32> to vector<8x32xf32>
    %13 = arith.mulf %10, %12 : vector<8x32xf32>
    %c0_5 = arith.constant 0 : index
    %c0_6 = arith.constant 0 : index
    %14 = vector.load %arg3[%c0_5, %c0_6] : memref<8x32xf32, #tpu.memory_space<vmem>>, vector<8x32xf32>
    tpu.vector_store %arg3[%c0_5, %c0_6], %13 {strides = array<i32>} : memref<8x32xf32, #tpu.memory_space<vmem>>, vector<8x32xf32>,
    return
  }
  func.func @transform_0(%arg0: i32) -> (i32, i32) {
    %c0_i32 = arith.constant 0 : i32
    %c0_i32_0 = arith.constant 0 : i32
    return %arg0, %c0_i32 : i32, i32
  }
  func.func @transform_1(%arg0: i32) -> (i32, i32) {
    %c0_i32 = arith.constant 0 : i32
    %c0_i32_0 = arith.constant 0 : i32
    %c0_i32_1 = arith.constant 0 : i32
    return %c0_i32, %c0_i32_0 : i32, i32
  }
  func.func @transform_2(%arg0: i32) -> (i32, i32) {
    %c0_i32 = arith.constant 0 : i32
    %c0_i32_0 = arith.constant 0 : i32
    return %arg0, %c0_i32 : i32, i32
  }
}

module attributes {stable_mosaic.version = 11 : i64} {
  func.func @kernel(%arg0: i32, %arg1: i32, %arg2: i32, %arg3: memref<16x64xbf16, #tpu.memory_space<vmem>>, %arg4: memref<16x1xf32, #tpu.memory_space<vmem>>, %arg5: memref<64x32xi8, #tpu.memory_space<vmem>>, %arg6: memref<1x32xf32, #tpu.memory_space<vmem>>, %arg7: memref<16x32xf32, #tpu.memory_space<vmem>>, %arg8: memref<16x32xf32, #tpu.memory_space<vmem>>, %arg9: memref<16x32xf32, #tpu.memory_space<vmem>>) attributes {dimension_semantics = [#tpu.dimension_semantics<parallel>, #tpu.dimension_semantics<parallel>, #tpu.dimension_semantics<arbitrary>], iteration_bounds = array<i64: 1, 1, 1>, scalar_prefetch = 0 : i64, scratch_operands = 1 : i64, tpu.core_type = #tpu.core_type<tc>, window_params = [{transform_indices = @transform_0, window_bounds = array<i64: 16, 64>}, {transform_indices = @transform_1, window_bounds = array<i64: 16, 1>}, {transform_indices = @transform_2, window_bounds = array<i64: 64, 32>}, {transform_indices = @transform_3, window_bounds = array<i64: 1, 32>}, {transform_indices = @transform_4, window_bounds = array<i64: 16, 32>}, {transform_indices = @transform_5, window_bounds = array<i64: 16, 32>}]} {
    %c0_i32 = arith.constant 0 : i32
    %0 = arith.cmpi eq, %arg2, %c0_i32 : i32
    %1 = arith.extui %0 : i1 to i32
    %c0_i32_0 = arith.constant 0 : i32
    %2 = arith.cmpi ne, %1, %c0_i32_0 : i32
    scf.if %2 {
      %cst_10 = arith.constant 0.000000e+00 : f32
      %13 = vector.broadcast %cst_10 : f32 to vector<16x32xf32>
      %c0_11 = arith.constant 0 : index
      %c0_12 = arith.constant 0 : index
      %14 = vector.load %arg9[%c0_11, %c0_12] : memref<16x32xf32, #tpu.memory_space<vmem>>, vector<16x32xf32>
      tpu.vector_store %arg9[%c0_11, %c0_12], %13 {strides = array<i32>} : memref<16x32xf32, #tpu.memory_space<vmem>>, vector<16x32xf32>,
    } else {
    }
    %c0 = arith.constant 0 : index
    %c0_1 = arith.constant 0 : index
    %3 = vector.load %arg9[%c0, %c0_1] : memref<16x32xf32, #tpu.memory_space<vmem>>, vector<16x32xf32>
    %c0_2 = arith.constant 0 : index
    %c0_3 = arith.constant 0 : index
    %4 = vector.load %arg3[%c0_2, %c0_3] : memref<16x64xbf16, #tpu.memory_space<vmem>>, vector<16x64xbf16>
    %c0_4 = arith.constant 0 : index
    %c0_5 = arith.constant 0 : index
    %5 = vector.load %arg5[%c0_4, %c0_5] : memref<64x32xi8, #tpu.memory_space<vmem>>, vector<64x32xi8>
    %6 = arith.sitofp %5 : vector<64x32xi8> to vector<64x32xbf16>
    %cst = arith.constant dense<0.000000e+00> : vector<16x32xf32>
    %7 = tpu.matmul %4, %6, %cst {dimension_numbers = #tpu.dot_dimension_numbers<[1], [0], [0], [1], [0, 0, 1, 1], [], []>} : vector<16x64xbf16>, vector<64x32xbf16>, vector<16x32xf32> -> vector<16x32xf32>
    %8 = arith.addf %3, %7 : vector<16x32xf32>
    %c0_6 = arith.constant 0 : index
    %c0_7 = arith.constant 0 : index
    %9 = vector.load %arg9[%c0_6, %c0_7] : memref<16x32xf32, #tpu.memory_space<vmem>>, vector<16x32xf32>
    tpu.vector_store %arg9[%c0_6, %c0_7], %8 {strides = array<i32>} : memref<16x32xf32, #tpu.memory_space<vmem>>, vector<16x32xf32>,
    %c0_i32_8 = arith.constant 0 : i32
    %10 = arith.cmpi eq, %arg2, %c0_i32_8 : i32
    %11 = arith.extui %10 : i1 to i32
    %c0_i32_9 = arith.constant 0 : i32
    %12 = arith.cmpi ne, %11, %c0_i32_9 : i32
    scf.if %12 {
      %c0_10 = arith.constant 0 : index
      %c0_11 = arith.constant 0 : index
      %13 = vector.load %arg9[%c0_10, %c0_11] : memref<16x32xf32, #tpu.memory_space<vmem>>, vector<16x32xf32>
      %c0_12 = arith.constant 0 : index
      %c0_13 = arith.constant 0 : index
      %14 = vector.load %arg4[%c0_12, %c0_13] : memref<16x1xf32, #tpu.memory_space<vmem>>, vector<16x1xf32>
      %15 = vector.broadcast %14 : vector<16x1xf32> to vector<16x32xf32>
      %16 = arith.mulf %13, %15 : vector<16x32xf32>
      %c0_14 = arith.constant 0 : index
      %c0_15 = arith.constant 0 : index
      %17 = vector.load %arg6[%c0_14, %c0_15] : memref<1x32xf32, #tpu.memory_space<vmem>>, vector<1x32xf32>
      %18 = vector.broadcast %17 : vector<1x32xf32> to vector<16x32xf32>
      %19 = arith.mulf %16, %18 : vector<16x32xf32>
      %c0_16 = arith.constant 0 : index
      %c0_17 = arith.constant 0 : index
      %20 = vector.load %arg7[%c0_16, %c0_17] : memref<16x32xf32, #tpu.memory_space<vmem>>, vector<16x32xf32>
      %21 = arith.addf %19, %20 : vector<16x32xf32>
      %c0_18 = arith.constant 0 : index
      %c0_19 = arith.constant 0 : index
      %22 = vector.load %arg8[%c0_18, %c0_19] : memref<16x32xf32, #tpu.memory_space<vmem>>, vector<16x32xf32>
      tpu.vector_store %arg8[%c0_18, %c0_19], %21 {strides = array<i32>} : memref<16x32xf32, #tpu.memory_space<vmem>>, vector<16x32xf32>,
    } else {
    }
    return
  }
  func.func @transform_0(%arg0: i32, %arg1: i32, %arg2: i32) -> (i32, i32) {
    %c0_i32 = arith.constant 0 : i32
    return %arg0, %arg2 : i32, i32
  }
  func.func @transform_1(%arg0: i32, %arg1: i32, %arg2: i32) -> (i32, i32) {
    %c0_i32 = arith.constant 0 : i32
    %c0_i32_0 = arith.constant 0 : i32
    return %arg0, %c0_i32 : i32, i32
  }
  func.func @transform_2(%arg0: i32, %arg1: i32, %arg2: i32) -> (i32, i32) {
    %c0_i32 = arith.constant 0 : i32
    return %arg2, %arg1 : i32, i32
  }
  func.func @transform_3(%arg0: i32, %arg1: i32, %arg2: i32) -> (i32, i32) {
    %c0_i32 = arith.constant 0 : i32
    %c0_i32_0 = arith.constant 0 : i32
    return %c0_i32, %arg1 : i32, i32
  }
  func.func @transform_4(%arg0: i32, %arg1: i32, %arg2: i32) -> (i32, i32) {
    %c0_i32 = arith.constant 0 : i32
    return %arg0, %arg1 : i32, i32
  }
  func.func @transform_5(%arg0: i32, %arg1: i32, %arg2: i32) -> (i32, i32) {
    %c0_i32 = arith.constant 0 : i32
    return %arg0, %arg1 : i32, i32
  }
}

</mosaic_0001>

<bundles_post_ra>
// kernel: quant_llama_model_forward.20
= control target key start
LH: loop header
LB: loop body
LE: loop exit
PB: predicated region body
PF: predicated region fallthrough
CT: control target
= control target key end

     0   :  { %v153_v0 = vmov 0.0   ;;  %vm154_vm0 = vmmov 0   ;;  %vm22_vm1 = vcmask 523264   ;;  %v155_v3 = vmov 0   ;;  %s206_s2 = inlined_call_operand.vmem [shape: s8[32,64], index: 2, kind: input, shape index: {}]   ;;  %s207_s0 = inlined_call_operand.vmem [shape: bf16[16,32], index: 0, kind: input, shape index: {}]   ;;  %s208_s1 = inlined_call_operand.vmem [shape: f32[16,1], index: 1, kind: input, shape index: {}]   ;;  %s209_s3 = inlined_call_operand.vmem [shape: f32[1,64], index: 3, kind: input, shape index: {}]   ;;  %s210_s4 = inlined_call_operand.vmem [shape: bf16[16,64], index: 4, kind: output, shape index: {}]  }
   0x1   :  { %140 = vmatprep.subr.bf16.mxu0 %v153_v0  ;;  %v29_v1 = vld [vmem:[%s206_s2] sm:$0xff]  ;;  %144 = vmatprep.mubr.msk.bf16.mxu0 %vm154_vm0, %v153_v0  ;;  %23 = vst.msk [vmem:[#allocation2] sm:$0xff] %vm22_vm1, %v153_v0  ;;  %24 = vst.msk [vmem:[#allocation2 + $0x8] sm:$0xff] %vm22_vm1, %v153_v0  ;;  %v93_v6 = vld [vmem:[%s208_s1 + $0x8] sm:$0xff]  ;;  %vm37_vm2 = vcmask 261120   ;;  %vm123_vm3 = vcmask 519168  }
   0x2   :  { %v30_v2 = vunpack.c.l.s8.bf16 %v29_v1  ;;  %151 = vset.pattern.permute.xlu0 %v155_v3  ;;  %v92_v4 = vld [vmem:[%s208_s1] sm:$0xff]  ;;  %v31_v5 = vunpack.c.h.s8.bf16 %v29_v1 }
   0x3   :  { %96 = vperm.xlu0 %151, %v92_v4   ;;  %v152_v7 = vld [vmem:[%s207_s0] sm:$0xff]  }
   0x4   :  { %141 = vmatpush3.bf16.msra.mxu0 %v30_v2  ;;  %v132_v17 = vld [vmem:[%s209_s3] ss:$0 sm:$0xff] }
   0x5   :  { %142 = vmatprep.subr.bf16.mxu0 %v153_v0 }
   0x7   :  { %101 = vperm.xlu0 %151, %v93_v6  }
   0x8   :  { %143 = vmatpush3.bf16.msra.mxu0 %v31_v5  ;;  %v25_v8 = vld [vmem:[#allocation2] sm:$0xff]  ;;  %v26_v10 = vld [vmem:[#allocation2 + $0x8] sm:$0xff] }
   0xb   :  { %145 = vmatmul.mubr.msk.bf16.vlgmr.msra.gmra.mrb[0].mxu0 %vm37_vm2, %v152_v7 }
  0x82   :  { %v97_v16 = vpop.permute.xlu0 %96 }
  0x86   :  { %v102_v20 = vpop.permute.xlu0 %101 }
  0xde   :  { %v75_v9 = vpop.f32.mrb[0].mxu0 }
  0xdf   :  { %v82_v11 = vadd.f32 %v75_v9, %v25_v8  ;;  %v146_v12 = vpop.f32.mrb[1].mxu0 }
  0xe0   :  { %v78_v13 = vpop.f32.mrb[2].mxu0 }
  0xe1   :  { %85 = vst.msk [vmem:[#allocation2] sm:$0xff] %vm22_vm1, %v82_v11  ;;  %v83_v14 = vadd.f32 %v78_v13, %v26_v10  ;;  %v147_v15 = vpop.f32.mrb[3].mxu0 }
  0xe3   :  { %86 = vst.msk [vmem:[#allocation2 + $0x8] sm:$0xff] %vm22_vm1, %v83_v14 }
  0xe8   :  { %v90_v18 = vld [vmem:[#allocation2] sm:$0xff] }
  0xe9   :  { %v104_v19 = vmul.f32 %v97_v16, %v90_v18 }
  0xea   :  { %v91_v21 = vld [vmem:[#allocation2 + $0x8] sm:$0xff] }
  0xeb   :  { %v113_v22 = vmul.f32 %v132_v17, %v104_v19  ;;  %v105_v23 = vmul.f32 %v102_v20, %v91_v21 }
  0xed   :  { %v135_v24 = vpack.c.bf16 %v113_v22, %v113_v22  ;;  %v114_v25 = vmul.f32 %v132_v17, %v105_v23 }
  0xef   :  { %124 = vst.msk [vmem:[%s210_s4] sm:$0xf] %vm123_vm3, %v135_v24  ;;  %v136_v26 = vpack.c.bf16 %v114_v25, %v114_v25 }
  0xf1   :  { %125 = vst.msk [vmem:[%s210_s4 + $0x4] sm:$0xf] %vm123_vm3, %v136_v26 }

// kernel: quant_llama_model_forward.19
= control target key start
LH: loop header
LB: loop body
LE: loop exit
PB: predicated region body
PF: predicated region fallthrough
CT: control target
= control target key end

     0   :  { %s349_s12 = smov 0   ;;  %s376_s0 = inlined_call_operand.vmem [shape: f32[16,32], index: 0, kind: input, shape index: {}]   ;;  %s377_s1 = inlined_call_operand.vmem [shape: f32[1,32], index: 1, kind: input, shape index: {}]   ;;  %s378_s2 = inlined_call_operand.vmem [shape: bf16[16,32], index: 2, kind: output, shape index: {0}]   ;;  %s379_s3 = inlined_call_operand.vmem [shape: f32[16,1], index: 3, kind: output, shape index: {1}]  }
   0x1 LB: > { %s296_s13 = sadd.s32 4294967295, %s327_s12   ;;  %p300_p0 = scmp.ge.s32.totalorder %s327_s12, 1  ;;  %s327_s12 = sphi %s349_s12, %s14_s12  }
   0x2   : > { %p139_p1 = scmp.lt.s32.totalorder %s327_s12, 3 }
   0x4   : > { %p140_p2 = pnand %p300_p0, %p139_p1 }
   0x5   : > { %p165_p3 = scmp.lt.s32.totalorder (!%p140_p2), %s296_s13, 1  ;;  %vm179_vm0 = vcmask (!%p140_p2), 261120   ;;  %v304_v7 = vld [vmem:[%s377_s1] ss:$0 sm:$0xff] (!%p140_p2)  ;;  %vm210_vm1 = vcmask (!%p140_p2), 7168   ;;  %vm208_vm2 = vcmask (!%p140_p2), 257024  }
   0x6   : > { %143 = sbr.rel (%p140_p2) target bundleno = 350 (0x15e), region = 28 }
   0xd   : > { %s381_s13 = smov (!%p165_p3, %s296_s13), 1 }
   0xe   : > { %s301_s14 = sshll.u32 %s381_s13, 3  ;;  %s302_s23 = sshll.u32 %s381_s13, 2 }
   0xf   : > { %s168_s17 = scalar_lea.vmem %s376_s0, %s301_s14  ;;  %s176_s22 = scalar_lea.vmem %s379_s3, %s301_s14 }
  0x10   : > { %v177_v0 = vld [vmem:[%s168_s17] sm:$0xff]  ;;  %s172_s26 = scalar_lea.vmem %s378_s2, %s302_s23 }
  0x11   : > { %v178_v1 = vmul.f32 %v177_v0, %v177_v0 }
  0x13   : > { %v180_v2 = vsel %vm179_vm0, %v178_v1, 0.0 }
  0x14   : > { %181 = vadd.xlane.f32.xlu0 %v180_v2 }
  0xa1   : > { %v182_v3 = vpop.xlane.xlu0 %181 }
  0xa2   : > { %v184_v4 = vmul.f32 0.03125, %v182_v3 }
  0xa4   : > { %v185_v5 = vadd.f32 1e-06, %v184_v4 }
  0xa6   : > { %317 = vrsqrt.f32 %v185_v5 }
  0xb0   : > { %v318_v6 = vpop.eup %317 }
  0xb1   : > { %v187_v8 = vmul.f32 %v318_v6, %v177_v0 }
  0xb3   : > { %v195_v9 = vmul.f32 %v304_v7, %v187_v8 }
  0xb5   : > { %v196_v10 = vand.u32 2147483647, %v195_v9 }
  0xb7   : > { %v197_v11 = vsel %vm179_vm0, %v196_v10, -inf }
  0xb8   : > { %198 = vmax.xlane.f32.xlu0 %v197_v11 }
 0x145   : > { %v199_v12 = vpop.xlane.xlu0 %198 }
 0x146   : > { %v200_v13 = vmax.f32 %v199_v12, 1e-08 }
 0x148   : > { %v201_v14 = vmul.f32 0.007874016, %v200_v13 }
 0x14a   : > { %319 = vrcp.f32 %v201_v14  ;;  %211 = vst.msk [vmem:[%s176_s22] sm:$0xff] %vm210_vm1, %v201_v14 }
 0x154   : > { %v320_v15 = vpop.eup %319 }
 0x155   : > { %v203_v16 = vmul.f32 %v320_v15, %v195_v9 }
 0x157   : > { %v308_v17 = vround.rtne.f32 %v203_v16 }
 0x159   : > { %v305_v18 = vclamps-f32 %v308_v17, 127.0 }
 0x15b   : > { %v207_v19 = vpack.c.bf16 %v305_v18, %v305_v18 }
 0x15d   : > { %209 = vst.msk [vmem:[%s172_s26] sm:$0xf] %vm208_vm2, %v207_v19 }
 0x15e PF: > { %s14_s12 = sadd.s32 1, %s327_s12  }
 0x15f   : > { %p11_p4 = scmp.ge.s32.totalorder %s14_s12, 4  }
 0x161   :  { %13 = sbr.rel (!%p11_p4) target bundleno = 1 (0x1), region = 70 }

// kernel: quant_llama_model_forward.22
= control target key start
LH: loop header
LB: loop body
LE: loop exit
PB: predicated region body
PF: predicated region fallthrough
CT: control target
= control target key end

     0   :  { %s298_s9 = smov 0   ;;  %s318_s0 = inlined_call_operand.vmem [shape: bf16[16,32], index: 0, kind: input, shape index: {}]   ;;  %s319_s1 = inlined_call_operand.vmem [shape: bf16[16,32], index: 1, kind: output, shape index: {0}]   ;;  %s320_s2 = inlined_call_operand.vmem [shape: f32[16,1], index: 2, kind: output, shape index: {1}]  }
   0x1 LB: > { %s253_s10 = sadd.s32 4294967295, %s281_s9   ;;  %p257_p0 = scmp.ge.s32.totalorder %s281_s9, 1  ;;  %s281_s9 = sphi %s298_s9, %s13_s9  }
   0x2   : > { %p114_p1 = scmp.lt.s32.totalorder %s281_s9, 3 }
   0x4   : > { %p115_p2 = pnand %p257_p0, %p114_p1 }
   0x5   : > { %p138_p3 = scmp.lt.s32.totalorder (!%p115_p2), %s253_s10, 1  ;;  %vm153_vm0 = vcmask (!%p115_p2), 261120   ;;  %vm167_vm1 = vcmask (!%p115_p2), 7168   ;;  %vm165_vm2 = vcmask (!%p115_p2), 257024  }
   0x6   : > { %118 = sbr.rel (%p115_p2) target bundleno = 188 (0xbc), region = 24 }
   0xd   : > { %s322_s10 = smov (!%p138_p3, %s253_s10), 1 }
   0xe   : > { %s258_s11 = sshll.u32 %s322_s10, 2  ;;  %s260_s15 = sshll.u32 %s322_s10, 3 }
   0xf   : > { %s141_s14 = scalar_lea.vmem %s318_s0, %s258_s11  ;;  %s149_s18 = scalar_lea.vmem %s320_s2, %s260_s15 }
  0x10   : > { %v150_v0 = vld [vmem:[%s141_s14] sm:$0xf]  ;;  %s145_s21 = scalar_lea.vmem %s319_s1, %s258_s11 }
  0x11   : > { %v151_v1 = vunpack.c.l.bf16 %v150_v0 }
  0x13   : > { %v152_v2 = vand.u32 2147483647, %v151_v1 }
  0x15   : > { %v154_v3 = vsel %vm153_vm0, %v152_v2, -inf }
  0x16   : > { %155 = vmax.xlane.f32.xlu0 %v154_v3 }
  0xa3   : > { %v156_v4 = vpop.xlane.xlu0 %155 }
  0xa4   : > { %v157_v5 = vmax.f32 %v156_v4, 1e-08 }
  0xa6   : > { %v158_v6 = vmul.f32 0.007874016, %v157_v5 }
  0xa8   : > { %273 = vrcp.f32 %v158_v6  ;;  %168 = vst.msk [vmem:[%s149_s18] sm:$0xff] %vm167_vm1, %v158_v6 }
  0xb2   : > { %v274_v7 = vpop.eup %273 }
  0xb3   : > { %v160_v8 = vmul.f32 %v274_v7, %v151_v1 }
  0xb5   : > { %v264_v9 = vround.rtne.f32 %v160_v8 }
  0xb7   : > { %v261_v10 = vclamps-f32 %v264_v9, 127.0 }
  0xb9   : > { %v164_v11 = vpack.c.bf16 %v261_v10, %v261_v10 }
  0xbb   : > { %166 = vst.msk [vmem:[%s145_s21] sm:$0xf] %vm165_vm2, %v164_v11 }
  0xbc PF: > { %s13_s9 = sadd.s32 1, %s281_s9  }
  0xbd   : > { %p10_p4 = scmp.ge.s32.totalorder %s13_s9, 4  }
  0xbf   :  { %12 = sbr.rel (!%p10_p4) target bundleno = 1 (0x1), region = 66 }

// kernel: quant_llama_model_forward.25
= control target key start
LH: loop header
LB: loop body
LE: loop exit
PB: predicated region body
PF: predicated region fallthrough
CT: control target
= control target key end

     0   :  { %v155_v0 = vmov 0.0   ;;  %vm156_vm0 = vmmov 0   ;;  %v157_v3 = vmov 0   ;;  %vm36_vm1 = vcmask 261120   ;;  %s201_s2 = inlined_call_operand.vmem [shape: s8[32,128], index: 2, kind: input, shape index: {}]   ;;  %s202_s0 = inlined_call_operand.vmem [shape: bf16[16,32], index: 0, kind: input, shape index: {}]   ;;  %s203_s1 = inlined_call_operand.vmem [shape: f32[16,1], index: 1, kind: input, shape index: {}]   ;;  %s204_s3 = inlined_call_operand.vmem [shape: f32[1,128], index: 3, kind: input, shape index: {}]   ;;  %s205_s4 = inlined_call_operand.vmem [shape: bf16[16,128], index: 4, kind: output, shape index: {}]  }
   0x1   :  { %142 = vmatprep.subr.bf16.mxu0 %v155_v0  ;;  %v28_v1 = vld [vmem:[%s201_s2] sm:$0xff]  ;;  %146 = vmatprep.mubr.msk.bf16.mxu0 %vm156_vm0, %v155_v0  ;;  %v91_v6 = vld [vmem:[%s203_s1 + $0x8] sm:$0xff] }
   0x2   :  { %v29_v2 = vunpack.c.l.s8.bf16 %v28_v1  ;;  %153 = vset.pattern.permute.xlu0 %v157_v3  ;;  %v90_v4 = vld [vmem:[%s203_s1] sm:$0xff]  ;;  %v30_v5 = vunpack.c.h.s8.bf16 %v28_v1 }
   0x3   :  { %94 = vperm.xlu0 %153, %v90_v4   ;;  %v154_v7 = vld [vmem:[%s202_s0] sm:$0xff]  }
   0x4   :  { %143 = vmatpush3.bf16.msra.mxu0 %v29_v2  ;;  %v129_v13 = vld [vmem:[%s204_s3] ss:$0 sm:$0xff] }
   0x5   :  { %144 = vmatprep.subr.bf16.mxu0 %v155_v0 }
   0x7   :  { %99 = vperm.xlu0 %153, %v91_v6  }
   0x8   :  { %145 = vmatpush3.bf16.msra.mxu0 %v30_v5 }
   0xb   :  { %147 = vmatmul.mubr.msk.bf16.vlgmr.msra.gmra.mrb[0].mxu0 %vm36_vm1, %v154_v7 }
  0x82   :  { %v95_v8 = vpop.permute.xlu0 %94 }
  0x86   :  { %v100_v12 = vpop.permute.xlu0 %99 }
  0xde   :  { %v74_v9 = vpop.f32.mrb[0].mxu0 }
  0xdf   :  { %v102_v10 = vmul.f32 %v95_v8, %v74_v9  ;;  %v148_v11 = vpop.f32.mrb[1].mxu0 }
  0xe0   :  { %v77_v14 = vpop.f32.mrb[2].mxu0 }
  0xe1   :  { %v103_v15 = vmul.f32 %v100_v12, %v77_v14  ;;  %v149_v16 = vpop.f32.mrb[3].mxu0  ;;  %v111_v17 = vmul.f32 %v129_v13, %v102_v10 }
  0xe3   :  { %v112_v18 = vmul.f32 %v129_v13, %v103_v15 }
  0xe5   :  { %v137_v19 = vpack.c.bf16 %v112_v18, %v111_v17 }
  0xe7   :  { %138 = vst [vmem:[%s205_s4] sm:$0xff] %v137_v19  }

// kernel: quant_llama_model_forward.26
= control target key start
LH: loop header
LB: loop body
LE: loop exit
PB: predicated region body
PF: predicated region fallthrough
CT: control target
= control target key end

     0   :  { %s316_s9 = smov 0   ;;  %s344_s0 = inlined_call_operand.vmem [shape: bf16[16,128], index: 0, kind: input, shape index: {}]   ;;  %s345_s1 = inlined_call_operand.vmem [shape: bf16[16,64], index: 1, kind: output, shape index: {0}]   ;;  %s346_s2 = inlined_call_operand.vmem [shape: f32[16,1], index: 2, kind: output, shape index: {1}]  }
   0x1 LB: > { %s265_s10 = sadd.s32 4294967295, %s298_s9   ;;  %p269_p0 = scmp.ge.s32.totalorder %s298_s9, 1  ;;  %s298_s9 = sphi %s316_s9, %s13_s9  }
   0x2   : > { %p114_p1 = scmp.lt.s32.totalorder %s298_s9, 3 }
   0x4   : > { %p115_p2 = pnand %p269_p0, %p114_p1 }
   0x5   : > { %p138_p3 = scmp.lt.s32.totalorder (!%p115_p2), %s265_s10, 1  ;;  %s300_s15 = smov (!%p115_p2), 64   ;;  %vm165_vm0 = vcmask (!%p115_p2), 523264   ;;  %vm179_vm1 = vcmask (!%p115_p2), 7168   ;;  %vm177_vm2 = vcmask (!%p115_p2), 519168  }
   0x6   : > { %118 = sbr.rel (%p115_p2) target bundleno = 305 (0x131), region = 24 }
   0xd   : > { %s348_s10 = smov (!%p138_p3, %s265_s10), 1 }
   0xe   : > { %s270_s11 = sshll.u32 %s348_s10, 2  ;;  %s272_s16 = sshll.u32 %s348_s10, 3 }
   0xf   : > { %s141_s14 = scalar_lea.vmem %s344_s0, %s270_s11  ;;  %s149_s19 = scalar_lea.vmem %s346_s2, %s272_s16 }
  0x10   : > { %v150_v0 = vld [vmem:[%s141_s14] sm:$0xf]  ;;  %s145_s22 = scalar_lea.vmem %s345_s1, %s270_s11 }
  0x11   : > { %v151_v1 = vunpack.c.l.bf16 %v150_v0 }
  0x13   : > { %160 = vrot.lane.b32.xlu0 %v151_v1, %s300_s15  ;;  %v152_v2 = vsub.f32 0.0, %v151_v1 }
  0x15   : > { %v153_v3 = vmul.f32 1.442695, %v152_v2 }
  0x17   : > { %286 = vpow2.f32 %v153_v3 }
  0x21   : > { %v287_v4 = vpop.eup %286 }
  0x22   : > { %v155_v5 = vadd.f32 1.0, %v287_v4 }
  0x24   : > { %288 = vrcp.f32 %v155_v5 }
  0x2e   : > { %v289_v6 = vpop.eup %288 }
  0x2f   : > { %v158_v7 = vmul.f32 %v289_v6, %v151_v1 }
  0x85   : > { %v161_v8 = vpop.permute.xlu0 %160 }
  0x86   : > { %v163_v9 = vmul.f32 %v161_v8, %v158_v7 }
  0x88   : > { %v164_v10 = vand.u32 2147483647, %v163_v9 }
  0x8a   : > { %v166_v11 = vsel %vm165_vm0, %v164_v10, -inf }
  0x8b   : > { %167 = vmax.xlane.f32.xlu0 %v166_v11 }
 0x118   : > { %v168_v12 = vpop.xlane.xlu0 %167 }
 0x119   : > { %v169_v13 = vmax.f32 %v168_v12, 1e-08 }
 0x11b   : > { %v170_v14 = vmul.f32 0.007874016, %v169_v13 }
 0x11d   : > { %290 = vrcp.f32 %v170_v14  ;;  %180 = vst.msk [vmem:[%s149_s19] sm:$0xff] %vm179_vm1, %v170_v14 }
 0x127   : > { %v291_v15 = vpop.eup %290 }
 0x128   : > { %v172_v16 = vmul.f32 %v291_v15, %v163_v9 }
 0x12a   : > { %v276_v17 = vround.rtne.f32 %v172_v16 }
 0x12c   : > { %v273_v18 = vclamps-f32 %v276_v17, 127.0 }
 0x12e   : > { %v176_v19 = vpack.c.bf16 %v273_v18, %v273_v18 }
 0x130   : > { %178 = vst.msk [vmem:[%s145_s22] sm:$0xf] %vm177_vm2, %v176_v19 }
 0x131 PF: > { %s13_s9 = sadd.s32 1, %s298_s9  }
 0x132   : > { %p10_p4 = scmp.ge.s32.totalorder %s13_s9, 4  }
 0x134   :  { %12 = sbr.rel (!%p10_p4) target bundleno = 1 (0x1), region = 66 }

// kernel: quant_llama_model_forward.23
= control target key start
LH: loop header
LB: loop body
LE: loop exit
PB: predicated region body
PF: predicated region fallthrough
CT: control target
= control target key end

     0   :  { %vm25_vm0 = vcmask 261120   ;;  %v146_v0 = vmov 0.0   ;;  %vm147_vm1 = vmmov 0   ;;  %v148_v3 = vmov 0   ;;  %s213_s2 = inlined_call_operand.vmem [shape: s8[32,32], index: 2, kind: input, shape index: {}]   ;;  %s214_s0 = inlined_call_operand.vmem [shape: bf16[16,32], index: 0, kind: input, shape index: {}]   ;;  %s215_s1 = inlined_call_operand.vmem [shape: f32[16,1], index: 1, kind: input, shape index: {}]   ;;  %s216_s3 = inlined_call_operand.vmem [shape: f32[1,32], index: 3, kind: input, shape index: {}]   ;;  %s217_s4 = inlined_call_operand.vmem [shape: f32[16,32], index: 4, kind: input, shape index: {}]   ;;  %s218_s5 = inlined_call_operand.vmem [shape: f32[16,32], index: 5, kind: output, shape index: {}]  }
   0x1   :  { %133 = vmatprep.subr.bf16.mxu0 %v146_v0  ;;  %v32_v1 = vld [vmem:[%s213_s2] sm:$0xff]  ;;  %137 = vmatprep.mubr.msk.bf16.mxu0 %vm147_vm1, %v146_v0  ;;  %26 = vst.msk [vmem:[#allocation2] sm:$0xff] %vm25_vm0, %v146_v0  ;;  %27 = vst.msk [vmem:[#allocation2 + $0x8] sm:$0xff] %vm25_vm0, %v146_v0  ;;  %v95_v6 = vld [vmem:[%s215_s1 + $0x8] sm:$0xff] }
   0x2   :  { %v33_v2 = vunpack.c.l.s8.bf16 %v32_v1  ;;  %144 = vset.pattern.permute.xlu0 %v148_v3  ;;  %v94_v4 = vld [vmem:[%s215_s1] sm:$0xff]  ;;  %v34_v5 = vunpack.c.h.s8.bf16 %v32_v1  ;;  %v118_v25 = vld [vmem:[%s217_s4 + $0x8] sm:$0xff] }
   0x3   :  { %98 = vperm.xlu0 %144, %v94_v4   ;;  %v145_v7 = vld [vmem:[%s214_s0] sm:$0xff]  }
   0x4   :  { %134 = vmatpush3.bf16.msra.mxu0 %v33_v2  ;;  %v129_v17 = vld [vmem:[%s216_s3] ss:$0 sm:$0xff] }
   0x5   :  { %135 = vmatprep.subr.bf16.mxu0 %v146_v0  ;;  %v117_v20 = vld [vmem:[%s217_s4] sm:$0xff] }
   0x7   :  { %103 = vperm.xlu0 %144, %v95_v6  }
   0x8   :  { %136 = vmatpush3.bf16.msra.mxu0 %v34_v5  ;;  %v28_v8 = vld [vmem:[#allocation2] sm:$0xff]  ;;  %v29_v10 = vld [vmem:[#allocation2 + $0x8] sm:$0xff] }
   0xb   :  { %138 = vmatmul.mubr.msk.bf16.vlgmr.msra.gmra.mrb[0].mxu0 %vm25_vm0, %v145_v7 }
  0x82   :  { %v99_v16 = vpop.permute.xlu0 %98 }
  0x86   :  { %v104_v21 = vpop.permute.xlu0 %103 }
  0xde   :  { %v78_v9 = vpop.f32.mrb[0].mxu0 }
  0xdf   :  { %v85_v11 = vadd.f32 %v78_v9, %v28_v8  ;;  %v139_v12 = vpop.f32.mrb[1].mxu0 }
  0xe0   :  { %v81_v13 = vpop.f32.mrb[2].mxu0 }
  0xe1   :  { %87 = vst.msk [vmem:[#allocation2] sm:$0xff] %vm25_vm0, %v85_v11  ;;  %v86_v14 = vadd.f32 %v81_v13, %v29_v10  ;;  %v140_v15 = vpop.f32.mrb[3].mxu0 }
  0xe3   :  { %88 = vst.msk [vmem:[#allocation2 + $0x8] sm:$0xff] %vm25_vm0, %v86_v14 }
  0xe8   :  { %v92_v18 = vld [vmem:[#allocation2] sm:$0xff] }
  0xe9   :  { %v106_v19 = vmul.f32 %v99_v16, %v92_v18 }
  0xea   :  { %v93_v22 = vld [vmem:[#allocation2 + $0x8] sm:$0xff] }
  0xeb   :  { %v115_v23 = vmul.f32 %v129_v17, %v106_v19  ;;  %v107_v24 = vmul.f32 %v104_v21, %v93_v22 }
  0xed   :  { %v119_v26 = vadd.f32 %v117_v20, %v115_v23  ;;  %v116_v27 = vmul.f32 %v129_v17, %v107_v24 }
  0xef   :  { %121 = vst.msk [vmem:[%s218_s5] sm:$0xff] %vm25_vm0, %v119_v26  ;;  %v120_v28 = vadd.f32 %v118_v25, %v116_v27 }
  0xf1   :  { %122 = vst.msk [vmem:[%s218_s5 + $0x8] sm:$0xff] %vm25_vm0, %v120_v28 }

// kernel: quant_llama_model_forward.21
= control target key start
LH: loop header
LB: loop body
LE: loop exit
PB: predicated region body
PF: predicated region fallthrough
CT: control target
= control target key end

     0   :  { %s1576_s24 = smov 0   ;;  %s1578_s25 = smov 0   ;;  %s1792_s0 = inlined_call_operand.vmem [shape: bf16[2,8,32], index: 0, kind: input, shape index: {}]   ;;  %s1793_s1 = inlined_call_operand.vmem [shape: bf16[2,8,16], index: 1, kind: input, shape index: {}]   ;;  %s1794_s2 = inlined_call_operand.vmem [shape: bf16[2,8,16], index: 2, kind: input, shape index: {}]   ;;  %s1795_s3 = inlined_call_operand.vmem [shape: f32[8,8], index: 3, kind: input, shape index: {}, may-alias: {3,5}]   ;;  %s1796_s4 = inlined_call_operand.vmem [shape: f32[8,8], index: 4, kind: input, shape index: {}, may-alias: {4,6}]   ;;  %s1797_s5 = inlined_call_operand.vmem [shape: f32[8,8], index: 5, kind: input, shape index: {}, may-alias: {3,5}]   ;;  %s1798_s6 = inlined_call_operand.vmem [shape: f32[8,8], index: 6, kind: input, shape index: {}, may-alias: {4,6}]   ;;  %s1799_s7 = inlined_call_operand.vmem [shape: bf16[2,8,32], index: 7, kind: output, shape index: {}]  }
   0x1   :  { %s1580_s26 = smov 0  }
   0x2 LB: > { %s36_s27 = sadd.s32 1, %s1515_s25  ;;  %p1332_p0 = scmp.ge.s32.totalorder %s1519_s26, 1  ;;  %s1519_s26 = sphi %s1580_s26, %s17_s26   ;;  %s1515_s25 = sphi %s1578_s25, %s1801_s25   ;;  %s1511_s24 = sphi %s1576_s24, %s1800_s24  }
   0x3   : > { %p38_p1 = scmp.ge.s32.totalorder %s36_s27, 2  ;;  %p318_p2 = scmp.lt.s32.totalorder %s1519_s26, 3 }
   0x5   : > { %s1803_s27 = smov (%p38_p1, %s36_s27), 0  ;;  %p319_p3 = pnand %p1332_p0, %p318_p2 }
   0x6   : > { %p382_p4 = scmp.lt.s32.totalorder (!%p319_p3), %s1511_s24, 1  ;;  %vm438_vm0 = vcmask (!%p319_p3), 64512   ;;  %v1521_v4 = vmov (!%p319_p3), 0.0   ;;  %s1522_s12 = smov (!%p319_p3), 124   ;;  %vm1523_vm1 = vmmov (!%p319_p3), 0   ;;  %v445_v22 = vld [vmem:[%s1797_s5] sm:$0xff] (!%p319_p3) }
   0x7   : > { %322 = sbr.rel (%p319_p3) target bundleno = 1628 (0x65c), region = 48  ;;  %1370 = vmatprep.subr.bf16.mxu0 (!%p319_p3), %v1521_v4  ;;  %439 = vst.msk [vmem:[#allocation4] sm:$0xff] (!%p319_p3), %vm438_vm0, %v1521_v4  ;;  %440 = vst.msk [vmem:[#allocation4 + $0x8] sm:$0xff] (!%p319_p3), %vm438_vm0, %v1521_v4  ;;  %1376 = vmatprep.subr.bf16.mxu1 (!%p319_p3), %v1521_v4  ;;  %s1524_s13 = smov (!%p319_p3), 4   ;;  %vm458_vm2 = vcmask (!%p319_p3), 31744   ;;  %v446_v23 = vld [vmem:[%s1798_s6] sm:$0xff] (!%p319_p3) }
   0x8   : > { %441 = vst.msk [vmem:[#allocation4 + $0x10] sm:$0xff] (!%p319_p3), %vm438_vm0, %v1521_v4  ;;  %442 = vst.msk [vmem:[#allocation4 + $0x18] sm:$0xff] (!%p319_p3), %vm438_vm0, %v1521_v4  ;;  %1372 = vmatprep.mubr.msk.bf16.mxu0 (!%p319_p3), %vm1523_vm1, %v1521_v4  ;;  %1378 = vmatprep.mubr.msk.bf16.mxu1 (!%p319_p3), %vm1523_vm1, %v1521_v4  ;;  %s1525_s14 = smov (!%p319_p3), 116   ;;  %s1526_s15 = smov (!%p319_p3), 108   ;;  %v443_v29 = vld [vmem:[%s1795_s3] sm:$0xff] (!%p319_p3)  ;;  %vm429_vm3 = vcmask (!%p319_p3), 7168  }
   0x9   : > { %s1527_s16 = smov (!%p319_p3), 100   ;;  %v444_v30 = vld [vmem:[%s1796_s4] sm:$0xff] (!%p319_p3)  ;;  %s1528_s29 = smov (!%p319_p3), 8   ;;  %v1529_v42 = vmov (!%p319_p3), -inf   ;;  %434 = vst.msk [vmem:[#allocation3] sm:$0xff] (!%p319_p3), %vm429_vm3, %v1521_v4  ;;  %435 = vst.msk [vmem:[#allocation3 + $0x8] sm:$0xff] (!%p319_p3), %vm429_vm3, %v1521_v4 }
   0xa   : > { %430 = vst.msk [vmem:[#allocation2] sm:$0xff] (!%p319_p3), %vm429_vm3, %v1529_v42  ;;  %431 = vst.msk [vmem:[#allocation2 + $0x8] sm:$0xff] (!%p319_p3), %vm429_vm3, %v1529_v42  ;;  %s1530_s30 = smov (!%p319_p3), 16   ;;  %s1533_s9 = smov (!%p319_p3), 120   ;;  %vm567_vm4 = vcmask (!%p319_p3), 1043456   ;;  %vm1126_vm5 = vcmask (!%p319_p3), 60416  }
   0xb   : > { %432 = vst.msk [vmem:[#allocation2 + $0x10] sm:$0xff] (!%p319_p3), %vm429_vm3, %v1529_v42  ;;  %433 = vst.msk [vmem:[#allocation2 + $0x18] sm:$0xff] (!%p319_p3), %vm429_vm3, %v1529_v42  ;;  %vm1144_vm6 = vcmask (!%p319_p3), 126016   ;;  %vm1162_vm7 = vcmask (!%p319_p3), 191616   ;;  %vm1180_vm8 = vcmask (!%p319_p3), 257216  }
   0xc   : > { %436 = vst.msk [vmem:[#allocation3 + $0x10] sm:$0xff] (!%p319_p3), %vm429_vm3, %v1521_v4  ;;  %437 = vst.msk [vmem:[#allocation3 + $0x18] sm:$0xff] (!%p319_p3), %vm429_vm3, %v1521_v4 }
   0xe   : > { %s1805_s24 = smov (!%p382_p4, %s1511_s24), 1 }
   0xf   : > { %s1594_s28 = sshll.u32 %s1805_s24, 2 }
  0x10   : > { %s398_s8 = scalar_lea.vmem %s1793_s1, %s1594_s28  ;;  %s388_s11 = scalar_lea.vmem %s1792_s0, %s1594_s28 }
  0x11   : > { %v447_v0 = vld [vmem:[%s398_s8] sm:$0xf]  ;;  %s1771_s17 = scalar_lea.vmem %s1799_s7, %s1594_s28 }
  0x12   : > { %v465_v1 = vld [vmem:[%s388_s11] sm:$0xf]  ;;  %v448_v2 = vunpack.c.l.bf16 %v447_v0 }
  0x13   : > { %v466_v3 = vunpack.c.l.bf16 %v465_v1  ;;  %v768_v7 = vld [vmem:[%s398_s8] sm:$0xf]  ;;  %s1531_s8 = smov 24  }
  0x14   : > { %v449_v5 = vsub.f32 0.0, %v448_v2  ;;  %v614_v8 = vld [vmem:[%s388_s11] sm:$0xf]  ;;  %v1618_v9 = vunpack.c.l.bf16 %v768_v7  ;;  %v460_v26 = vmul.f32 %v448_v2, %v445_v22 }
  0x15   : > { %v467_v6 = vsub.f32 0.0, %v466_v3  ;;  %v793_v10 = vld [vmem:[%s388_s11] sm:$0xf]  ;;  %v1620_v11 = vunpack.c.l.bf16 %v614_v8  ;;  %v477_v33 = vmul.f32 %v466_v3, %v443_v29 }
  0x16   : > { %451 = vrot.lane.b32.xlu0 %v449_v5, %s1522_s12  ;;  %v1622_v12 = vunpack.c.l.bf16 %v793_v10  ;;  %v960_v13 = vld [vmem:[%s388_s11] sm:$0xf]  ;;  %v770_v16 = vsub.f32 0.0, %v1618_v9 }
  0x17   : > { %469 = vrot.lane.b32.xlu1 %v467_v6, %s1522_s12  ;;  %v1457_v14 = vpack.i.bf16 %v1618_v9, %v1620_v11  ;;  %v616_v15 = vsub.f32 0.0, %v1620_v11  ;;  %v1629_v18 = vunpack.c.l.bf16 %v960_v13 }
  0x18   : > { %v795_v17 = vsub.f32 0.0, %v1622_v12 }
  0x19   : > { %v962_v19 = vsub.f32 0.0, %v1629_v18 }
  0x1a   : > { %455 = vrot.lane.b32.xlu0 %v448_v2, %s1524_s13  ;;  %v1532_v2 = vmov 0  }
  0x1b   : > { %473 = vrot.lane.b32.xlu1 %v466_v3, %s1524_s13  ;;  %1462 = vset.pattern.permute.xlu0 %v1532_v2  ;;  %s1534_s13 = smov 112  }
  0x1c   : > { %1463 = vset.pattern.permute.xlu1 %v1532_v2 }
  0x1e   : > { %618 = vrot.lane.b32.xlu0 %v616_v15, %s1525_s14 }
  0x1f   : > { %1458 = vrot.lane.b32.xlu1 %v1457_v14, %s1522_s12  ;;  %s1701_s12 = scalar_lea.vmem %s1794_s2, %s1594_s28 }
  0x22   : > { %772 = vrot.lane.b32.xlu0 %v770_v16, %s1525_s14 }
  0x23   : > { %797 = vrot.lane.b32.xlu1 %v795_v17, %s1526_s15  ;;  %v1684_v17 = vld [vmem:[#allocation2] sm:$0xff] }
  0x26   : > { %801 = vrot.lane.b32.xlu0 %v1622_v12, %s1525_s14  ;;  %s1535_s14 = smov 104  }
  0x27   : > { %964 = vrot.lane.b32.xlu1 %v962_v19, %s1527_s16 }
  0x2a   : > { %968 = vrot.lane.b32.xlu0 %v1629_v18, %s1526_s15 }
  0x2e   : > { %627 = vrot.lane.b32.xlu0 %v443_v29, %s1528_s29 }
  0x32   : > { %781 = vrot.lane.b32.xlu0 %v445_v22, %s1528_s29 }
  0x88   : > { %v452_v20 = vpop.permute.xlu0 %451 }
  0x89   : > { %v470_v21 = vpop.permute.xlu1 %469 }
  0x8c   : > { %v456_v24 = vpop.permute.xlu0 %455 }
  0x8d   : > { %v474_v25 = vpop.permute.xlu1 %473  ;;  %v459_v27 = vsel %vm458_vm2, %v452_v20, %v456_v24 }
  0x8e   : > { %v461_v28 = vmul.f32 %v459_v27, %v446_v23  ;;  %v476_v31 = vsel %vm458_vm2, %v470_v21, %v474_v25 }
  0x8f   : > { %v478_v34 = vmul.f32 %v476_v31, %v444_v30 }
  0x90   : > { %v462_v32 = vadd.f32 %v461_v28, %v460_v26  ;;  %v619_v40 = vpop.permute.xlu0 %618  ;;  %v464_v28 = vld [vmem:[%s1701_s12] sm:$0xf] }
  0x91   : > { %v479_v37 = vadd.f32 %v478_v34, %v477_v33  ;;  %v1459_v39 = vpop.permute.xlu1 %1458 }
  0x92   : > { %v463_v35 = vpack.c.bf16 %v462_v32, %v462_v32  ;;  %v1460_v41 = vunpack.i.l.bf16 %v1459_v39  ;;  %v1461_v43 = vunpack.i.h.bf16 %v1459_v39 }
  0x93   : > { %v480_v38 = vpack.c.bf16 %v479_v37, %v479_v37 }
  0x94   : > { %v1649_v36 = vsel %vm438_vm0, %v463_v35, 0  ;;  %v625_v44 = vsel %vm458_vm2, %v619_v40, %v1460_v41  ;;  %v773_v45 = vpop.permute.xlu0 %772 }
  0x95   : > { %1371 = vmatpush3.bf16.xpose.msra.mxu0 %v1649_v36  ;;  %v631_v46 = vmul.f32 %v625_v44, %v444_v30  ;;  %v779_v47 = vsel %vm458_vm2, %v773_v45, %v1461_v43  ;;  %v798_v50 = vpop.permute.xlu1 %797 }
  0x96   : > { %1388 = vmatprep.subr.bf16.mxu0 %v1521_v4  ;;  %v785_v48 = vmul.f32 %v779_v47, %v446_v23 }
  0x97   : > { %633 = vrot.lane.b32.xlu0 %v631_v46, %s1528_s29 }
  0x98   : > { %v802_v49 = vpop.permute.xlu0 %801 }
  0x99   : > { %v804_v51 = vsel %vm458_vm2, %v798_v50, %v802_v49  ;;  %v965_v54 = vpop.permute.xlu1 %964 }
  0x9a   : > { %v809_v52 = vmul.f32 %v804_v51, %v444_v30 }
  0x9b   : > { %787 = vrot.lane.b32.xlu0 %v785_v48, %s1528_s29 }
  0x9c   : > { %1373 = vmatmul.mubr.msk.bf16.vlgmr.msra.gmra.mrb[0].mxu0 %vm438_vm0, %v480_v38  ;;  %v969_v53 = vpop.permute.xlu0 %968 }
  0x9d   : > { %1390 = vmatprep.mubr.msk.bf16.mxu0 %vm1523_vm1, %v1521_v4  ;;  %v971_v55 = vsel %vm458_vm2, %v965_v54, %v969_v53 }
  0x9e   : > { %v976_v56 = vmul.f32 %v971_v55, %v444_v30 }
  0x9f   : > { %805 = vrot.lane.b32.xlu0 %v443_v29, %s1530_s30 }
  0xa0   : > { %v628_v3 = vpop.permute.xlu0 %627 }
  0xa1   : > { %v630_v6 = vmul.f32 %v628_v3, %v1620_v11 }
  0xa3   : > { %811 = vrot.lane.b32.xlu0 %v809_v52, %s1530_s30 }
  0xa4   : > { %v782_v5 = vpop.permute.xlu0 %781 }
  0xa5   : > { %v784_v16 = vmul.f32 %v782_v5, %v1618_v9 }
  0xa7   : > { %972 = vrot.lane.b32.xlu0 %v443_v29, %s1531_s8  ;;  %v569_v29 = vsel %vm567_vm4, %v464_v28, 0 }
  0xa8   : > { %1377 = vmatpush3.bf16.msra.mxu1 %v569_v29  ;;  %1389 = vmatpush3.bf16.msra.mxu0 %v569_v29 }
  0xa9   : > { %1382 = vmatprep.subr.bf16.mxu1 %v1521_v4  ;;  %1400 = vmatprep.subr.bf16.mxu0 %v1521_v4 }
  0xab   : > { %978 = vrot.lane.b32.xlu0 %v976_v56, %s1531_s8 }
 0x109   : > { %v634_v7 = vpop.permute.xlu0 %633 }
 0x10a   : > { %v636_v8 = vadd.f32 %v634_v7, %v630_v6 }
 0x10c   : > { %v637_v10 = vpack.c.bf16 %v636_v8, %v636_v8  ;;  %v1730_v8 = vld [vmem:[#allocation2 + $0x8] sm:$0xff] }
 0x10d   : > { %v788_v13 = vpop.permute.xlu0 %787 }
 0x10e   : > { %v790_v20 = vadd.f32 %v788_v13, %v784_v16 }
 0x110   : > { %v791_v9 = vpack.c.bf16 %v790_v20, %v790_v20 }
 0x111   : > { %v806_v14 = vpop.permute.xlu0 %805 }
 0x112   : > { %v808_v21 = vmul.f32 %v806_v14, %v1622_v12 }
 0x115   : > { %v812_v15 = vpop.permute.xlu0 %811 }
 0x116   : > { %v814_v24 = vadd.f32 %v812_v15, %v808_v21  ;;  %v873_v15 = vld [vmem:[#allocation2 + $0x10] sm:$0xff]  ;;  %v1034_v21 = vld [vmem:[#allocation2 + $0x18] sm:$0xff] }
 0x118   : > { %v815_v12 = vpack.c.bf16 %v814_v24, %v814_v24  ;;  %v1464_v24 = vld [vmem:[%s1701_s12] ss:$0 sps:$4 sm:$0xff]  }
 0x119   : > { %v973_v19 = vpop.permute.xlu0 %972 }
 0x11a   : > { %v975_v25 = vmul.f32 %v973_v19, %v1629_v18 }
 0x11d   : > { %v979_v26 = vpop.permute.xlu0 %978 }
 0x11e   : > { %v981_v27 = vadd.f32 %v979_v26, %v975_v25 }
 0x120   : > { %v982_v18 = vpack.c.bf16 %v981_v27, %v981_v27 }
 0x16f   : > { %v522_v57 = vpop.f32.mrb[0].mxu0 }
 0x170   : > { %v528_v58 = vmul.f32 0.35355338, %v522_v57  ;;  %v1374_v59 = vpop.f32.mrb[1].mxu0 }
 0x171   : > { %v525_v60 = vpop.f32.mrb[2].mxu0 }
 0x172   : > { %v529_v61 = vmul.f32 0.02, %v528_v58  ;;  %v1375_v62 = vpop.f32.mrb[3].mxu0 }
 0x174   : > { %1465 = vtanh.f32 %v529_v61 }
 0x17e   : > { %v1466_v63 = vpop.eup %1465 }
 0x17f   : > { %v531_v0 = vmul.f32 50.0, %v1466_v63 }
 0x181   : > { %v533_v1 = vsel %vm438_vm0, %v531_v0, -inf }
 0x182   : > { %534 = vmax.xlane.f32.xlu1 %v533_v1 }
 0x193   : > { %639 = vrot.lane.b32.xlu1 %v637_v10, %s1533_s9 }
 0x20f   : > { %v535_v22 = vpop.xlane.xlu1 %534 }
 0x210   : > { %v1688_v11 = vmax.f32 %v1684_v17, %v535_v22 }
 0x212   : > { %v537_v23 = vsub.f32 %v1684_v17, %v1688_v11  ;;  %613 = vst.msk [vmem:[#allocation2] sm:$0xff] %vm429_vm3, %v1688_v11  ;;  %542 = vperm.xlu0 %1462, %v1688_v11  }
 0x213   : > { %v640_v37 = vpop.permute.xlu1 %639 }
 0x216   : > { %820 = vrot.lane.b32.xlu0 %v791_v9, %s1533_s9 }
 0x21a   : > { %817 = vrot.lane.b32.xlu0 %v815_v12, %s1534_s13 }
 0x21e   : > { %984 = vrot.lane.b32.xlu0 %v982_v18, %s1535_s14 }
 0x291   : > { %v543_v30 = vpop.permute.xlu0 %542 }
 0x292   : > { %v545_v31 = vsub.f32 %v531_v0, %v543_v30 }
 0x294   : > { %v546_v32 = vmul.f32 1.442695, %v545_v31 }
 0x295   : > { %v821_v35 = vpop.permute.xlu0 %820 }
 0x296   : > { %1467 = vpow2.f32 %v546_v32  ;;  %v826_v38 = vsel %vm438_vm0, %v821_v35, 0 }
 0x299   : > { %v818_v39 = vpop.permute.xlu0 %817 }
 0x2a0   : > { %v1707_v33 = vpop.eup %1467 }
 0x2a1   : > { %v563_v34 = vpack.c.bf16 %v1707_v33, %v1707_v33  ;;  %v550_v26 = vsel %vm438_vm0, %v1707_v33, 0.0  ;;  %v538_v33 = vmul.f32 1.442695, %v537_v23 }
 0x2a3   : > { %1379 = vmatmul.mubr.msk.bf16.vlgmr.msra.gmra.mrb[0].mxu1 %vm438_vm0, %v563_v34 }
 0x2a4   : > { %1383 = vmatpush3.bf16.xpose.msra.mxu1 %v1649_v36  ;;  %1384 = vmatprep.mubr.msk.bf16.mxu1 %vm1523_vm1, %v1521_v4  ;;  %v985_v36 = vpop.permute.xlu0 %984 }
 0x2a5   : > { %1394 = vmatprep.subr.bf16.mxu1 %v1521_v4 }
 0x2ab   : > { %1385 = vmatmul.mubr.msk.bf16.vlgmr.msra.gmra.mrb[4].mxu1 %vm438_vm0, %v640_v37 }
 0x2ac   : > { %1395 = vmatpush3.bf16.xpose.msra.mxu1 %v826_v38  ;;  %1396 = vmatprep.mubr.msk.bf16.mxu1 %vm1523_vm1, %v1521_v4 }
 0x2ad   : > { %1406 = vmatprep.subr.bf16.mxu1 %v1521_v4 }
 0x2b3   : > { %1397 = vmatmul.mubr.msk.bf16.vlgmr.msra.gmra.mrb[8].mxu1 %vm438_vm0, %v818_v39 }
 0x2b4   : > { %1407 = vmatpush3.bf16.xpose.msra.mxu1 %v826_v38  ;;  %1408 = vmatprep.mubr.msk.bf16.mxu1 %vm1523_vm1, %v1521_v4 }
 0x2bb   : > { %1409 = vmatmul.mubr.msk.bf16.vlgmr.msra.gmra.mrb[12].mxu1 %vm438_vm0, %v985_v36 }
 0x376   : > { %v1725_v40 = vpop.f32.mrb[0].mxu1 }
 0x377   : > { %v1380_v41 = vpop.f32.mrb[1].mxu1 }
 0x378   : > { %v608_v42 = vpop.f32.mrb[2].mxu1 }
 0x379   : > { %v1381_v43 = vpop.f32.mrb[3].mxu1 }
 0x37e   : > { %v678_v44 = vpop.f32.mrb[4].mxu1 }
 0x37f   : > { %v684_v45 = vmul.f32 0.35355338, %v678_v44  ;;  %v1386_v46 = vpop.f32.mrb[5].mxu1 }
 0x380   : > { %v681_v47 = vpop.f32.mrb[6].mxu1 }
 0x381   : > { %v685_v48 = vmul.f32 0.02, %v684_v45  ;;  %v1387_v49 = vpop.f32.mrb[7].mxu1 }
 0x383   : > { %1469 = vtanh.f32 %v685_v48 }
 0x386   : > { %v862_v50 = vpop.f32.mrb[8].mxu1 }
 0x387   : > { %v868_v51 = vmul.f32 0.35355338, %v862_v50  ;;  %v1398_v52 = vpop.f32.mrb[9].mxu1  ;;  %v548_v50 = vld [vmem:[#allocation3] sm:$0xff] }
 0x388   : > { %v865_v53 = vpop.f32.mrb[10].mxu1 }
 0x389   : > { %v869_v54 = vmul.f32 0.02, %v868_v51  ;;  %v1399_v55 = vpop.f32.mrb[11].mxu1 }
 0x38a   : > { %v706_v55 = vld [vmem:[#allocation3 + $0x8] sm:$0xff] }
 0x38b   : > { %1471 = vtanh.f32 %v869_v54 }
 0x38d   : > { %v1470_v56 = vpop.eup %1469 }
 0x38e   : > { %v1023_v57 = vpop.f32.mrb[12].mxu1  ;;  %v687_v58 = vmul.f32 50.0, %v1470_v56 }
 0x38f   : > { %v1029_v59 = vmul.f32 0.35355338, %v1023_v57  ;;  %v1410_v60 = vpop.f32.mrb[13].mxu1 }
 0x390   : > { %v1026_v61 = vpop.f32.mrb[14].mxu1  ;;  %v690_v62 = vsel %vm438_vm0, %v687_v58, -inf }
 0x391   : > { %v1030_v63 = vmul.f32 0.02, %v1029_v59  ;;  %691 = vmax.xlane.f32.xlu1 %v690_v62  ;;  %v1411_v0 = vpop.f32.mrb[15].mxu1  ;;  %v556_v59 = vld [vmem:[#allocation4] sm:$0xff]  ;;  %v890_v61 = vld [vmem:[#allocation3 + $0x10] sm:$0xff] }
 0x393   : > { %1473 = vtanh.f32 %v1030_v63 }
 0x395   : > { %v1472_v1 = vpop.eup %1471 }
 0x396   : > { %v871_v2 = vmul.f32 50.0, %v1472_v1 }
 0x398   : > { %v874_v3 = vsel %vm438_vm0, %v871_v2, -inf }
 0x399   : > { %875 = vmax.xlane.f32.xlu0 %v874_v3 }
 0x39d   : > { %v1474_v5 = vpop.eup %1473 }
 0x39e   : > { %v1032_v6 = vmul.f32 50.0, %v1474_v5  ;;  %v1051_v5 = vld [vmem:[#allocation3 + $0x18] sm:$0xff] }
 0x3a0   : > { %v1035_v7 = vsel %vm438_vm0, %v1032_v6, -inf }
 0x3a1   : > { %1036 = vmax.xlane.f32.xlu0 %v1035_v7 }
 0x41e   : > { %v692_v10 = vpop.xlane.xlu1 %691 }
 0x41f   : > { %v1733_v13 = vmax.f32 %v1730_v8, %v692_v10 }
 0x421   : > { %v694_v14 = vsub.f32 %v1730_v8, %v1733_v13  ;;  %767 = vst.msk [vmem:[#allocation2 + $0x8] sm:$0xff] %vm429_vm3, %v1733_v13  ;;  %699 = vperm.xlu1 %1463, %v1733_v13  }
 0x423   : > { %v695_v48 = vmul.f32 1.442695, %v694_v14 }
 0x426   : > { %v876_v16 = vpop.xlane.xlu0 %875 }
 0x427   : > { %v877_v19 = vmax.f32 %v873_v15, %v876_v16 }
 0x429   : > { %v878_v20 = vsub.f32 %v873_v15, %v877_v19  ;;  %959 = vst.msk [vmem:[#allocation2 + $0x10] sm:$0xff] %vm429_vm3, %v877_v19  ;;  %883 = vperm.xlu0 %1462, %v877_v19  }
 0x42b   : > { %v879_v42 = vmul.f32 1.442695, %v878_v20 }
 0x42e   : > { %v1037_v22 = vpop.xlane.xlu0 %1036 }
 0x42f   : > { %v1038_v9 = vmax.f32 %v1034_v21, %v1037_v22 }
 0x431   : > { %v1039_v25 = vsub.f32 %v1034_v21, %v1038_v9  ;;  %1112 = vst.msk [vmem:[#allocation2 + $0x18] sm:$0xff] %vm429_vm3, %v1038_v9  ;;  %1044 = vperm.xlu1 %1463, %v1038_v9   ;;  %v714_v21 = vld [vmem:[#allocation4 + $0x8] sm:$0xff] }
 0x433   : > { %v1040_v17 = vmul.f32 1.442695, %v1039_v25 }
 0x435   : > { %909 = vrot.lane.b32.xlu1 %v1464_v24, %s1533_s9 }
 0x448   : > { %551 = vadd.xlane.f32.xlu0 %v550_v26 }
 0x4a0   : > { %v700_v12 = vpop.permute.xlu1 %699 }
 0x4a1   : > { %v702_v27 = vsub.f32 %v687_v58, %v700_v12 }
 0x4a3   : > { %v703_v28 = vmul.f32 1.442695, %v702_v27  ;;  %v898_v27 = vld [vmem:[#allocation4 + $0x10] sm:$0xff] }
 0x4a5   : > { %1475 = vpow2.f32 %v703_v28 }
 0x4a8   : > { %v884_v29 = vpop.permute.xlu0 %883 }
 0x4a9   : > { %v886_v18 = vsub.f32 %v871_v2, %v884_v29 }
 0x4ab   : > { %v887_v30 = vmul.f32 1.442695, %v886_v18 }
 0x4ad   : > { %1477 = vpow2.f32 %v887_v30 }
 0x4af   : > { %v1476_v31 = vpop.eup %1475 }
 0x4b0   : > { %v1045_v32 = vpop.permute.xlu1 %1044  ;;  %v708_v34 = vsel %vm438_vm0, %v1476_v31, 0.0  ;;  %v721_v35 = vpack.c.bf16 %v1476_v31, %v1476_v31 }
 0x4b1   : > { %v1047_v37 = vsub.f32 %v1032_v6, %v1045_v32  ;;  %709 = vadd.xlane.f32.xlu1 %v708_v34 }
 0x4b2   : > { %1391 = vmatmul.mubr.msk.bf16.vlgmr.msra.gmra.mrb[4].mxu0 %vm438_vm0, %v721_v35  ;;  %v1059_v35 = vld [vmem:[#allocation4 + $0x18] sm:$0xff] }
 0x4b3   : > { %v1048_v38 = vmul.f32 1.442695, %v1047_v37  ;;  %1402 = vmatprep.mubr.msk.bf16.mxu0 %vm1523_vm1, %v1521_v4 }
 0x4b4   : > { %v910_v39 = vpop.permute.xlu1 %909 }
 0x4b5   : > { %1479 = vpow2.f32 %v1048_v38  ;;  %v915_v36 = vsel %vm567_vm4, %v910_v39, 0 }
 0x4b6   : > { %1401 = vmatpush3.bf16.msra.mxu0 %v915_v36  ;;  %1481 = vpow2.f32 %v538_v33 }
 0x4b7   : > { %v1478_v41 = vpop.eup %1477  ;;  %1412 = vmatprep.subr.bf16.mxu0 %v1521_v4  ;;  %1483 = vpow2.f32 %v879_v42 }
 0x4b8   : > { %v892_v43 = vsel %vm438_vm0, %v1478_v41, 0.0  ;;  %v905_v44 = vpack.c.bf16 %v1478_v41, %v1478_v41  ;;  %1485 = vpow2.f32 %v1040_v17 }
 0x4b9   : > { %893 = vadd.xlane.f32.xlu0 %v892_v43  ;;  %1487 = vpow2.f32 %v695_v48 }
 0x4ba   : > { %1403 = vmatmul.mubr.msk.bf16.vlgmr.msra.gmra.mrb[8].mxu0 %vm438_vm0, %v905_v44 }
 0x4bb   : > { %1413 = vmatpush3.bf16.msra.mxu0 %v915_v36  ;;  %1414 = vmatprep.mubr.msk.bf16.mxu0 %vm1523_vm1, %v1521_v4 }
 0x4bf   : > { %v1480_v11 = vpop.eup %1479 }
 0x4c0   : > { %v1053_v23 = vsel %vm438_vm0, %v1480_v11, 0.0  ;;  %v1066_v45 = vpack.c.bf16 %v1480_v11, %v1480_v11  ;;  %v1482_v46 = vpop.eup %1481 }
 0x4c1   : > { %1054 = vadd.xlane.f32.xlu0 %v1053_v23  ;;  %v1484_v47 = vpop.eup %1483  ;;  %v549_v51 = vmul.f32 %v1482_v46, %v548_v50 }
 0x4c2   : > { %559 = vperm.xlu1 %1463, %v1482_v46   ;;  %1415 = vmatmul.mubr.msk.bf16.vlgmr.msra.gmra.mrb[12].mxu0 %vm438_vm0, %v1066_v45  ;;  %v1486_v49 = vpop.eup %1485  ;;  %v891_v0 = vmul.f32 %v1484_v47, %v890_v61 }
 0x4c3   : > { %v1488_v4 = vpop.eup %1487  ;;  %v1052_v6 = vmul.f32 %v1486_v49, %v1051_v5 }
 0x4c4   : > { %v707_v56 = vmul.f32 %v1488_v4, %v706_v55 }
 0x4c6   : > { %901 = vperm.xlu1 %1463, %v1484_v47  }
 0x4ca   : > { %1062 = vperm.xlu1 %1463, %v1486_v49  }
 0x4d5   : > { %v552_v52 = vpop.xlane.xlu0 %551 }
 0x4d6   : > { %v553_v53 = vadd.f32 %v552_v52, %v549_v51 }
 0x4d7   : > { %717 = vperm.xlu0 %1462, %v1488_v4  }
 0x4d8   : > { %555 = vst.msk [vmem:[#allocation3] sm:$0xff] %vm429_vm3, %v553_v53 }
 0x4df   : > { %v1117_v54 = vld [vmem:[#allocation3] sm:$0xff] }
 0x4e0   : > { %1120 = vperm.xlu0 %1462, %v1117_v54  }
 0x53e   : > { %v710_v57 = vpop.xlane.xlu1 %709 }
 0x53f   : > { %v711_v58 = vadd.f32 %v710_v57, %v707_v56 }
 0x541   : > { %712 = vst.msk [vmem:[#allocation3 + $0x8] sm:$0xff] %vm429_vm3, %v711_v58 }
 0x542   : > { %v560_v60 = vpop.permute.xlu1 %559 }
 0x543   : > { %v562_v62 = vmul.f32 %v560_v60, %v556_v59 }
 0x545   : > { %v611_v63 = vadd.f32 %v1725_v40, %v562_v62 }
 0x546   : > { %v894_v1 = vpop.xlane.xlu0 %893  ;;  %v902_v28 = vpop.permute.xlu1 %901 }
 0x547   : > { %612 = vst.msk [vmem:[#allocation4] sm:$0xff] %vm438_vm0, %v611_v63  ;;  %v895_v2 = vadd.f32 %v894_v1, %v891_v0  ;;  %v904_v29 = vmul.f32 %v902_v28, %v898_v27 }
 0x548   : > { %v1129_v3 = vld [vmem:[#allocation3 + $0x8] sm:$0xff] }
 0x549   : > { %896 = vst.msk [vmem:[#allocation3 + $0x10] sm:$0xff] %vm429_vm3, %v895_v2  ;;  %1132 = vperm.xlu1 %1463, %v1129_v3  }
 0x54a   : > { %v1063_v37 = vpop.permute.xlu1 %1062 }
 0x54b   : > { %v1065_v33 = vmul.f32 %v1063_v37, %v1059_v35 }
 0x54e   : > { %v1055_v7 = vpop.xlane.xlu0 %1054  ;;  %v1116_v16 = vld [vmem:[#allocation4] sm:$0xff] }
 0x54f   : > { %v1056_v8 = vadd.f32 %v1055_v7, %v1052_v6 }
 0x550   : > { %v1147_v10 = vld [vmem:[#allocation3 + $0x10] sm:$0xff] }
 0x551   : > { %1057 = vst.msk [vmem:[#allocation3 + $0x18] sm:$0xff] %vm429_vm3, %v1056_v8  ;;  %1150 = vperm.xlu1 %1463, %v1147_v10  }
 0x556   : > { %v718_v40 = vpop.permute.xlu0 %717 }
 0x557   : > { %v720_v22 = vmul.f32 %v718_v40, %v714_v21 }
 0x558   : > { %v1165_v13 = vld [vmem:[#allocation3 + $0x18] sm:$0xff] }
 0x559   : > { %1168 = vperm.xlu1 %1463, %v1165_v13  }
 0x55f   : > { %v1121_v14 = vpop.permute.xlu0 %1120 }
 0x560   : > { %1489 = vrcp.f32 %v1121_v14 }
 0x56a   : > { %v1490_v15 = vpop.eup %1489 }
 0x56b   : > { %v1124_v19 = vmul.f32 %v1490_v15, %v1116_v16 }
 0x56d   : > { %v1125_v20 = vpack.c.bf16 %v1124_v19, %v1124_v19 }
 0x56f   : > { %1127 = vst.msk [vmem:[%s1771_s17] sm:$0xf] %vm1126_vm5, %v1125_v20 }
 0x585   : > { %v759_v9 = vpop.f32.mrb[4].mxu0 }
 0x586   : > { %v765_v24 = vadd.f32 %v759_v9, %v720_v22  ;;  %v1392_v25 = vpop.f32.mrb[5].mxu0 }
 0x587   : > { %v762_v26 = vpop.f32.mrb[6].mxu0 }
 0x588   : > { %766 = vst.msk [vmem:[#allocation4 + $0x8] sm:$0xff] %vm438_vm0, %v765_v24  ;;  %v1393_v12 = vpop.f32.mrb[7].mxu0 }
 0x58d   : > { %v951_v18 = vpop.f32.mrb[8].mxu0 }
 0x58e   : > { %v957_v30 = vadd.f32 %v951_v18, %v904_v29  ;;  %v1404_v31 = vpop.f32.mrb[9].mxu0 }
 0x58f   : > { %v954_v32 = vpop.f32.mrb[10].mxu0  ;;  %v1128_v11 = vld [vmem:[#allocation4 + $0x8] sm:$0xff] }
 0x590   : > { %958 = vst.msk [vmem:[#allocation4 + $0x10] sm:$0xff] %vm438_vm0, %v957_v30  ;;  %v1405_v34 = vpop.f32.mrb[11].mxu0 }
 0x595   : > { %v1104_v38 = vpop.f32.mrb[12].mxu0 }
 0x596   : > { %v1110_v39 = vadd.f32 %v1104_v38, %v1065_v33  ;;  %v1416_v36 = vpop.f32.mrb[13].mxu0 }
 0x597   : > { %v1107_v41 = vpop.f32.mrb[14].mxu0  ;;  %v1146_v48 = vld [vmem:[#allocation4 + $0x10] sm:$0xff] }
 0x598   : > { %1111 = vst.msk [vmem:[#allocation4 + $0x18] sm:$0xff] %vm438_vm0, %v1110_v39  ;;  %v1417_v42 = vpop.f32.mrb[15].mxu0 }
 0x59f   : > { %v1164_v52 = vld [vmem:[#allocation4 + $0x18] sm:$0xff] }
 0x5c8   : > { %v1133_v43 = vpop.permute.xlu1 %1132 }
 0x5c9   : > { %1491 = vrcp.f32 %v1133_v43 }
 0x5d0   : > { %v1151_v44 = vpop.permute.xlu1 %1150 }
 0x5d1   : > { %1493 = vrcp.f32 %v1151_v44 }
 0x5d3   : > { %v1492_v17 = vpop.eup %1491 }
 0x5d4   : > { %v1136_v23 = vmul.f32 %v1492_v17, %v1128_v11 }
 0x5d6   : > { %v1351_v45 = vpack.c.bf16 %v1136_v23, %v1136_v23 }
 0x5d8   : > { %v1169_v46 = vpop.permute.xlu1 %1168  ;;  %1141 = vrot.lane.b32.xlu0 %v1351_v45, %s1528_s29 }
 0x5d9   : > { %1495 = vrcp.f32 %v1169_v46 }
 0x5db   : > { %v1494_v47 = vpop.eup %1493 }
 0x5dc   : > { %v1154_v49 = vmul.f32 %v1494_v47, %v1146_v48 }
 0x5de   : > { %v1352_v50 = vpack.c.bf16 %v1154_v49, %v1154_v49 }
 0x5e0   : > { %1159 = vrot.lane.b32.xlu0 %v1352_v50, %s1530_s30 }
 0x5e3   : > { %v1496_v51 = vpop.eup %1495 }
 0x5e4   : > { %v1172_v4 = vmul.f32 %v1496_v51, %v1164_v52 }
 0x5e6   : > { %v1353_v53 = vpack.c.bf16 %v1172_v4, %v1172_v4 }
 0x5e8   : > { %1177 = vrot.lane.b32.xlu0 %v1353_v53, %s1531_s8 }
 0x64a   : > { %v1142_v54 = vpop.permute.xlu0 %1141 }
 0x64b   : > { %1145 = vst.msk [vmem:[%s1771_s17] sm:$0xf] %vm1144_vm6, %v1142_v54 }
 0x652   : > { %v1160_v55 = vpop.permute.xlu0 %1159 }
 0x653   : > { %1163 = vst.msk [vmem:[%s1771_s17] sm:$0xf] %vm1162_vm7, %v1160_v55 }
 0x65a   : > { %v1178_v56 = vpop.permute.xlu0 %1177 }
 0x65b   : > { %1181 = vst.msk [vmem:[%s1771_s17] sm:$0xf] %vm1180_vm8, %v1178_v56 }
 0x65c PF: > { %s17_s26 = sadd.s32 1, %s1519_s26   ;;  %s1800_s24 = smov %s1515_s25 }
 0x65d   : > { %p14_p5 = scmp.ge.s32.totalorder %s17_s26, 4   ;;  %s1801_s25 = smov %s1803_s27 }
 0x65f   :  { %16 = sbr.rel (!%p14_p5) target bundleno = 2 (0x2), region = 107 }

// kernel: quant_llama_model_forward.37
= control target key start
LH: loop header
LB: loop body
LE: loop exit
PB: predicated region body
PF: predicated region fallthrough
CT: control target
= control target key end

     0   :  { %7 = vsyncpa [#allocation3], 0  ;;  %s469_s0 = inlined_call_operand.vmem [shape: f32[16,32], index: 0, kind: input, shape index: {}]   ;;  %s470_s1 = inlined_call_operand.vmem [shape: f32[1,32], index: 1, kind: input, shape index: {}]   ;;  %s471_s2 = inlined_call_operand.hbm [shape: f32[16,32], index: 2, kind: output, shape index: {}]  }
   0x1   :  { %9 = vsyncpa [#allocation3 + $0x1], 0  ;;  %s364_s9 = smov 0   ;;  %s366_s10 = smov 0  }
   0x2   :  { %s368_s11 = smov 0   ;;  %s370_s12 = smov 0  }
   0x3 LB: > { %s385_s13 = sadd.s32 4294967295, %s346_s12   ;;  %s232_s14 = sadd.s32 4294967294, %s346_s12   ;;  %s346_s12 = sphi %s370_s12, %s477_s12   ;;  %s342_s11 = sphi %s368_s11, %s476_s11   ;;  %s338_s10 = sphi %s366_s10, %s475_s10   ;;  %s334_s9 = sphi %s364_s9, %s474_s9  }
   0x4   : > { %s389_s15 = sadd.s32 1, %s346_s12   ;;  %s69_s16 = sadd.s32 1, %s342_s11 }
   0x5   : > { %s66_s17 = ssub.s32 %s346_s12, %s389_s15  ;;  %p79_p0 = scmp.ne.s32.totalorder %s342_s11, %s338_s10 }
   0x6   : > { %p67_p1 = scmp.eq.s32.totalorder %s66_s17, 0  ;;  %p80_p2 = scmp.eq.s32.totalorder %s385_s13, 1 }
   0x7   : > { %p85_p3 = scmp.ne.s32.totalorder %s338_s10, %s334_s9  ;;  %p86_p4 = scmp.eq.s32.totalorder %s232_s14, 1 }
   0x8   : > { %s400_s18 = scalar_select %p67_p1, %s342_s11, %s69_s16  }
   0x9   : > { %p402_p5 = por %p80_p2, %p79_p0  ;;  %p406_p6 = por %p86_p4, %p85_p3 }
   0xa   : > { %p235_p7 = scmp.ge.s32.totalorder %s346_s12, 1  ;;  %p114_p8 = scmp.lt.s32.totalorder %s346_s12, 3 }
   0xc   : > { %p115_p9 = pnand %p235_p7, %p114_p8 }
   0xd   : > { %p135_p10 = scmp.lt.s32.totalorder (!%p115_p9), %s385_s13, 1  ;;  %vm141_vm0 = vcmask (!%p115_p9), 261120   ;;  %s132_s26 = sand.u32 (!%p115_p9), 1, %s338_s10   ;;  %v238_v7 = vld [vmem:[%s470_s1] ss:$0 sm:$0xff] (!%p115_p9) }
   0xe   : > { %118 = sbr.rel (%p115_p9) target bundleno = 204 (0xcc), region = 28  ;;  %s236_s27 = sshll.u32 (!%p115_p9), %s132_s26, 3 }
   0xf   : > { %s240_s30 = sshll.u32 (!%p115_p9), %s385_s13, 7  ;;  %s134_s3 = scalar_lea.vmem (!%p115_p9), [#allocation2], %s236_s27 }
  0x10   : > { %s173_s4 = sshll.u32 (!%p115_p9), %s134_s3, 4  ;;  %s426_s7 = scalar_lea.hbm (!%p115_p9), %s471_s2, %s240_s30  ;;  %s428_s4 = int_to_ptr.vmem [resolvable:$true] %s173_s4 }
  0x11   : > { %s160_s8 = scalar_lea.sflag (!%p115_p9), [#allocation3], %s132_s26  ;;  %s284_s14 = scalar_lea.vmem (!%p115_p9), %s428_s4, 128 }
  0x12   : > { %p285_p11 = scmp.ne.s32.totalorder (!%p115_p9), %s428_s4, %s284_s14 }
  0x14   : > { %p286_p12 = pnand (!%p115_p9), %p285_p11, %p402_p5 }
  0x15   : > { %s136_s21 = scalar_select %p135_p10, %s385_s13, 1 }
  0x16   : > { %p287_p13 = pneg %p286_p12  ;;  %s348_s13 = smov [#allocation2]  }
  0x17   : > { %s237_s22 = sshll.u32 %s136_s21, 3  ;;  %s288_s16 = sshll.u32 %s348_s13, 4  ;;  %s289_s16 = int_to_ptr.vmem [resolvable:$false] %s288_s16 }
  0x18   : > { %s138_s25 = scalar_lea.vmem %s469_s0, %s237_s22  ;;  %s290_s17 = scalar_lea.vmem %s289_s16, 256 }
  0x19   : > { %v139_v0 = vld [vmem:[%s138_s25] sm:$0xff]  ;;  %p291_p0 = scmp.lt.s32.totalorder %s428_s4, %s289_s16  ;;  %p292_p1 = scmp.lt.s32.totalorder %s290_s17, %s284_s14 }
  0x1a   : > { %v140_v1 = vmul.f32 %v139_v0, %v139_v0 }
  0x1b   : > { %p293_p2 = por %p292_p1, %p291_p0 }
  0x1c   : > { %v142_v2 = vsel %vm141_vm0, %v140_v1, 0.0 }
  0x1d   : > { %143 = vadd.xlane.f32.xlu0 %v142_v2  ;;  %p294_p3 = pnand %p293_p2, %p287_p13 }
  0xaa   : > { %v144_v3 = vpop.xlane.xlu0 %143 }
  0xab   : > { %v146_v4 = vmul.f32 0.03125, %v144_v3 }
  0xad   : > { %v147_v5 = vadd.f32 1e-06, %v146_v4 }
  0xaf   : > { %282 = vrsqrt.f32 %v147_v5 }
  0xb9   : > { %v283_v6 = vpop.eup %282 }
  0xba   : > { %v149_v8 = vmul.f32 %v283_v6, %v139_v0 }
  0xbc   : > { %v157_v9 = vmul.f32 %v238_v7, %v149_v8 }
  0xbe   : > { %158 = vst.msk [vmem:[%s134_s3] sm:$0xff] %vm141_vm0, %v157_v9 }
  0xbf   : > { %297 = shalt.err (!%p294_p3)
}
  0xc0   : > { %s298_s21 = scalar_lea.hbm %s426_s7, 128  ;;  %s302_s24 = scalar_lea.hbm %s471_s2, 256 }
  0xc1   : > { %p299_p4 = scmp.ne.s32.totalorder %s426_s7, %s298_s21  ;;  %p303_p9 = scmp.lt.u32.totalorder %s426_s7, %s471_s2 }
  0xc2   : > { %p304_p10 = scmp.lt.u32.totalorder %s302_s24, %s298_s21  ;;  %p306_p12 = scmp.lt.u32.totalorder %s298_s21, %s426_s7 }
  0xc3   : > { %p300_p7 = pnand %p299_p4, %p402_p5 }
  0xc4   : > { %p305_p11 = por %p304_p10, %p303_p9 }
  0xc5   : > { %p301_p8 = pneg %p300_p7 }
  0xc6   : > { %p307_p13 = por %p306_p12, %p305_p11 }
  0xc8   : > { %p308_p0 = pnand %p307_p13, %p301_p8 }
  0xca   : > { %311 = shalt.err (!%p308_p0)
}
  0xcb   : > { %243 = dma.vmem_to_hbm [thread:$0]  (%p402_p5), %s428_s4, 128, %s426_s7, %s160_s8  }
  0xcc PF: > { %p249_p1 = scmp.ge.s32.totalorder %s346_s12, 2  ;;  %s185_s27 = sand.u32 1, %s334_s9  }
  0xcd   : > { %s186_s28 = scalar_lea.sflag [#allocation3], %s185_s27 }
  0xce   : > { %p246_p2 = pnand %p249_p1, %p406_p6 }
  0xd0   : > { %329 = dma.done.wait (!%p246_p2), %s186_s28, 128  }
  0xd1   : > { %331 = vsyncadd (!%p246_p2), %s186_s28, 4294967168  ;;  %p12_p3 = scmp.ge.s32.totalorder %s389_s15, 4   ;;  %s474_s9 = smov %s338_s10 }
  0xd2   : > { %s475_s10 = smov %s342_s11  ;;  %s476_s11 = smov %s400_s18 }
  0xd3   : > { %s477_s12 = smov %s389_s15  ;;  %14 = sbr.rel (!%p12_p3) target bundleno = 3 (0x3), region = 63 }
  0xda   :  { %191 = vsyncpa [#allocation3], 1 }
  0xdb   :  { %193 = vsyncpa [#allocation3 + $0x1], 1 }

// kernel: quant_llama_model_forward.27
= control target key start
LH: loop header
LB: loop body
LE: loop exit
PB: predicated region body
PF: predicated region fallthrough
CT: control target
= control target key end

     0   :  { %v156_v0 = vmov 0.0   ;;  %vm157_vm0 = vmmov 0   ;;  %vm25_vm1 = vcmask 261120   ;;  %v158_v3 = vmov 0   ;;  %s225_s2 = inlined_call_operand.vmem [shape: s8[64,32], index: 2, kind: input, shape index: {}]   ;;  %s226_s0 = inlined_call_operand.vmem [shape: bf16[16,64], index: 0, kind: input, shape index: {}]   ;;  %s227_s1 = inlined_call_operand.vmem [shape: f32[16,1], index: 1, kind: input, shape index: {}]   ;;  %s228_s3 = inlined_call_operand.vmem [shape: f32[1,32], index: 3, kind: input, shape index: {}]   ;;  %s229_s4 = inlined_call_operand.vmem [shape: f32[16,32], index: 4, kind: input, shape index: {}]   ;;  %s230_s5 = inlined_call_operand.vmem [shape: f32[16,32], index: 5, kind: output, shape index: {}]  }
   0x1   :  { %139 = vmatprep.subr.bf16.mxu0 %v156_v0  ;;  %v32_v1 = vld [vmem:[%s225_s2] sm:$0xff]  ;;  %147 = vmatprep.mubr.msk.bf16.mxu0 %vm157_vm0, %v156_v0  ;;  %26 = vst.msk [vmem:[#allocation2] sm:$0xff] %vm25_vm1, %v156_v0  ;;  %27 = vst.msk [vmem:[#allocation2 + $0x8] sm:$0xff] %vm25_vm1, %v156_v0  ;;  %v99_v6 = vld [vmem:[%s227_s1 + $0x8] sm:$0xff]  ;;  %vm43_vm2 = vcmask 523264  }
   0x2   :  { %v34_v2 = vunpack.c.l.s8.bf16 %v32_v1  ;;  %154 = vset.pattern.permute.xlu0 %v158_v3  ;;  %v98_v4 = vld [vmem:[%s227_s1] sm:$0xff]  ;;  %v35_v5 = vunpack.c.h.s8.bf16 %v32_v1  ;;  %v33_v7 = vld [vmem:[%s225_s2 + $0x8] sm:$0xff] }
   0x3   :  { %102 = vperm.xlu0 %154, %v98_v4   ;;  %v36_v8 = vunpack.c.l.s8.bf16 %v33_v7  ;;  %v37_v9 = vunpack.c.h.s8.bf16 %v33_v7  ;;  %v155_v10 = vld [vmem:[%s226_s0] sm:$0xff]   ;;  %v122_v28 = vld [vmem:[%s229_s4 + $0x8] sm:$0xff] }
   0x4   :  { %140 = vmatpush3.bf16.msra.mxu0 %v34_v2  ;;  %v133_v20 = vld [vmem:[%s228_s3] ss:$0 sm:$0xff] }
   0x5   :  { %141 = vmatprep.subr.bf16.mxu0 %v156_v0  ;;  %v121_v23 = vld [vmem:[%s229_s4] sm:$0xff] }
   0x7   :  { %107 = vperm.xlu0 %154, %v99_v6  }
   0x8   :  { %142 = vmatpush3.bf16.msra.mxu0 %v35_v5  ;;  %v28_v11 = vld [vmem:[#allocation2] sm:$0xff]  ;;  %v29_v13 = vld [vmem:[#allocation2 + $0x8] sm:$0xff] }
   0x9   :  { %143 = vmatprep.subr.bf16.mxu0 %v156_v0 }
   0xc   :  { %144 = vmatpush3.bf16.msra.mxu0 %v36_v8 }
   0xd   :  { %145 = vmatprep.subr.bf16.mxu0 %v156_v0 }
  0x10   :  { %146 = vmatpush3.bf16.msra.mxu0 %v37_v9 }
  0x13   :  { %148 = vmatmul.mubr.msk.bf16.vlgmr.msra.gmra.mrb[0].mxu0 %vm43_vm2, %v155_v10 }
  0x82   :  { %v103_v19 = vpop.permute.xlu0 %102 }
  0x86   :  { %v108_v24 = vpop.permute.xlu0 %107 }
  0xe6   :  { %v81_v12 = vpop.f32.mrb[0].mxu0 }
  0xe7   :  { %v88_v14 = vadd.f32 %v81_v12, %v28_v11  ;;  %v149_v15 = vpop.f32.mrb[1].mxu0 }
  0xe8   :  { %v84_v16 = vpop.f32.mrb[2].mxu0 }
  0xe9   :  { %91 = vst.msk [vmem:[#allocation2] sm:$0xff] %vm25_vm1, %v88_v14  ;;  %v89_v17 = vadd.f32 %v84_v16, %v29_v13  ;;  %v150_v18 = vpop.f32.mrb[3].mxu0 }
  0xeb   :  { %92 = vst.msk [vmem:[#allocation2 + $0x8] sm:$0xff] %vm25_vm1, %v89_v17 }
  0xf0   :  { %v96_v21 = vld [vmem:[#allocation2] sm:$0xff] }
  0xf1   :  { %v110_v22 = vmul.f32 %v103_v19, %v96_v21 }
  0xf2   :  { %v97_v25 = vld [vmem:[#allocation2 + $0x8] sm:$0xff] }
  0xf3   :  { %v119_v26 = vmul.f32 %v133_v20, %v110_v22  ;;  %v111_v27 = vmul.f32 %v108_v24, %v97_v25 }
  0xf5   :  { %v123_v29 = vadd.f32 %v121_v23, %v119_v26  ;;  %v120_v30 = vmul.f32 %v133_v20, %v111_v27 }
  0xf7   :  { %125 = vst.msk [vmem:[%s230_s5] sm:$0xff] %vm25_vm1, %v123_v29  ;;  %v124_v31 = vadd.f32 %v122_v28, %v120_v30 }
  0xf9   :  { %126 = vst.msk [vmem:[%s230_s5 + $0x8] sm:$0xff] %vm25_vm1, %v124_v31 }

</bundles_post_ra>
